<compile_context>
chip_gen: v5e
topology: v5e:2x2
jax: 0.10.0
libtpu: 0.0.40
codegen_flags: <defaults>
</compile_context>

<pallas_src>
from functools import partial

import jax
import jax.numpy as jnp
from jax import lax
from jax.experimental import pallas as pl
from jax.experimental.pallas import tpu as pltpu


# ------------------------------------------------------------------------
# Fused kernel: nb_layer shared encoder layers + final Linear, whole batch,
# single invocation, everything resident in VMEM.
# ------------------------------------------------------------------------
def transformer_kernel(x_ref,
                       wqkv_ref, bqkv_ref, wo_ref, bo_ref,
                       w1_ref, b1_ref, w2_ref, b2_ref,
                       wl_ref, bl_ref,
                       o_ref, *, nb_layer, n_head, head_width):
    B, N, D = x_ref.shape
    S = B * N
    hw = head_width
    E = n_head * hw

    # Shared (weight-tied) parameters: read once, reused by every layer.
    wqkv, bqkv = wqkv_ref[...], bqkv_ref[...]
    wo, bo = wo_ref[...], bo_ref[...]
    w1, b1 = w1_ref[...], b1_ref[...]
    w2, b2 = w2_ref[...], b2_ref[...]

    # Per-head column masks over E (constants; hoisted out of the layer loop).
    # Head h owns columns [h*hw, (h+1)*hw).
    col = lax.broadcasted_iota(jnp.int32, (1, 1, E), 2)
    head_masks = [
        jnp.where((col >= h * hw) & (col < (h + 1) * hw), 1.0, 0.0)
        for h in range(n_head)
    ]

    def encoder_layer(_, x2d):                      # x2d: [B*N, D] f32
        # ---- fused Q|K|V projection: one 2-D MXU matmul ----
        # (1/sqrt(head_width) already folded into the Q columns of wqkv/bqkv)
        qkv = jnp.dot(x2d, wqkv, preferred_element_type=jnp.float32) + bqkv
        q = qkv[:, :E].reshape(B, N, E)
        k = qkv[:, E:2 * E].reshape(B, N, E)
        v = qkv[:, 2 * E:].reshape(B, N, E)

        # ---- multi-head attention via column masking (no lane slices, no
        # head transposes): q . (k*mask_h) == q_h . k_h exactly, and each
        # head's context occupies a disjoint column block of ctx. ----
        ctx = jnp.zeros((B, N, E), jnp.float32)
        for mask in head_masks:
            s = jnp.einsum('bne,bme->bnm', q, k * mask,
                           preferred_element_type=jnp.float32)
            m = jnp.max(s, axis=-1, keepdims=True)
            p = jnp.exp(s - m)
            inv = pl.reciprocal(jnp.sum(p, axis=-1, keepdims=True),
                                approx=True)        # EUP, not a VPU divide
            ctx = ctx + jnp.einsum('bnm,bme->bne', p * inv, v * mask,
                                   preferred_element_type=jnp.float32)

        # single output projection over the reconstructed concatenated context
        mha = jnp.dot(ctx.reshape(S, E), wo,
                      preferred_element_type=jnp.float32) + bo
        a = x2d + mha                               # residual 1 (dropout = id)

        # ---- FeedForward (Linear -> ReLU -> Linear) + residual ----
        h1 = jnp.maximum(
            jnp.dot(a, w1, preferred_element_type=jnp.float32) + b1, 0.0)
        ff = jnp.dot(h1, w2, preferred_element_type=jnp.float32) + b2
        return a + ff                               # residual 2

    x2d = x_ref[...].reshape(S, D).astype(jnp.float32)
    # Weight-sharing layer loop stays on-chip; unroll=True is fine while
    # nb_layer is small (switch to unroll=False if nb_layer grows).
    act = lax.fori_loop(0, nb_layer, encoder_layer, x2d, unroll=True)

    # ---- final Linear: the single store of this kernel ----
    out = (jnp.dot(act, wl_ref[...], preferred_element_type=jnp.float32)
           + bl_ref[...])
    o_ref[...] = out.reshape(o_ref.shape).astype(o_ref.dtype)


# ------------------------------------------------------------------------
# Wrapper: one grid-less pallas_call for the whole forward
# ------------------------------------------------------------------------
def transformer_forward(x, packed_params, *, nb_layer, n_head, head_width):
    B, N, _ = x.shape
    dim_out = packed_params[-2].shape[1]            # w_lin

    kernel = partial(transformer_kernel, nb_layer=nb_layer,
                     n_head=n_head, head_width=head_width)

    n_in = 1 + len(packed_params)
    return pl.pallas_call(
        kernel,
        out_shape=jax.ShapeDtypeStruct((B, N, dim_out), jnp.float32),
        # No grid: whole arrays live in VMEM, copied in/out exactly once.
        in_specs=[pl.BlockSpec(memory_space=pltpu.MemorySpace.VMEM)
                  for _ in range(n_in)],
        out_specs=pl.BlockSpec(memory_space=pltpu.MemorySpace.VMEM),
    )(x, *packed_params)


# ------------------------------------------------------------------------
# Deterministic parameter init (PyTorch-Linear-style uniform +/- 1/sqrt(fan_in))
# ------------------------------------------------------------------------
def _linear_params(key, fan_in, fan_out):
    kw, kb = jax.random.split(key)
    bound = 1.0 / (fan_in ** 0.5)
    w = jax.random.uniform(kw, (fan_in, fan_out), jnp.float32, -bound, bound)
    b = jax.random.uniform(kb, (1, fan_out), jnp.float32, -bound, bound)
    return w, b


def init_params(key, dim_in, dim_out, head_width, n_head, ff_width):
    e = head_width * n_head
    keys = jax.random.split(key, 7)
    wq, bq = _linear_params(keys[0], dim_in, e)
    wk, bk = _linear_params(keys[1], dim_in, e)
    wv, bv = _linear_params(keys[2], dim_in, e)
    wo, bo = _linear_params(keys[3], e, dim_in)
    w1, b1 = _linear_params(keys[4], dim_in, ff_width)
    w2, b2 = _linear_params(keys[5], ff_width, dim_in)
    w_lin, b_lin = _linear_params(keys[6], dim_in, dim_out)
    return dict(wq=wq, bq=bq, wk=wk, bk=bk, wv=wv, bv=bv, wo=wo, bo=bo,
                w1=w1, b1=b1, w2=w2, b2=b2, w_lin=w_lin, b_lin=b_lin)


def pack_params(p, head_width):
    """One-time weight transform: fuse Q|K|V into a single [D, 3E] weight and
    fold the 1/sqrt(head_width) softmax scale into the Q projection."""
    scale = 1.0 / (float(head_width) ** 0.5)
    wqkv = jnp.concatenate([p['wq'] * scale, p['wk'], p['wv']], axis=1)
    bqkv = jnp.concatenate([p['bq'] * scale, p['bk'], p['bv']], axis=1)
    return (wqkv, bqkv, p['wo'], p['bo'], p['w1'], p['b1'],
            p['w2'], p['b2'], p['w_lin'], p['b_lin'])


# ------------------------------------------------------------------------
if __name__ == "__main__":
    # Module hyper-parameters (small, consistent with the PyTorch module).
    dim_in, dim_out = 32, 16
    nb_layer = 2
    head_width, n_head = 8, 4
    ff_width = 64
    B, N = 2, 10          # N=10 matches the (unused) LayerNorm([10, dim_out])

    key = jax.random.PRNGKey(0)
    k_x, k_p = jax.random.split(key)
    x = jax.random.normal(k_x, (B, N, dim_in), jnp.float32)
    params = init_params(k_p, dim_in, dim_out, head_width, n_head, ff_width)
    packed = pack_params(params, head_width)

    out = transformer_forward(x, packed, nb_layer=nb_layer,
                              n_head=n_head, head_width=head_width)
    out = jax.block_until_ready(out)
    assert out.shape == (B, N, dim_out), out.shape
    print("KERNEL_OK")
</pallas_src>

<mosaic_0001>
module attributes {stable_mosaic.version = 11 : i64} {
  func.func @transformer_kernel(%arg0: memref<2x10x32xf32, #tpu.memory_space<vmem>>, %arg1: memref<32x96xf32, #tpu.memory_space<vmem>>, %arg2: memref<1x96xf32, #tpu.memory_space<vmem>>, %arg3: memref<32x32xf32, #tpu.memory_space<vmem>>, %arg4: memref<1x32xf32, #tpu.memory_space<vmem>>, %arg5: memref<32x64xf32, #tpu.memory_space<vmem>>, %arg6: memref<1x64xf32, #tpu.memory_space<vmem>>, %arg7: memref<64x32xf32, #tpu.memory_space<vmem>>, %arg8: memref<1x32xf32, #tpu.memory_space<vmem>>, %arg9: memref<32x16xf32, #tpu.memory_space<vmem>>, %arg10: memref<1x16xf32, #tpu.memory_space<vmem>>, %arg11: memref<2x10x16xf32, #tpu.memory_space<vmem>>) attributes {dimension_semantics = [], scalar_prefetch = 0 : i64, scratch_operands = 0 : i64, tpu.core_type = #tpu.core_type<tc>} {
    %c0 = arith.constant 0 : index
    %c0_0 = arith.constant 0 : index
    %0 = vector.load %arg1[%c0, %c0_0] : memref<32x96xf32, #tpu.memory_space<vmem>>, vector<32x96xf32>
    %c0_1 = arith.constant 0 : index
    %c0_2 = arith.constant 0 : index
    %1 = vector.load %arg2[%c0_1, %c0_2] : memref<1x96xf32, #tpu.memory_space<vmem>>, vector<1x96xf32>
    %c0_3 = arith.constant 0 : index
    %c0_4 = arith.constant 0 : index
    %2 = vector.load %arg3[%c0_3, %c0_4] : memref<32x32xf32, #tpu.memory_space<vmem>>, vector<32x32xf32>
    %c0_5 = arith.constant 0 : index
    %c0_6 = arith.constant 0 : index
    %3 = vector.load %arg4[%c0_5, %c0_6] : memref<1x32xf32, #tpu.memory_space<vmem>>, vector<1x32xf32>
    %c0_7 = arith.constant 0 : index
    %c0_8 = arith.constant 0 : index
    %4 = vector.load %arg5[%c0_7, %c0_8] : memref<32x64xf32, #tpu.memory_space<vmem>>, vector<32x64xf32>
    %c0_9 = arith.constant 0 : index
    %c0_10 = arith.constant 0 : index
    %5 = vector.load %arg6[%c0_9, %c0_10] : memref<1x64xf32, #tpu.memory_space<vmem>>, vector<1x64xf32>
    %c0_11 = arith.constant 0 : index
    %c0_12 = arith.constant 0 : index
    %6 = vector.load %arg7[%c0_11, %c0_12] : memref<64x32xf32, #tpu.memory_space<vmem>>, vector<64x32xf32>
    %c0_13 = arith.constant 0 : index
    %c0_14 = arith.constant 0 : index
    %7 = vector.load %arg8[%c0_13, %c0_14] : memref<1x32xf32, #tpu.memory_space<vmem>>, vector<1x32xf32>
    %8 = tpu.iota {dimensions = array<i32: 2>} : vector<1x1x32xi32>
    %c0_i32 = arith.constant 0 : i32
    %9 = vector.broadcast %c0_i32 : i32 to vector<1x1x32xi32>
    %10 = arith.cmpi sge, %8, %9 : vector<1x1x32xi32>
    %c8_i32 = arith.constant 8 : i32
    %11 = vector.broadcast %c8_i32 : i32 to vector<1x1x32xi32>
    %12 = arith.cmpi slt, %8, %11 : vector<1x1x32xi32>
    %13 = arith.andi %10, %12 : vector<1x1x32xi1>
    %cst = arith.constant 1.000000e+00 : f32
    %cst_15 = arith.constant 0.000000e+00 : f32
    %14 = vector.broadcast %cst : f32 to vector<1x1x32xf32>
    %15 = vector.broadcast %cst_15 : f32 to vector<1x1x32xf32>
    %16 = arith.select %13, %14, %15 : vector<1x1x32xi1>, vector<1x1x32xf32>
    %c8_i32_16 = arith.constant 8 : i32
    %17 = vector.broadcast %c8_i32_16 : i32 to vector<1x1x32xi32>
    %18 = arith.cmpi sge, %8, %17 : vector<1x1x32xi32>
    %c16_i32 = arith.constant 16 : i32
    %19 = vector.broadcast %c16_i32 : i32 to vector<1x1x32xi32>
    %20 = arith.cmpi slt, %8, %19 : vector<1x1x32xi32>
    %21 = arith.andi %18, %20 : vector<1x1x32xi1>
    %cst_17 = arith.constant 1.000000e+00 : f32
    %cst_18 = arith.constant 0.000000e+00 : f32
    %22 = vector.broadcast %cst_17 : f32 to vector<1x1x32xf32>
    %23 = vector.broadcast %cst_18 : f32 to vector<1x1x32xf32>
    %24 = arith.select %21, %22, %23 : vector<1x1x32xi1>, vector<1x1x32xf32>
    %c16_i32_19 = arith.constant 16 : i32
    %25 = vector.broadcast %c16_i32_19 : i32 to vector<1x1x32xi32>
    %26 = arith.cmpi sge, %8, %25 : vector<1x1x32xi32>
    %c24_i32 = arith.constant 24 : i32
    %27 = vector.broadcast %c24_i32 : i32 to vector<1x1x32xi32>
    %28 = arith.cmpi slt, %8, %27 : vector<1x1x32xi32>
    %29 = arith.andi %26, %28 : vector<1x1x32xi1>
    %cst_20 = arith.constant 1.000000e+00 : f32
    %cst_21 = arith.constant 0.000000e+00 : f32
    %30 = vector.broadcast %cst_20 : f32 to vector<1x1x32xf32>
    %31 = vector.broadcast %cst_21 : f32 to vector<1x1x32xf32>
    %32 = arith.select %29, %30, %31 : vector<1x1x32xi1>, vector<1x1x32xf32>
    %c24_i32_22 = arith.constant 24 : i32
    %33 = vector.broadcast %c24_i32_22 : i32 to vector<1x1x32xi32>
    %34 = arith.cmpi sge, %8, %33 : vector<1x1x32xi32>
    %c32_i32 = arith.constant 32 : i32
    %35 = vector.broadcast %c32_i32 : i32 to vector<1x1x32xi32>
    %36 = arith.cmpi slt, %8, %35 : vector<1x1x32xi32>
    %37 = arith.andi %34, %36 : vector<1x1x32xi1>
    %cst_23 = arith.constant 1.000000e+00 : f32
    %cst_24 = arith.constant 0.000000e+00 : f32
    %38 = vector.broadcast %cst_23 : f32 to vector<1x1x32xf32>
    %39 = vector.broadcast %cst_24 : f32 to vector<1x1x32xf32>
    %40 = arith.select %37, %38, %39 : vector<1x1x32xi1>, vector<1x1x32xf32>
    %c0_25 = arith.constant 0 : index
    %c0_26 = arith.constant 0 : index
    %c0_27 = arith.constant 0 : index
    %41 = vector.load %arg0[%c0_25, %c0_26, %c0_27] : memref<2x10x32xf32, #tpu.memory_space<vmem>>, vector<2x10x32xf32>
    %42 = vector.shape_cast %41 : vector<2x10x32xf32> to vector<20x32xf32>
    %c0_i32_28 = arith.constant 0 : i32
    %cst_29 = arith.constant dense<0.000000e+00> : vector<20x96xf32>
    %43 = tpu.matmul %42, %0, %cst_29 {dimension_numbers = #tpu.dot_dimension_numbers<[1], [0], [0], [1], [0, 0, 1, 1], [], []>} : vector<20x32xf32>, vector<32x96xf32>, vector<20x96xf32> -> vector<20x96xf32>
    %44 = vector.broadcast %1 : vector<1x96xf32> to vector<20x96xf32>
    %45 = arith.addf %43, %44 : vector<20x96xf32>
    %46 = vector.extract_strided_slice %45 {offsets = [0, 0], sizes = [20, 32], strides = [1, 1]} : vector<20x96xf32> to vector<20x32xf32>
    %47 = vector.shape_cast %46 : vector<20x32xf32> to vector<2x10x32xf32>
    %48 = vector.extract_strided_slice %45 {offsets = [0, 32], sizes = [20, 32], strides = [1, 1]} : vector<20x96xf32> to vector<20x32xf32>
    %49 = vector.shape_cast %48 : vector<20x32xf32> to vector<2x10x32xf32>
    %50 = vector.extract_strided_slice %45 {offsets = [0, 64], sizes = [20, 32], strides = [1, 1]} : vector<20x96xf32> to vector<20x32xf32>
    %51 = vector.shape_cast %50 : vector<20x32xf32> to vector<2x10x32xf32>
    %cst_30 = arith.constant 0.000000e+00 : f32
    %52 = vector.broadcast %cst_30 : f32 to vector<2x10x32xf32>
    %53 = vector.broadcast %16 : vector<1x1x32xf32> to vector<2x10x32xf32>
    %54 = arith.mulf %49, %53 : vector<2x10x32xf32>
    "tpu.trace_start"() <{level = 10 : i32, message = "bne,bme->bnm"}> : () -> ()
    %cst_31 = arith.constant dense<0.000000e+00> : vector<2x10x10xf32>
    %55 = tpu.matmul %47, %54, %cst_31 {dimension_numbers = #tpu.dot_dimension_numbers<[2], [2], [1], [1], [0, 0, 0, 1, 1, 1], [0], [0]>} : vector<2x10x32xf32>, vector<2x10x32xf32>, vector<2x10x10xf32> -> vector<2x10x10xf32>
    "tpu.trace_stop"() : () -> ()
    %cst_32 = arith.constant dense<0xFF800000> : vector<2x10xf32>
    %56 = vector.multi_reduction <maximumf>, %55, %cst_32 [2] : vector<2x10x10xf32> to vector<2x10xf32>
    %57 = vector.shape_cast %56 : vector<2x10xf32> to vector<2x10x1xf32>
    %58 = vector.broadcast %57 : vector<2x10x1xf32> to vector<2x10x10xf32>
    %59 = arith.subf %55, %58 : vector<2x10x10xf32>
    %60 = math.exp %59 : vector<2x10x10xf32>
    %cst_33 = arith.constant dense<0.000000e+00> : vector<2x10xf32>
    %61 = vector.multi_reduction <add>, %60, %cst_33 [2] : vector<2x10x10xf32> to vector<2x10xf32>
    %62 = vector.shape_cast %61 : vector<2x10xf32> to vector<2x10x1xf32>
    %63 = tpu.reciprocal %62 {approx = true} : vector<2x10x1xf32> -> vector<2x10x1xf32>
    %64 = vector.broadcast %63 : vector<2x10x1xf32> to vector<2x10x10xf32>
    %65 = arith.mulf %60, %64 : vector<2x10x10xf32>
    %66 = vector.broadcast %16 : vector<1x1x32xf32> to vector<2x10x32xf32>
    %67 = arith.mulf %51, %66 : vector<2x10x32xf32>
    "tpu.trace_start"() <{level = 10 : i32, message = "bnm,bme->bne"}> : () -> ()
    %cst_34 = arith.constant dense<0.000000e+00> : vector<2x10x32xf32>
    %68 = tpu.matmul %65, %67, %cst_34 {dimension_numbers = #tpu.dot_dimension_numbers<[2], [1], [1], [2], [0, 0, 0, 1, 1, 2], [0], [0]>} : vector<2x10x10xf32>, vector<2x10x32xf32>, vector<2x10x32xf32> -> vector<2x10x32xf32>
    "tpu.trace_stop"() : () -> ()
    %69 = arith.addf %52, %68 : vector<2x10x32xf32>
    %70 = vector.broadcast %24 : vector<1x1x32xf32> to vector<2x10x32xf32>
    %71 = arith.mulf %49, %70 : vector<2x10x32xf32>
    "tpu.trace_start"() <{level = 10 : i32, message = "bne,bme->bnm"}> : () -> ()
    %cst_35 = arith.constant dense<0.000000e+00> : vector<2x10x10xf32>
    %72 = tpu.matmul %47, %71, %cst_35 {dimension_numbers = #tpu.dot_dimension_numbers<[2], [2], [1], [1], [0, 0, 0, 1, 1, 1], [0], [0]>} : vector<2x10x32xf32>, vector<2x10x32xf32>, vector<2x10x10xf32> -> vector<2x10x10xf32>
    "tpu.trace_stop"() : () -> ()
    %cst_36 = arith.constant dense<0xFF800000> : vector<2x10xf32>
    %73 = vector.multi_reduction <maximumf>, %72, %cst_36 [2] : vector<2x10x10xf32> to vector<2x10xf32>
    %74 = vector.shape_cast %73 : vector<2x10xf32> to vector<2x10x1xf32>
    %75 = vector.broadcast %74 : vector<2x10x1xf32> to vector<2x10x10xf32>
    %76 = arith.subf %72, %75 : vector<2x10x10xf32>
    %77 = math.exp %76 : vector<2x10x10xf32>
    %cst_37 = arith.constant dense<0.000000e+00> : vector<2x10xf32>
    %78 = vector.multi_reduction <add>, %77, %cst_37 [2] : vector<2x10x10xf32> to vector<2x10xf32>
    %79 = vector.shape_cast %78 : vector<2x10xf32> to vector<2x10x1xf32>
    %80 = tpu.reciprocal %79 {approx = true} : vector<2x10x1xf32> -> vector<2x10x1xf32>
    %81 = vector.broadcast %80 : vector<2x10x1xf32> to vector<2x10x10xf32>
    %82 = arith.mulf %77, %81 : vector<2x10x10xf32>
    %83 = vector.broadcast %24 : vector<1x1x32xf32> to vector<2x10x32xf32>
    %84 = arith.mulf %51, %83 : vector<2x10x32xf32>
    "tpu.trace_start"() <{level = 10 : i32, message = "bnm,bme->bne"}> : () -> ()
    %cst_38 = arith.constant dense<0.000000e+00> : vector<2x10x32xf32>
    %85 = tpu.matmul %82, %84, %cst_38 {dimension_numbers = #tpu.dot_dimension_numbers<[2], [1], [1], [2], [0, 0, 0, 1, 1, 2], [0], [0]>} : vector<2x10x10xf32>, vector<2x10x32xf32>, vector<2x10x32xf32> -> vector<2x10x32xf32>
    "tpu.trace_stop"() : () -> ()
    %86 = arith.addf %69, %85 : vector<2x10x32xf32>
    %87 = vector.broadcast %32 : vector<1x1x32xf32> to vector<2x10x32xf32>
    %88 = arith.mulf %49, %87 : vector<2x10x32xf32>
    "tpu.trace_start"() <{level = 10 : i32, message = "bne,bme->bnm"}> : () -> ()
    %cst_39 = arith.constant dense<0.000000e+00> : vector<2x10x10xf32>
    %89 = tpu.matmul %47, %88, %cst_39 {dimension_numbers = #tpu.dot_dimension_numbers<[2], [2], [1], [1], [0, 0, 0, 1, 1, 1], [0], [0]>} : vector<2x10x32xf32>, vector<2x10x32xf32>, vector<2x10x10xf32> -> vector<2x10x10xf32>
    "tpu.trace_stop"() : () -> ()
    %cst_40 = arith.constant dense<0xFF800000> : vector<2x10xf32>
    %90 = vector.multi_reduction <maximumf>, %89, %cst_40 [2] : vector<2x10x10xf32> to vector<2x10xf32>
    %91 = vector.shape_cast %90 : vector<2x10xf32> to vector<2x10x1xf32>
    %92 = vector.broadcast %91 : vector<2x10x1xf32> to vector<2x10x10xf32>
    %93 = arith.subf %89, %92 : vector<2x10x10xf32>
    %94 = math.exp %93 : vector<2x10x10xf32>
    %cst_41 = arith.constant dense<0.000000e+00> : vector<2x10xf32>
    %95 = vector.multi_reduction <add>, %94, %cst_41 [2] : vector<2x10x10xf32> to vector<2x10xf32>
    %96 = vector.shape_cast %95 : vector<2x10xf32> to vector<2x10x1xf32>
    %97 = tpu.reciprocal %96 {approx = true} : vector<2x10x1xf32> -> vector<2x10x1xf32>
    %98 = vector.broadcast %97 : vector<2x10x1xf32> to vector<2x10x10xf32>
    %99 = arith.mulf %94, %98 : vector<2x10x10xf32>
    %100 = vector.broadcast %32 : vector<1x1x32xf32> to vector<2x10x32xf32>
    %101 = arith.mulf %51, %100 : vector<2x10x32xf32>
    "tpu.trace_start"() <{level = 10 : i32, message = "bnm,bme->bne"}> : () -> ()
    %cst_42 = arith.constant dense<0.000000e+00> : vector<2x10x32xf32>
    %102 = tpu.matmul %99, %101, %cst_42 {dimension_numbers = #tpu.dot_dimension_numbers<[2], [1], [1], [2], [0, 0, 0, 1, 1, 2], [0], [0]>} : vector<2x10x10xf32>, vector<2x10x32xf32>, vector<2x10x32xf32> -> vector<2x10x32xf32>
    "tpu.trace_stop"() : () -> ()
    %103 = arith.addf %86, %102 : vector<2x10x32xf32>
    %104 = vector.broadcast %40 : vector<1x1x32xf32> to vector<2x10x32xf32>
    %105 = arith.mulf %49, %104 : vector<2x10x32xf32>
    "tpu.trace_start"() <{level = 10 : i32, message = "bne,bme->bnm"}> : () -> ()
    %cst_43 = arith.constant dense<0.000000e+00> : vector<2x10x10xf32>
    %106 = tpu.matmul %47, %105, %cst_43 {dimension_numbers = #tpu.dot_dimension_numbers<[2], [2], [1], [1], [0, 0, 0, 1, 1, 1], [0], [0]>} : vector<2x10x32xf32>, vector<2x10x32xf32>, vector<2x10x10xf32> -> vector<2x10x10xf32>
    "tpu.trace_stop"() : () -> ()
    %cst_44 = arith.constant dense<0xFF800000> : vector<2x10xf32>
    %107 = vector.multi_reduction <maximumf>, %106, %cst_44 [2] : vector<2x10x10xf32> to vector<2x10xf32>
    %108 = vector.shape_cast %107 : vector<2x10xf32> to vector<2x10x1xf32>
    %109 = vector.broadcast %108 : vector<2x10x1xf32> to vector<2x10x10xf32>
    %110 = arith.subf %106, %109 : vector<2x10x10xf32>
    %111 = math.exp %110 : vector<2x10x10xf32>
    %cst_45 = arith.constant dense<0.000000e+00> : vector<2x10xf32>
    %112 = vector.multi_reduction <add>, %111, %cst_45 [2] : vector<2x10x10xf32> to vector<2x10xf32>
    %113 = vector.shape_cast %112 : vector<2x10xf32> to vector<2x10x1xf32>
    %114 = tpu.reciprocal %113 {approx = true} : vector<2x10x1xf32> -> vector<2x10x1xf32>
    %115 = vector.broadcast %114 : vector<2x10x1xf32> to vector<2x10x10xf32>
    %116 = arith.mulf %111, %115 : vector<2x10x10xf32>
    %117 = vector.broadcast %40 : vector<1x1x32xf32> to vector<2x10x32xf32>
    %118 = arith.mulf %51, %117 : vector<2x10x32xf32>
    "tpu.trace_start"() <{level = 10 : i32, message = "bnm,bme->bne"}> : () -> ()
    %cst_46 = arith.constant dense<0.000000e+00> : vector<2x10x32xf32>
    %119 = tpu.matmul %116, %118, %cst_46 {dimension_numbers = #tpu.dot_dimension_numbers<[2], [1], [1], [2], [0, 0, 0, 1, 1, 2], [0], [0]>} : vector<2x10x10xf32>, vector<2x10x32xf32>, vector<2x10x32xf32> -> vector<2x10x32xf32>
    "tpu.trace_stop"() : () -> ()
    %120 = arith.addf %103, %119 : vector<2x10x32xf32>
    %121 = vector.shape_cast %120 : vector<2x10x32xf32> to vector<20x32xf32>
    %cst_47 = arith.constant dense<0.000000e+00> : vector<20x32xf32>
    %122 = tpu.matmul %121, %2, %cst_47 {dimension_numbers = #tpu.dot_dimension_numbers<[1], [0], [0], [1], [0, 0, 1, 1], [], []>} : vector<20x32xf32>, vector<32x32xf32>, vector<20x32xf32> -> vector<20x32xf32>
    %123 = vector.broadcast %3 : vector<1x32xf32> to vector<20x32xf32>
    %124 = arith.addf %122, %123 : vector<20x32xf32>
    %125 = arith.addf %42, %124 : vector<20x32xf32>
    %cst_48 = arith.constant dense<0.000000e+00> : vector<20x64xf32>
    %126 = tpu.matmul %125, %4, %cst_48 {dimension_numbers = #tpu.dot_dimension_numbers<[1], [0], [0], [1], [0, 0, 1, 1], [], []>} : vector<20x32xf32>, vector<32x64xf32>, vector<20x64xf32> -> vector<20x64xf32>
    %127 = vector.broadcast %5 : vector<1x64xf32> to vector<20x64xf32>
    %128 = arith.addf %126, %127 : vector<20x64xf32>
    %cst_49 = arith.constant 0.000000e+00 : f32
    %129 = vector.broadcast %cst_49 : f32 to vector<20x64xf32>
    %130 = arith.maximumf %128, %129 : vector<20x64xf32>
    %cst_50 = arith.constant dense<0.000000e+00> : vector<20x32xf32>
    %131 = tpu.matmul %130, %6, %cst_50 {dimension_numbers = #tpu.dot_dimension_numbers<[1], [0], [0], [1], [0, 0, 1, 1], [], []>} : vector<20x64xf32>, vector<64x32xf32>, vector<20x32xf32> -> vector<20x32xf32>
    %132 = vector.broadcast %7 : vector<1x32xf32> to vector<20x32xf32>
    %133 = arith.addf %131, %132 : vector<20x32xf32>
    %134 = arith.addf %125, %133 : vector<20x32xf32>
    %c1_i32 = arith.constant 1 : i32
    %cst_51 = arith.constant dense<0.000000e+00> : vector<20x96xf32>
    %135 = tpu.matmul %134, %0, %cst_51 {dimension_numbers = #tpu.dot_dimension_numbers<[1], [0], [0], [1], [0, 0, 1, 1], [], []>} : vector<20x32xf32>, vector<32x96xf32>, vector<20x96xf32> -> vector<20x96xf32>
    %136 = vector.broadcast %1 : vector<1x96xf32> to vector<20x96xf32>
    %137 = arith.addf %135, %136 : vector<20x96xf32>
    %138 = vector.extract_strided_slice %137 {offsets = [0, 0], sizes = [20, 32], strides = [1, 1]} : vector<20x96xf32> to vector<20x32xf32>
    %139 = vector.shape_cast %138 : vector<20x32xf32> to vector<2x10x32xf32>
    %140 = vector.extract_strided_slice %137 {offsets = [0, 32], sizes = [20, 32], strides = [1, 1]} : vector<20x96xf32> to vector<20x32xf32>
    %141 = vector.shape_cast %140 : vector<20x32xf32> to vector<2x10x32xf32>
    %142 = vector.extract_strided_slice %137 {offsets = [0, 64], sizes = [20, 32], strides = [1, 1]} : vector<20x96xf32> to vector<20x32xf32>
    %143 = vector.shape_cast %142 : vector<20x32xf32> to vector<2x10x32xf32>
    %cst_52 = arith.constant 0.000000e+00 : f32
    %144 = vector.broadcast %cst_52 : f32 to vector<2x10x32xf32>
    %145 = vector.broadcast %16 : vector<1x1x32xf32> to vector<2x10x32xf32>
    %146 = arith.mulf %141, %145 : vector<2x10x32xf32>
    "tpu.trace_start"() <{level = 10 : i32, message = "bne,bme->bnm"}> : () -> ()
    %cst_53 = arith.constant dense<0.000000e+00> : vector<2x10x10xf32>
    %147 = tpu.matmul %139, %146, %cst_53 {dimension_numbers = #tpu.dot_dimension_numbers<[2], [2], [1], [1], [0, 0, 0, 1, 1, 1], [0], [0]>} : vector<2x10x32xf32>, vector<2x10x32xf32>, vector<2x10x10xf32> -> vector<2x10x10xf32>
    "tpu.trace_stop"() : () -> ()
    %cst_54 = arith.constant dense<0xFF800000> : vector<2x10xf32>
    %148 = vector.multi_reduction <maximumf>, %147, %cst_54 [2] : vector<2x10x10xf32> to vector<2x10xf32>
    %149 = vector.shape_cast %148 : vector<2x10xf32> to vector<2x10x1xf32>
    %150 = vector.broadcast %149 : vector<2x10x1xf32> to vector<2x10x10xf32>
    %151 = arith.subf %147, %150 : vector<2x10x10xf32>
    %152 = math.exp %151 : vector<2x10x10xf32>
    %cst_55 = arith.constant dense<0.000000e+00> : vector<2x10xf32>
    %153 = vector.multi_reduction <add>, %152, %cst_55 [2] : vector<2x10x10xf32> to vector<2x10xf32>
    %154 = vector.shape_cast %153 : vector<2x10xf32> to vector<2x10x1xf32>
    %155 = tpu.reciprocal %154 {approx = true} : vector<2x10x1xf32> -> vector<2x10x1xf32>
    %156 = vector.broadcast %155 : vector<2x10x1xf32> to vector<2x10x10xf32>
    %157 = arith.mulf %152, %156 : vector<2x10x10xf32>
    %158 = vector.broadcast %16 : vector<1x1x32xf32> to vector<2x10x32xf32>
    %159 = arith.mulf %143, %158 : vector<2x10x32xf32>
    "tpu.trace_start"() <{level = 10 : i32, message = "bnm,bme->bne"}> : () -> ()
    %cst_56 = arith.constant dense<0.000000e+00> : vector<2x10x32xf32>
    %160 = tpu.matmul %157, %159, %cst_56 {dimension_numbers = #tpu.dot_dimension_numbers<[2], [1], [1], [2], [0, 0, 0, 1, 1, 2], [0], [0]>} : vector<2x10x10xf32>, vector<2x10x32xf32>, vector<2x10x32xf32> -> vector<2x10x32xf32>
    "tpu.trace_stop"() : () -> ()
    %161 = arith.addf %144, %160 : vector<2x10x32xf32>
    %162 = vector.broadcast %24 : vector<1x1x32xf32> to vector<2x10x32xf32>
    %163 = arith.mulf %141, %162 : vector<2x10x32xf32>
    "tpu.trace_start"() <{level = 10 : i32, message = "bne,bme->bnm"}> : () -> ()
    %cst_57 = arith.constant dense<0.000000e+00> : vector<2x10x10xf32>
    %164 = tpu.matmul %139, %163, %cst_57 {dimension_numbers = #tpu.dot_dimension_numbers<[2], [2], [1], [1], [0, 0, 0, 1, 1, 1], [0], [0]>} : vector<2x10x32xf32>, vector<2x10x32xf32>, vector<2x10x10xf32> -> vector<2x10x10xf32>
    "tpu.trace_stop"() : () -> ()
    %cst_58 = arith.constant dense<0xFF800000> : vector<2x10xf32>
    %165 = vector.multi_reduction <maximumf>, %164, %cst_58 [2] : vector<2x10x10xf32> to vector<2x10xf32>
    %166 = vector.shape_cast %165 : vector<2x10xf32> to vector<2x10x1xf32>
    %167 = vector.broadcast %166 : vector<2x10x1xf32> to vector<2x10x10xf32>
    %168 = arith.subf %164, %167 : vector<2x10x10xf32>
    %169 = math.exp %168 : vector<2x10x10xf32>
    %cst_59 = arith.constant dense<0.000000e+00> : vector<2x10xf32>
    %170 = vector.multi_reduction <add>, %169, %cst_59 [2] : vector<2x10x10xf32> to vector<2x10xf32>
    %171 = vector.shape_cast %170 : vector<2x10xf32> to vector<2x10x1xf32>
    %172 = tpu.reciprocal %171 {approx = true} : vector<2x10x1xf32> -> vector<2x10x1xf32>
    %173 = vector.broadcast %172 : vector<2x10x1xf32> to vector<2x10x10xf32>
    %174 = arith.mulf %169, %173 : vector<2x10x10xf32>
    %175 = vector.broadcast %24 : vector<1x1x32xf32> to vector<2x10x32xf32>
    %176 = arith.mulf %143, %175 : vector<2x10x32xf32>
    "tpu.trace_start"() <{level = 10 : i32, message = "bnm,bme->bne"}> : () -> ()
    %cst_60 = arith.constant dense<0.000000e+00> : vector<2x10x32xf32>
    %177 = tpu.matmul %174, %176, %cst_60 {dimension_numbers = #tpu.dot_dimension_numbers<[2], [1], [1], [2], [0, 0, 0, 1, 1, 2], [0], [0]>} : vector<2x10x10xf32>, vector<2x10x32xf32>, vector<2x10x32xf32> -> vector<2x10x32xf32>
    "tpu.trace_stop"() : () -> ()
    %178 = arith.addf %161, %177 : vector<2x10x32xf32>
    %179 = vector.broadcast %32 : vector<1x1x32xf32> to vector<2x10x32xf32>
    %180 = arith.mulf %141, %179 : vector<2x10x32xf32>
    "tpu.trace_start"() <{level = 10 : i32, message = "bne,bme->bnm"}> : () -> ()
    %cst_61 = arith.constant dense<0.000000e+00> : vector<2x10x10xf32>
    %181 = tpu.matmul %139, %180, %cst_61 {dimension_numbers = #tpu.dot_dimension_numbers<[2], [2], [1], [1], [0, 0, 0, 1, 1, 1], [0], [0]>} : vector<2x10x32xf32>, vector<2x10x32xf32>, vector<2x10x10xf32> -> vector<2x10x10xf32>
    "tpu.trace_stop"() : () -> ()
    %cst_62 = arith.constant dense<0xFF800000> : vector<2x10xf32>
    %182 = vector.multi_reduction <maximumf>, %181, %cst_62 [2] : vector<2x10x10xf32> to vector<2x10xf32>
    %183 = vector.shape_cast %182 : vector<2x10xf32> to vector<2x10x1xf32>
    %184 = vector.broadcast %183 : vector<2x10x1xf32> to vector<2x10x10xf32>
    %185 = arith.subf %181, %184 : vector<2x10x10xf32>
    %186 = math.exp %185 : vector<2x10x10xf32>
    %cst_63 = arith.constant dense<0.000000e+00> : vector<2x10xf32>
    %187 = vector.multi_reduction <add>, %186, %cst_63 [2] : vector<2x10x10xf32> to vector<2x10xf32>
    %188 = vector.shape_cast %187 : vector<2x10xf32> to vector<2x10x1xf32>
    %189 = tpu.reciprocal %188 {approx = true} : vector<2x10x1xf32> -> vector<2x10x1xf32>
    %190 = vector.broadcast %189 : vector<2x10x1xf32> to vector<2x10x10xf32>
    %191 = arith.mulf %186, %190 : vector<2x10x10xf32>
    %192 = vector.broadcast %32 : vector<1x1x32xf32> to vector<2x10x32xf32>
    %193 = arith.mulf %143, %192 : vector<2x10x32xf32>
    "tpu.trace_start"() <{level = 10 : i32, message = "bnm,bme->bne"}> : () -> ()
    %cst_64 = arith.constant dense<0.000000e+00> : vector<2x10x32xf32>
    %194 = tpu.matmul %191, %193, %cst_64 {dimension_numbers = #tpu.dot_dimension_numbers<[2], [1], [1], [2], [0, 0, 0, 1, 1, 2], [0], [0]>} : vector<2x10x10xf32>, vector<2x10x32xf32>, vector<2x10x32xf32> -> vector<2x10x32xf32>
    "tpu.trace_stop"() : () -> ()
    %195 = arith.addf %178, %194 : vector<2x10x32xf32>
    %196 = vector.broadcast %40 : vector<1x1x32xf32> to vector<2x10x32xf32>
    %197 = arith.mulf %141, %196 : vector<2x10x32xf32>
    "tpu.trace_start"() <{level = 10 : i32, message = "bne,bme->bnm"}> : () -> ()
    %cst_65 = arith.constant dense<0.000000e+00> : vector<2x10x10xf32>
    %198 = tpu.matmul %139, %197, %cst_65 {dimension_numbers = #tpu.dot_dimension_numbers<[2], [2], [1], [1], [0, 0, 0, 1, 1, 1], [0], [0]>} : vector<2x10x32xf32>, vector<2x10x32xf32>, vector<2x10x10xf32> -> vector<2x10x10xf32>
    "tpu.trace_stop"() : () -> ()
    %cst_66 = arith.constant dense<0xFF800000> : vector<2x10xf32>
    %199 = vector.multi_reduction <maximumf>, %198, %cst_66 [2] : vector<2x10x10xf32> to vector<2x10xf32>
    %200 = vector.shape_cast %199 : vector<2x10xf32> to vector<2x10x1xf32>
    %201 = vector.broadcast %200 : vector<2x10x1xf32> to vector<2x10x10xf32>
    %202 = arith.subf %198, %201 : vector<2x10x10xf32>
    %203 = math.exp %202 : vector<2x10x10xf32>
    %cst_67 = arith.constant dense<0.000000e+00> : vector<2x10xf32>
    %204 = vector.multi_reduction <add>, %203, %cst_67 [2] : vector<2x10x10xf32> to vector<2x10xf32>
    %205 = vector.shape_cast %204 : vector<2x10xf32> to vector<2x10x1xf32>
    %206 = tpu.reciprocal %205 {approx = true} : vector<2x10x1xf32> -> vector<2x10x1xf32>
    %207 = vector.broadcast %206 : vector<2x10x1xf32> to vector<2x10x10xf32>
    %208 = arith.mulf %203, %207 : vector<2x10x10xf32>
    %209 = vector.broadcast %40 : vector<1x1x32xf32> to vector<2x10x32xf32>
    %210 = arith.mulf %143, %209 : vector<2x10x32xf32>
    "tpu.trace_start"() <{level = 10 : i32, message = "bnm,bme->bne"}> : () -> ()
    %cst_68 = arith.constant dense<0.000000e+00> : vector<2x10x32xf32>
    %211 = tpu.matmul %208, %210, %cst_68 {dimension_numbers = #tpu.dot_dimension_numbers<[2], [1], [1], [2], [0, 0, 0, 1, 1, 2], [0], [0]>} : vector<2x10x10xf32>, vector<2x10x32xf32>, vector<2x10x32xf32> -> vector<2x10x32xf32>
    "tpu.trace_stop"() : () -> ()
    %212 = arith.addf %195, %211 : vector<2x10x32xf32>
    %213 = vector.shape_cast %212 : vector<2x10x32xf32> to vector<20x32xf32>
    %cst_69 = arith.constant dense<0.000000e+00> : vector<20x32xf32>
    %214 = tpu.matmul %213, %2, %cst_69 {dimension_numbers = #tpu.dot_dimension_numbers<[1], [0], [0], [1], [0, 0, 1, 1], [], []>} : vector<20x32xf32>, vector<32x32xf32>, vector<20x32xf32> -> vector<20x32xf32>
    %215 = vector.broadcast %3 : vector<1x32xf32> to vector<20x32xf32>
    %216 = arith.addf %214, %215 : vector<20x32xf32>
    %217 = arith.addf %134, %216 : vector<20x32xf32>
    %cst_70 = arith.constant dense<0.000000e+00> : vector<20x64xf32>
    %218 = tpu.matmul %217, %4, %cst_70 {dimension_numbers = #tpu.dot_dimension_numbers<[1], [0], [0], [1], [0, 0, 1, 1], [], []>} : vector<20x32xf32>, vector<32x64xf32>, vector<20x64xf32> -> vector<20x64xf32>
    %219 = vector.broadcast %5 : vector<1x64xf32> to vector<20x64xf32>
    %220 = arith.addf %218, %219 : vector<20x64xf32>
    %cst_71 = arith.constant 0.000000e+00 : f32
    %221 = vector.broadcast %cst_71 : f32 to vector<20x64xf32>
    %222 = arith.maximumf %220, %221 : vector<20x64xf32>
    %cst_72 = arith.constant dense<0.000000e+00> : vector<20x32xf32>
    %223 = tpu.matmul %222, %6, %cst_72 {dimension_numbers = #tpu.dot_dimension_numbers<[1], [0], [0], [1], [0, 0, 1, 1], [], []>} : vector<20x64xf32>, vector<64x32xf32>, vector<20x32xf32> -> vector<20x32xf32>
    %224 = vector.broadcast %7 : vector<1x32xf32> to vector<20x32xf32>
    %225 = arith.addf %223, %224 : vector<20x32xf32>
    %226 = arith.addf %217, %225 : vector<20x32xf32>
    %c0_73 = arith.constant 0 : index
    %c0_74 = arith.constant 0 : index
    %227 = vector.load %arg9[%c0_73, %c0_74] : memref<32x16xf32, #tpu.memory_space<vmem>>, vector<32x16xf32>
    %cst_75 = arith.constant dense<0.000000e+00> : vector<20x16xf32>
    %228 = tpu.matmul %226, %227, %cst_75 {dimension_numbers = #tpu.dot_dimension_numbers<[1], [0], [0], [1], [0, 0, 1, 1], [], []>} : vector<20x32xf32>, vector<32x16xf32>, vector<20x16xf32> -> vector<20x16xf32>
    %c0_76 = arith.constant 0 : index
    %c0_77 = arith.constant 0 : index
    %229 = vector.load %arg10[%c0_76, %c0_77] : memref<1x16xf32, #tpu.memory_space<vmem>>, vector<1x16xf32>
    %230 = vector.broadcast %229 : vector<1x16xf32> to vector<20x16xf32>
    %231 = arith.addf %228, %230 : vector<20x16xf32>
    %232 = vector.shape_cast %231 : vector<20x16xf32> to vector<2x10x16xf32>
    %c0_78 = arith.constant 0 : index
    %c0_79 = arith.constant 0 : index
    %c0_80 = arith.constant 0 : index
    %233 = vector.load %arg11[%c0_78, %c0_79, %c0_80] : memref<2x10x16xf32, #tpu.memory_space<vmem>>, vector<2x10x16xf32>
    tpu.vector_store %arg11[%c0_78, %c0_79, %c0_80], %232 {strides = array<i32>} : memref<2x10x16xf32, #tpu.memory_space<vmem>>, vector<2x10x16xf32>,
    return
  }
}

</mosaic_0001>

<bundles_post_ra>
// kernel: tpu_custom_call.1
= control target key start
LH: loop header
LB: loop body
LE: loop exit
PB: predicated region body
PF: predicated region fallthrough
CT: control target
= control target key end

     0   :  { %v62_v0 = vlaneseq  ;;  %v3690_v11 = vmov 0.0   ;;  %s3691_s12 = smov 32   ;;  %vm123_vm4 = vcmask 261120   ;;  %s3692_s16 = smov 96   ;;  %vm634_vm11 = vcmask 1041408   ;;  %s5275_s1 = inlined_call_operand.vmem [shape: f32[32,96], index: 1, kind: input, shape index: {}]   ;;  %s5276_s0 = inlined_call_operand.vmem [shape: f32[2,10,32], index: 0, kind: input, shape index: {}]   ;;  %s5277_s2 = inlined_call_operand.vmem [shape: f32[1,96], index: 2, kind: input, shape index: {}]   ;;  %s5278_s4 = inlined_call_operand.vmem [shape: f32[1,32], index: 4, kind: input, shape index: {}]   ;;  %s5279_s3 = inlined_call_operand.vmem [shape: f32[32,32], index: 3, kind: input, shape index: {}]   ;;  %s5280_s6 = inlined_call_operand.vmem [shape: f32[1,64], index: 6, kind: input, shape index: {}]   ;;  %s5281_s5 = inlined_call_operand.vmem [shape: f32[32,64], index: 5, kind: input, shape index: {}]   ;;  %s5282_s7 = inlined_call_operand.vmem [shape: f32[64,32], index: 7, kind: input, shape index: {}]   ;;  %s5283_s8 = inlined_call_operand.vmem [shape: f32[1,32], index: 8, kind: input, shape index: {}]   ;;  %s5284_s10 = inlined_call_operand.vmem [shape: f32[1,16], index: 10, kind: input, shape index: {}]   ;;  %s5285_s9 = inlined_call_operand.vmem [shape: f32[32,16], index: 9, kind: input, shape index: {}]   ;;  %s5286_s11 = inlined_call_operand.vmem [shape: f32[2,10,16], index: 11, kind: output, shape index: {}]  }
   0x1   :  { %v41_v1 = vld [vmem:[%s5275_s1 + $0x18] sm:$0xff]  ;;  %v40_v2 = vld [vmem:[%s5275_s1 + $0x10] sm:$0xff]  ;;  %v39_v3 = vld [vmem:[%s5275_s1 + $0x8] sm:$0xff]  ;;  %s3693_s17 = smov 64   ;;  %vm323_vm12 = vcmask 80896   ;;  %vm327_vm13 = vcmask 74752  }
   0x2   :  { %142 = vmatpush.msra.mxu0 %v41_v1  ;;  %v3766_v4 = vld [vmem:[%s5276_s0] sm:$0xff]  ;;  %v3768_v5 = vand.u32 127, %v62_v0  ;;  %v3777_v9 = vld [vmem:[%s5276_s0 + $0x10] sm:$0xff]  ;;  %v3791_v13 = vld [vmem:[%s5276_s0 + $0x8] sm:$0x3]  ;;  %vm1627_vm14 = vcmask 523264  }
   0x3   :  { %v5292_v6 = vrot.slane %v3766_v4, 2  ;;  %v5291_v7 = vrot.slane %v3766_v4, 4  ;;  %v5290_v8 = vrot.slane %v3766_v4, 6  ;;  %103 = vst [vmem:[#allocation1] ss:$4 sm:$0xff] %v3766_v4  ;;  %v38_v10 = vld [vmem:[%s5275_s1] sm:$0xff] }
   0x4   :  { %143 = vmatpush.msra.mxu0 %v40_v2  ;;  %vm68_vm0 = vcmp.ge.s32.totalorder %v3768_v5, 8  ;;  %vm69_vm1 = vcmp.lt.s32.totalorder %v3768_v5, 16  ;;  %vm65_vm2 = vcmp.lt.s32.totalorder %v3768_v5, 8  ;;  %v5289_v16 = vrot.slane %v3777_v9, 2  ;;  %111 = vst [vmem:[#allocation1 + $0x20] ss:$4 sm:$0xff] %v3791_v13 }
   0x5   :  { %105 = vst [vmem:[#allocation1 + $0x1] ss:$4 sm:$0xff] %v5292_v6  ;;  %vm70_vm3 = vmand %vm68_vm0, %vm69_vm1  ;;  %v67_v12 = vsel %vm65_vm2, 1.0, %v3690_v11  ;;  %v5288_v18 = vrot.slane %v3777_v9, 4  ;;  %v5287_v23 = vrot.slane %v3777_v9, 6  ;;  %vm72_vm5 = vcmp.ge.s32.totalorder %v3768_v5, 16 }
   0x6   :  { %144 = vmatpush.msra.mxu0 %v39_v3  ;;  %107 = vst [vmem:[#allocation1 + $0x2] ss:$4 sm:$0xff] %v5291_v7  ;;  %v71_v14 = vsel %vm70_vm3, 1.0, %v3690_v11  ;;  %v174_v15 = vrot.slane %v67_v12, 2  ;;  %v175_v21 = vrot.slane %v67_v12, 4  ;;  %v176_v22 = vrot.slane %v67_v12, 6 }
   0x7   :  { %109 = vst [vmem:[#allocation1 + $0x3] ss:$4 sm:$0xff] %v5290_v8  ;;  %v392_v17 = vrot.slane %v71_v14, 2  ;;  %v393_v24 = vrot.slane %v71_v14, 4  ;;  %v394_v25 = vrot.slane %v71_v14, 6  ;;  %vm73_vm6 = vcmp.lt.s32.totalorder %v3768_v5, 24 }
   0x8   :  { %145 = vmatpush.msra.mxu0 %v38_v10  ;;  %v3800_v19 = vpack.i.bf16 %v174_v15, %v67_v12  ;;  %113 = vst [vmem:[#allocation1 + $0x21] ss:$4 sm:$0xff] %v3777_v9  ;;  %v3818_v26 = vld [vmem:[%s5276_s0 + $0x18] sm:$0x3]  ;;  %v3820_v28 = vpack.i.bf16 %v176_v22, %v175_v21  ;;  %v3533_v32 = vld [vmem:[%s5277_s2] ss:$0 sm:$0xff]  ;;  %vm74_vm7 = vmand %vm72_vm5, %vm73_vm6 }
   0x9   :  { %v3803_v20 = vpack.i.bf16 %v392_v17, %v71_v14  ;;  %115 = vst [vmem:[#allocation1 + $0x22] ss:$4 sm:$0xff] %v5289_v16  ;;  %v3825_v29 = vpack.i.bf16 %v394_v25, %v393_v24  ;;  %v3917_v10 = vsel %vm74_vm7, 1.0, %v3690_v11  ;;  %vm76_vm8 = vcmp.ge.s32.totalorder %v3768_v5, 24 }
   0xa   :  { %3419 = vrot.lane.b32.xlu0 %v3800_v19, %s3691_s12  ;;  %117 = vst [vmem:[#allocation1 + $0x23] ss:$4 sm:$0xff] %v5288_v18  ;;  %v818_v14 = vrot.slane %v3917_v10, 4  ;;  %v819_v15 = vrot.slane %v3917_v10, 6  ;;  %vm77_vm9 = vcmp.lt.s32.totalorder %v3768_v5, 32  ;;  %vm3263_vm15 = vcmask 130048  }
   0xb   :  { %3429 = vrot.lane.b32.xlu1 %v3803_v20, %s3691_s12  ;;  %vm78_vm10 = vmand %vm76_vm8, %vm77_vm9  ;;  %vm3265_vm0 = vcmask 123904  }
   0xc   :  { %v3473_v17 = vpack.i.bf16 %v819_v15, %v818_v14 }
   0xe   :  { %v118_v27 = vld.sshfl [vmem:[#allocation1] sm:$0xff pattern:$0x73625140] }
   0xf   :  { %3273 = vmatmul.msk.f32.vlgmr.msra.gmra.mxu0 %vm123_vm4, %v118_v27  ;;  %120 = vst [vmem:[#allocation1] ss:$4 sm:$0xff] %v5287_v23 }
  0x10   :  { %121 = vst [vmem:[#allocation1 + $0x1] ss:$4 sm:$0xff] %v3818_v26 }
  0x11   :  { %v119_v30 = vld.sshfl [vmem:[#allocation1 + $0x20] sm:$0xff pattern:$0x73625140] }
  0x12   :  { %3424 = vrot.lane.b32.xlu0 %v3820_v28, %s3691_s12 }
  0x13   :  { %3434 = vrot.lane.b32.xlu1 %v3825_v29, %s3691_s12 }
  0x17   :  { %3274 = vmatmul.msk.f32.gmra.mxu0 %vm123_vm4, %v119_v30  ;;  %v122_v31 = vld.sshfl [vmem:[#allocation1] sm:$0xff pattern:$0x73625140] }
  0x1f   :  { %3275 = vmatmul.msk.f32.gmra.mxu0 %vm123_vm4, %v122_v31 }
  0x7c   :  { %v3420_v33 = vpop.permute.xlu0 %3419 }
  0x7d   :  { %v3852_v41 = vunpack.i.l.bf16 %v3420_v33  ;;  %v3859_v44 = vunpack.i.h.bf16 %v3420_v33  ;;  %v3430_v12 = vpop.permute.xlu1 %3429 }
  0x7e   :  { %v3931_v24 = vunpack.i.l.bf16 %v3430_v12  ;;  %v3933_v25 = vunpack.i.h.bf16 %v3430_v12  ;;  %v79_v12 = vsel %vm78_vm10, 1.0, %v3690_v11 }
  0x7f   :  { %v1141_v14 = vrot.slane %v79_v12, 2  ;;  %v1142_v5 = vrot.slane %v79_v12, 4 }
  0x81   :  { %v3988_v15 = vpack.i.bf16 %v1141_v14, %v79_v12 }
  0x84   :  { %v3425_v39 = vpop.permute.xlu0 %3424 }
  0x85   :  { %v3856_v43 = vunpack.i.l.bf16 %v3425_v39  ;;  %v3861_v45 = vunpack.i.h.bf16 %v3425_v39  ;;  %v3435_v22 = vpop.permute.xlu1 %3434 }
  0x86   :  { %v3935_v27 = vunpack.i.l.bf16 %v3435_v22 }
  0x8c   :  { %v147_v34 = vpop.f32.mrf.mxu0 }
  0x8d   :  { %v3837_v35 = vadd.f32 %v3533_v32, %v147_v34 }
  0x8f   :  { %v3840_v36 = vrot.slane %v3837_v35, 2  ;;  %v3843_v37 = vrot.slane %v3837_v35, 4  ;;  %v3846_v38 = vrot.slane %v3837_v35, 6  ;;  %199 = vst [vmem:[#allocation1] ss:$4 sm:$0xff] %v3837_v35  ;;  %v189_v46 = vmul.f32 %v3852_v41, %v3837_v35 }
  0x90   :  { %v407_v30 = vmul.f32 %v3931_v24, %v3837_v35 }
  0x91   :  { %201 = vst [vmem:[#allocation1 + $0x1] ss:$4 sm:$0xff] %v3840_v36  ;;  %v190_v47 = vmul.f32 %v3859_v44, %v3840_v36  ;;  %v191_v49 = vmul.f32 %v3856_v43, %v3843_v37  ;;  %v192_v50 = vmul.f32 %v3861_v45, %v3846_v38  ;;  %v408_v31 = vmul.f32 %v3933_v25, %v3840_v36 }
  0x92   :  { %203 = vst [vmem:[#allocation1 + $0x2] ss:$4 sm:$0xff] %v3843_v37  ;;  %v409_v33 = vmul.f32 %v3935_v27, %v3843_v37 }
  0x93   :  { %205 = vst [vmem:[#allocation1 + $0x3] ss:$4 sm:$0xff] %v3846_v38 }
  0x94   :  { %v150_v40 = vpop.f32.mrf.mxu0 }
  0x95   :  { %v3854_v42 = vadd.f32 %v3533_v32, %v150_v40 }
  0x97   :  { %207 = vst [vmem:[#allocation1 + $0x20] ss:$4 sm:$0xff] %v3854_v42  ;;  %v193_v51 = vmul.f32 %v3852_v41, %v3854_v42  ;;  %v3878_v54 = vrot.slane %v3854_v42, 2  ;;  %v3883_v57 = vrot.slane %v3854_v42, 4  ;;  %v3886_v58 = vrot.slane %v3854_v42, 6 }
  0x98   :  { %v411_v40 = vmul.f32 %v3931_v24, %v3854_v42 }
  0x99   :  { %v194_v61 = vmul.f32 %v3852_v41, %v3878_v54  ;;  %v195_v62 = vmul.f32 %v3859_v44, %v3883_v57  ;;  %v196_v0 = vmul.f32 %v3856_v43, %v3886_v58 }
  0x9a   :  { %v3867_v48 = vld.sshfl [vmem:[#allocation1] sm:$0xff pattern:$0x73625140] }
  0x9b   :  { %215 = vst [vmem:[#allocation1] ss:$4 sm:$0xff] %v189_v46 }
  0x9c   :  { %217 = vst [vmem:[#allocation1 + $0x1] ss:$4 sm:$0xff] %v190_v47  ;;  %v153_v53 = vpop.f32.mrf.mxu0 }
  0x9d   :  { %219 = vst [vmem:[#allocation1 + $0x2] ss:$4 sm:$0xff] %v191_v49  ;;  %v3880_v55 = vadd.f32 %v3533_v32, %v153_v53  ;;  %v412_v49 = vmul.f32 %v3931_v24, %v3878_v54  ;;  %v414_v53 = vmul.f32 %v3935_v27, %v3886_v58 }
  0x9e   :  { %221 = vst [vmem:[#allocation1 + $0x3] ss:$4 sm:$0xff] %v192_v50  ;;  %v3875_v52 = vld.sshfl [vmem:[#allocation1 + $0x20] sm:$0xff pattern:$0x73625140]  ;;  %v413_v50 = vmul.f32 %v3933_v25, %v3883_v57 }
  0x9f   :  { %223 = vst [vmem:[#allocation1 + $0x20] ss:$4 sm:$0xff] %v193_v51  ;;  %v3894_v60 = vrot.slane %v3880_v55, 2  ;;  %v197_v1 = vmul.f32 %v3861_v45, %v3880_v55 }
  0xa1   :  { %v198_v3 = vmul.f32 %v3852_v41, %v3894_v60 }
  0xa5   :  { %v224_v56 = vld.sshfl [vmem:[#allocation1] sm:$0xff pattern:$0x73625140] }
  0xa6   :  { %v225_v59 = vld.sshfl [vmem:[#allocation1 + $0x20] sm:$0xff pattern:$0x73625140]  ;;  %261 = vst [vmem:[#allocation1] ss:$4 sm:$0xff] %v3878_v54  ;;  %226 = vrot.lane.b32.xlu1 %v224_v56, %s3692_s16 }
  0xa7   :  { %263 = vst [vmem:[#allocation1 + $0x1] ss:$4 sm:$0xff] %v3883_v57  ;;  %228 = vrot.lane.b32.xlu0 %v225_v59, %s3692_s16 }
  0xa8   :  { %265 = vst [vmem:[#allocation1 + $0x2] ss:$4 sm:$0xff] %v3886_v58 }
  0xa9   :  { %267 = vst [vmem:[#allocation1 + $0x3] ss:$4 sm:$0xff] %v3880_v55 }
  0xaa   :  { %269 = vst [vmem:[#allocation1 + $0x20] ss:$4 sm:$0xff] %v3894_v60 }
  0xae   :  { %3439 = vrot.lane.b32.xlu1 %v3803_v20, %s3693_s17 }
  0xb0   :  { %v3906_v63 = vld.sshfl [vmem:[#allocation1] sm:$0xff pattern:$0x73625140] }
  0xb1   :  { %277 = vst [vmem:[#allocation1] ss:$4 sm:$0xff] %v194_v61  ;;  %v3912_v2 = vld.sshfl [vmem:[#allocation1 + $0x20] sm:$0xff pattern:$0x73625140]  ;;  %v416_v61 = vmul.f32 %v3931_v24, %v3894_v60 }
  0xb2   :  { %279 = vst [vmem:[#allocation1 + $0x1] ss:$4 sm:$0xff] %v195_v62 }
  0xb3   :  { %281 = vst [vmem:[#allocation1 + $0x2] ss:$4 sm:$0xff] %v196_v0 }
  0xb4   :  { %283 = vst [vmem:[#allocation1 + $0x3] ss:$4 sm:$0xff] %v197_v1  ;;  %v817_v1 = vrot.slane %v3917_v10, 2 }
  0xb5   :  { %285 = vst [vmem:[#allocation1 + $0x20] ss:$4 sm:$0xff] %v198_v3 }
  0xb6   :  { %3454 = vrot.lane.b32.xlu1 %v3820_v28, %s3693_s17  ;;  %v3937_v28 = vunpack.i.h.bf16 %v3435_v22  ;;  %v3458_v3 = vpack.i.bf16 %v817_v1, %v3917_v10 }
  0xb8   :  { %v410_v34 = vmul.f32 %v3937_v28, %v3846_v38  ;;  %v415_v56 = vmul.f32 %v3937_v28, %v3880_v55 }
  0xbb   :  { %v3923_v20 = vld.sshfl [vmem:[#allocation1] sm:$0xff pattern:$0x73625140] }
  0xbc   :  { %417 = vst [vmem:[#allocation1] ss:$4 sm:$0xff] %v3837_v35  ;;  %v287_v21 = vld.sshfl [vmem:[#allocation1 + $0x20] sm:$0xff pattern:$0x73625140] }
  0xbd   :  { %419 = vst [vmem:[#allocation1 + $0x1] ss:$4 sm:$0xff] %v3840_v36 }
  0xbe   :  { %421 = vst [vmem:[#allocation1 + $0x2] ss:$4 sm:$0xff] %v3843_v37  ;;  %3474 = vrot.lane.b32.xlu1 %v3473_v17, %s3693_s17 }
  0xbf   :  { %423 = vst [vmem:[#allocation1 + $0x3] ss:$4 sm:$0xff] %v3846_v38 }
  0xc0   :  { %425 = vst [vmem:[#allocation1 + $0x20] ss:$4 sm:$0xff] %v3854_v42 }
  0xc6   :  { %v3943_v32 = vld.sshfl [vmem:[#allocation1] sm:$0xff pattern:$0x73625140]  ;;  %290 = vrot.lane.b32.xlu1 %v287_v21, %s3692_s16 }
  0xc7   :  { %433 = vst [vmem:[#allocation1] ss:$4 sm:$0xff] %v407_v30  ;;  %v3950_v39 = vld.sshfl [vmem:[#allocation1 + $0x20] sm:$0xff pattern:$0x73625140] }
  0xc8   :  { %435 = vst [vmem:[#allocation1 + $0x1] ss:$4 sm:$0xff] %v408_v31 }
  0xc9   :  { %437 = vst [vmem:[#allocation1 + $0x2] ss:$4 sm:$0xff] %v409_v33 }
  0xca   :  { %439 = vst [vmem:[#allocation1 + $0x3] ss:$4 sm:$0xff] %v410_v34 }
  0xcb   :  { %441 = vst [vmem:[#allocation1 + $0x20] ss:$4 sm:$0xff] %v411_v40 }
  0xd1   :  { %v442_v46 = vld.sshfl [vmem:[#allocation1] sm:$0xff pattern:$0x73625140] }
  0xd2   :  { %v443_v47 = vld.sshfl [vmem:[#allocation1 + $0x20] sm:$0xff pattern:$0x73625140]  ;;  %479 = vst [vmem:[#allocation1] ss:$4 sm:$0xff] %v3878_v54 }
  0xd3   :  { %481 = vst [vmem:[#allocation1 + $0x1] ss:$4 sm:$0xff] %v3883_v57  ;;  %446 = vrot.lane.b32.xlu2 %v443_v47, %s3692_s16 }
  0xd4   :  { %483 = vst [vmem:[#allocation1 + $0x2] ss:$4 sm:$0xff] %v3886_v58 }
  0xd5   :  { %485 = vst [vmem:[#allocation1 + $0x3] ss:$4 sm:$0xff] %v3880_v55 }
  0xd6   :  { %487 = vst [vmem:[#allocation1 + $0x20] ss:$4 sm:$0xff] %v3894_v60 }
  0xdb   :  { %444 = vrot.lane.b32.xlu2 %v442_v46, %s3692_s16 }
  0xdc   :  { %v3965_v51 = vld.sshfl [vmem:[#allocation1] sm:$0xff pattern:$0x73625140] }
  0xdd   :  { %495 = vst [vmem:[#allocation1] ss:$4 sm:$0xff] %v412_v49  ;;  %v3971_v59 = vld.sshfl [vmem:[#allocation1 + $0x20] sm:$0xff pattern:$0x73625140] }
  0xde   :  { %497 = vst [vmem:[#allocation1 + $0x1] ss:$4 sm:$0xff] %v413_v50 }
  0xdf   :  { %499 = vst [vmem:[#allocation1 + $0x2] ss:$4 sm:$0xff] %v414_v53 }
  0xe0   :  { %501 = vst [vmem:[#allocation1 + $0x3] ss:$4 sm:$0xff] %v415_v56 }
  0xe1   :  { %503 = vst [vmem:[#allocation1 + $0x20] ss:$4 sm:$0xff] %v416_v61 }
  0xe7   :  { %v504_v62 = vld.sshfl [vmem:[#allocation1] sm:$0xff pattern:$0x73625140] }
  0xe8   :  { %v505_v0 = vld.sshfl [vmem:[#allocation1 + $0x20] sm:$0xff pattern:$0x73625140]  ;;  %506 = vrot.lane.b32.xlu0 %v504_v62, %s3692_s16 }
  0xe9   :  { %508 = vrot.lane.b32.xlu2 %v505_v0, %s3692_s16 }
  0xf0   :  { %3449 = vrot.lane.b32.xlu0 %v3800_v19, %s3693_s17  ;;  %v1143_v19 = vrot.slane %v79_v12, 6 }
  0xf1   :  { %3444 = vrot.lane.b32.xlu2 %v3825_v29, %s3693_s17 }
  0xf2   :  { %v3993_v29 = vpack.i.bf16 %v1143_v19, %v1142_v5 }
  0xf8   :  { %3464 = vrot.lane.b32.xlu0 %v3473_v17, %s3691_s12 }
  0xf9   :  { %3459 = vrot.lane.b32.xlu2 %v3458_v3, %s3691_s12 }
 0x100   :  { %3479 = vrot.lane.b32.xlu0 %v3988_v15, %s3691_s12 }
 0x101   :  { %3469 = vrot.lane.b32.xlu2 %v3458_v3, %s3693_s17 }
 0x108   :  { %288 = vrot.lane.b32.xlu0 %v3923_v20, %s3692_s16 }
 0x109   :  { %3484 = vrot.lane.b32.xlu2 %v3993_v29, %s3691_s12 }
 0x118   :  { %v227_v11 = vpop.permute.xlu1 %226 }
 0x119   :  { %v229_v10 = vpop.permute.xlu0 %228 }
 0x11a   :  { %3276 = vmatpush.xpose.msk.msra.mxu1 %vm123_vm4, %v229_v10  ;;  %3412 = vmatpush.xpose.msk.msra.mxu2 %vm123_vm4, %v229_v10 }
 0x11e   :  { %3277 = vmatpush.xpose.msk.msra.mxu1 %vm123_vm4, %v227_v11  ;;  %3413 = vmatpush.xpose.msk.msra.mxu2 %vm123_vm4, %v227_v11 }
 0x120   :  { %v3440_v17 = vpop.permute.xlu1 %3439 }
 0x121   :  { %v4003_v21 = vunpack.i.h.bf16 %v3440_v17  ;;  %v4005_v22 = vunpack.i.l.bf16 %v3440_v17  ;;  %3278 = vmatmul.msk.f32.vlgmr.msra.gmra.mxu1 %vm123_vm4, %v3867_v48  ;;  %3279 = vmatmul.msk.f32.vlgmr.msra.gmra.mxu2 %vm123_vm4, %v3875_v52 }
 0x123   :  { %v598_v20 = vmul.f32 %v4003_v21, %v3840_v36  ;;  %v597_v30 = vmul.f32 %v4005_v22, %v3837_v35  ;;  %v601_v31 = vmul.f32 %v4005_v22, %v3854_v42  ;;  %v606_v34 = vmul.f32 %v4005_v22, %v3894_v60 }
 0x125   :  { %612 = vst [vmem:[#allocation1] ss:$4 sm:$0xff] %v597_v30 }
 0x126   :  { %614 = vst [vmem:[#allocation1 + $0x1] ss:$4 sm:$0xff] %v598_v20 }
 0x127   :  { %620 = vst [vmem:[#allocation1 + $0x20] ss:$4 sm:$0xff] %v601_v31 }
 0x128   :  { %v3455_v33 = vpop.permute.xlu1 %3454 }
 0x129   :  { %v4048_v5 = vunpack.i.l.bf16 %v3455_v33  ;;  %v4052_v19 = vunpack.i.h.bf16 %v3455_v33 }
 0x12b   :  { %5328 = vst [vmem:[#allocation3_spill] sm:$0xff] %v4048_v5  ;;  %v383_v11 = vmul.f32 %v4048_v5, %v3843_v37  ;;  %v384_v17 = vmul.f32 %v4052_v19, %v3846_v38 }
 0x12c   :  { %5329 = vst [vmem:[#allocation4_spill] sm:$0xff] %v4052_v19 }
 0x12d   :  { %v447_v48 = vpop.permute.xlu2 %446 }
 0x12e   :  { %v622_v40 = vld.sshfl [vmem:[#allocation1 + $0x20] sm:$0xff pattern:$0x73625140]  ;;  %3284 = vmatpush.xpose.msk.msra.mxu3 %vm123_vm4, %v447_v48 }
 0x12f   :  { %673 = vst [vmem:[#allocation1 + $0x20] ss:$4 sm:$0xff] %v606_v34  ;;  %625 = vrot.lane.b32.xlu0 %v622_v40, %s3693_s17 }
 0x130   :  { %v4021_v52 = vpop.permute.xlu1 %3474 }
 0x131   :  { %v4154_v23 = vunpack.i.l.bf16 %v4021_v52 }
 0x133   :  { %5338 = vst [vmem:[#allocation13_spill] sm:$0xff] %v4154_v23 }
 0x135   :  { %v445_v46 = vpop.permute.xlu2 %444 }
 0x136   :  { %v675_v47 = vld.sshfl [vmem:[#allocation1 + $0x20] sm:$0xff pattern:$0x73625140]  ;;  %3285 = vmatpush.xpose.msk.msra.mxu3 %vm123_vm4, %v445_v46 }
 0x137   :  { %678 = vrot.lane.b32.xlu2 %v675_v47, %s3693_s17 }
 0x138   :  { %v291_v49 = vpop.permute.xlu1 %290 }
 0x139   :  { %3286 = vmatmul.msk.f32.vlgmr.msra.gmra.mxu3 %vm123_vm4, %v3943_v32  ;;  %3280 = vmatpush.xpose.msk.msrb.mxu2 %vm123_vm4, %v291_v49  ;;  %v602_v32 = vmul.f32 %v4005_v22, %v3878_v54 }
 0x141   :  { %3287 = vmatmul.msk.f32.gmra.mxu3 %vm123_vm4, %v3950_v39  ;;  %v603_v39 = vmul.f32 %v4003_v21, %v3883_v57 }
 0x143   :  { %v509_v50 = vpop.permute.xlu2 %508 }
 0x144   :  { %3288 = vmatpush.xpose.msk.msrb.mxu1 %vm123_vm4, %v509_v50  ;;  %v388_v50 = vmul.f32 %v4048_v5, %v3886_v58 }
 0x14b   :  { %v3445_v53 = vpop.permute.xlu2 %3444 }
 0x14c   :  { %v4031_v56 = vunpack.i.h.bf16 %v3445_v53  ;;  %v4033_v61 = vunpack.i.l.bf16 %v3445_v53 }
 0x14e   :  { %5327 = vst [vmem:[#allocation2_spill] sm:$0xff] %v4031_v56  ;;  %v600_v62 = vmul.f32 %v4031_v56, %v3846_v38  ;;  %v599_v0 = vmul.f32 %v4033_v61, %v3843_v37  ;;  %v604_v3 = vmul.f32 %v4033_v61, %v3886_v58  ;;  %v605_v12 = vmul.f32 %v4031_v56, %v3880_v55 }
 0x150   :  { %618 = vst [vmem:[#allocation1 + $0x3] ss:$4 sm:$0xff] %v600_v62 }
 0x151   :  { %616 = vst [vmem:[#allocation1 + $0x2] ss:$4 sm:$0xff] %v599_v0 }
 0x158   :  { %v621_v1 = vld.sshfl [vmem:[#allocation1] sm:$0xff pattern:$0x73625140] }
 0x159   :  { %665 = vst [vmem:[#allocation1] ss:$4 sm:$0xff] %v602_v32 }
 0x15a   :  { %667 = vst [vmem:[#allocation1 + $0x1] ss:$4 sm:$0xff] %v603_v39  ;;  %v507_v14 = vpop.permute.xlu0 %506 }
 0x15b   :  { %669 = vst [vmem:[#allocation1 + $0x2] ss:$4 sm:$0xff] %v604_v3  ;;  %3289 = vmatpush.xpose.msk.msrb.mxu1 %vm123_vm4, %v507_v14 }
 0x15c   :  { %671 = vst [vmem:[#allocation1 + $0x3] ss:$4 sm:$0xff] %v605_v12 }
 0x15e   :  { %3290 = vmatmul.msk.f32.vlgmr.msrb.gmra.mxu1 %vm123_vm4, %v3965_v51 }
 0x162   :  { %v3450_v10 = vpop.permute.xlu0 %3449 }
 0x163   :  { %v674_v20 = vld.sshfl [vmem:[#allocation1] sm:$0xff pattern:$0x73625140]  ;;  %v4058_v30 = vunpack.i.h.bf16 %v3450_v10  ;;  %v4060_v31 = vunpack.i.l.bf16 %v3450_v10 }
 0x164   :  { %721 = vst [vmem:[#allocation1 + $0x2] ss:$4 sm:$0xff] %v383_v11  ;;  %v3488_v34 = vpack.i.bf16 %v674_v20, %v621_v1  ;;  %v3460_v1 = vpop.permute.xlu2 %3459 }
 0x165   :  { %5330 = vst [vmem:[#allocation5_spill] sm:$0xff] %v4058_v30  ;;  %v382_v51 = vmul.f32 %v4058_v30, %v3840_v36  ;;  %v381_v33 = vmul.f32 %v4060_v31, %v3837_v35  ;;  %v385_v48 = vmul.f32 %v4060_v31, %v3854_v42  ;;  %v386_v46 = vmul.f32 %v4060_v31, %v3878_v54 }
 0x166   :  { %5331 = vst [vmem:[#allocation6_spill] sm:$0xff] %v4060_v31  ;;  %3291 = vmatmul.msk.f32.gmra.mxu1 %vm123_vm4, %v3971_v59  ;;  %3489 = vrot.lane.b32.xlu1 %v3488_v34, %s3693_s17  ;;  %v387_v47 = vmul.f32 %v4058_v30, %v3883_v57  ;;  %v389_v59 = vmul.f32 %v4052_v19, %v3880_v55  ;;  %v4097_v12 = vunpack.i.l.bf16 %v3460_v1  ;;  %v4099_v14 = vunpack.i.h.bf16 %v3460_v1 }
 0x167   :  { %723 = vst [vmem:[#allocation1 + $0x3] ss:$4 sm:$0xff] %v384_v17  ;;  %v390_v62 = vmul.f32 %v4060_v31, %v3894_v60 }
 0x168   :  { %717 = vst [vmem:[#allocation1] ss:$4 sm:$0xff] %v381_v33  ;;  %v832_v10 = vmul.f32 %v4097_v12, %v3837_v35  ;;  %v833_v20 = vmul.f32 %v4099_v14, %v3840_v36  ;;  %v838_v1 = vmul.f32 %v4099_v14, %v3883_v57 }
 0x169   :  { %719 = vst [vmem:[#allocation1 + $0x1] ss:$4 sm:$0xff] %v382_v51  ;;  %v836_v51 = vmul.f32 %v4097_v12, %v3854_v42 }
 0x16a   :  { %725 = vst [vmem:[#allocation1 + $0x20] ss:$4 sm:$0xff] %v385_v48  ;;  %v3465_v40 = vpop.permute.xlu0 %3464 }
 0x16b   :  { %5332 = vst [vmem:[#allocation7_spill] sm:$0xff] %v4097_v12  ;;  %v4103_v11 = vunpack.i.l.bf16 %v3465_v40  ;;  %v4107_v17 = vunpack.i.h.bf16 %v3465_v40 }
 0x16c   :  { %5333 = vst [vmem:[#allocation8_spill] sm:$0xff] %v4099_v14 }
 0x16d   :  { %5334 = vst [vmem:[#allocation9_spill] sm:$0xff] %v4103_v11  ;;  %v835_v48 = vmul.f32 %v4107_v17, %v3846_v38 }
 0x16e   :  { %5335 = vst [vmem:[#allocation10_spill] sm:$0xff] %v4107_v17 }
 0x170   :  { %v4075_v49 = vld.sshfl [vmem:[#allocation1] sm:$0xff pattern:$0x73625140] }
 0x171   :  { %769 = vst [vmem:[#allocation1] ss:$4 sm:$0xff] %v386_v46  ;;  %v4081_v53 = vld.sshfl [vmem:[#allocation1 + $0x20] sm:$0xff pattern:$0x73625140] }
 0x172   :  { %771 = vst [vmem:[#allocation1 + $0x1] ss:$4 sm:$0xff] %v387_v47  ;;  %v4085_v0 = vpop.permute.xlu0 %3479  ;;  %v3470_v47 = vpop.permute.xlu2 %3469 }
 0x173   :  { %773 = vst [vmem:[#allocation1 + $0x2] ss:$4 sm:$0xff] %v388_v50  ;;  %v841_v50 = vmul.f32 %v4097_v12, %v3894_v60 }
 0x174   :  { %775 = vst [vmem:[#allocation1 + $0x3] ss:$4 sm:$0xff] %v389_v59 }
 0x175   :  { %777 = vst [vmem:[#allocation1 + $0x20] ss:$4 sm:$0xff] %v390_v62  ;;  %v837_v62 = vmul.f32 %v4097_v12, %v3878_v54 }
 0x17a   :  { %v289_v3 = vpop.permute.xlu0 %288 }
 0x17b   :  { %v4087_v32 = vld.sshfl [vmem:[#allocation1] sm:$0xff pattern:$0x73625140]  ;;  %3281 = vmatpush.xpose.msk.msrb.mxu2 %vm123_vm4, %v289_v3 }
 0x17c   :  { %842 = vst [vmem:[#allocation1] ss:$4 sm:$0xff] %v3837_v35  ;;  %v4090_v39 = vld.sshfl [vmem:[#allocation1 + $0x20] sm:$0xff pattern:$0x73625140] }
 0x17d   :  { %844 = vst [vmem:[#allocation1 + $0x1] ss:$4 sm:$0xff] %v3840_v36 }
 0x17e   :  { %846 = vst [vmem:[#allocation1 + $0x2] ss:$4 sm:$0xff] %v3843_v37  ;;  %3282 = vmatmul.msk.f32.vlgmr.msrb.gmra.mxu2 %vm123_vm4, %v3906_v63  ;;  %v834_v63 = vmul.f32 %v4103_v11, %v3843_v37 }
 0x17f   :  { %848 = vst [vmem:[#allocation1 + $0x3] ss:$4 sm:$0xff] %v3846_v38 }
 0x180   :  { %850 = vst [vmem:[#allocation1 + $0x20] ss:$4 sm:$0xff] %v3854_v42 }
 0x186   :  { %v4111_v34 = vld.sshfl [vmem:[#allocation1] sm:$0xff pattern:$0x73625140]  ;;  %3283 = vmatmul.msk.f32.gmra.mxu2 %vm123_vm4, %v3912_v2  ;;  %v4136_v2 = vunpack.i.l.bf16 %v3470_v47 }
 0x187   :  { %v4115_v33 = vld.sshfl [vmem:[#allocation1 + $0x20] sm:$0xff pattern:$0x73625140]  ;;  %858 = vst [vmem:[#allocation1] ss:$4 sm:$0xff] %v832_v10  ;;  %v3485_v10 = vpop.permute.xlu2 %3484 }
 0x188   :  { %860 = vst [vmem:[#allocation1 + $0x1] ss:$4 sm:$0xff] %v833_v20  ;;  %v839_v20 = vmul.f32 %v4103_v11, %v3886_v58  ;;  %v1027_v16 = vmul.f32 %v4136_v2, %v3878_v54 }
 0x189   :  { %866 = vst [vmem:[#allocation1 + $0x20] ss:$4 sm:$0xff] %v836_v51  ;;  %v1026_v51 = vmul.f32 %v4136_v2, %v3854_v42 }
 0x18a   :  { %862 = vst [vmem:[#allocation1 + $0x2] ss:$4 sm:$0xff] %v834_v63 }
 0x18b   :  { %864 = vst [vmem:[#allocation1 + $0x3] ss:$4 sm:$0xff] %v835_v48  ;;  %v840_v48 = vmul.f32 %v4107_v17, %v3880_v55 }
 0x18c   :  { %5336 = vst [vmem:[#allocation11_spill] sm:$0xff] %v4136_v2 }
 0x190   :  { %v4123_v40 = vld.sshfl [vmem:[#allocation1 + $0x20] sm:$0xff pattern:$0x73625140] }
 0x191   :  { %912 = vst [vmem:[#allocation1 + $0x20] ss:$4 sm:$0xff] %v3894_v60  ;;  %v679_v18 = vpop.permute.xlu2 %678 }
 0x192   :  { %v4126_v46 = vld.sshfl [vmem:[#allocation1] sm:$0xff pattern:$0x73625140]  ;;  %3295 = vmatpush.msk.msrb.mxu3 %vm634_vm11, %v679_v18 }
 0x193   :  { %904 = vst [vmem:[#allocation1] ss:$4 sm:$0xff] %v3878_v54 }
 0x194   :  { %906 = vst [vmem:[#allocation1 + $0x1] ss:$4 sm:$0xff] %v3883_v57 }
 0x195   :  { %908 = vst [vmem:[#allocation1 + $0x2] ss:$4 sm:$0xff] %v3886_v58 }
 0x196   :  { %910 = vst [vmem:[#allocation1 + $0x3] ss:$4 sm:$0xff] %v3880_v55 }
 0x198   :  { %v4134_v59 = vld.sshfl [vmem:[#allocation1 + $0x20] sm:$0xff pattern:$0x73625140] }
 0x199   :  { %928 = vst [vmem:[#allocation1 + $0x20] ss:$4 sm:$0xff] %v841_v50  ;;  %v4151_v50 = vunpack.i.h.bf16 %v3470_v47 }
 0x19b   :  { %5337 = vst [vmem:[#allocation12_spill] sm:$0xff] %v4151_v50  ;;  %v1023_v47 = vmul.f32 %v4151_v50, %v3840_v36  ;;  %v1028_v8 = vmul.f32 %v4151_v50, %v3883_v57 }
 0x19d   :  { %v4142_v3 = vld.sshfl [vmem:[#allocation1] sm:$0xff pattern:$0x73625140] }
 0x19e   :  { %920 = vst [vmem:[#allocation1] ss:$4 sm:$0xff] %v837_v62  ;;  %v4157_v62 = vunpack.i.h.bf16 %v4021_v52  ;;  %v1024_v52 = vmul.f32 %v4154_v23, %v3843_v37  ;;  %v4224_v14 = vpop.f32.mrf.mxu1 }
 0x19f   :  { %922 = vst [vmem:[#allocation1 + $0x1] ss:$4 sm:$0xff] %v838_v1  ;;  %v1031_v1 = vmul.f32 %v4136_v2, %v3894_v60 }
 0x1a0   :  { %v930_v63 = vld.sshfl [vmem:[#allocation1 + $0x20] sm:$0xff pattern:$0x73625140]  ;;  %924 = vst [vmem:[#allocation1 + $0x2] ss:$4 sm:$0xff] %v839_v20  ;;  %v1022_v20 = vmul.f32 %v4136_v2, %v3837_v35 }
 0x1a1   :  { %1045 = vst [vmem:[#allocation1 + $0x20] ss:$4 sm:$0xff] %v1026_v51  ;;  %933 = vrot.lane.b32.xlu2 %v930_v63, %s3692_s16 }
 0x1a2   :  { %926 = vst [vmem:[#allocation1 + $0x3] ss:$4 sm:$0xff] %v840_v48  ;;  %v1025_v48 = vmul.f32 %v4157_v62, %v3846_v38 }
 0x1a3   :  { %5339 = vst [vmem:[#allocation14_spill] sm:$0xff] %v4157_v62 }
 0x1a8   :  { %v4164_v51 = vld.sshfl [vmem:[#allocation1 + $0x20] sm:$0xff pattern:$0x73625140] }
 0x1a9   :  { %1097 = vst [vmem:[#allocation1 + $0x20] ss:$4 sm:$0xff] %v1031_v1  ;;  %v4168_v63 = vld.sshfl [vmem:[#allocation1] sm:$0xff pattern:$0x73625140]  ;;  %v4180_v1 = vunpack.i.l.bf16 %v4085_v0 }
 0x1aa   :  { %1037 = vst [vmem:[#allocation1] ss:$4 sm:$0xff] %v1022_v20 }
 0x1ab   :  { %1039 = vst [vmem:[#allocation1 + $0x1] ss:$4 sm:$0xff] %v1023_v47  ;;  %v1029_v47 = vmul.f32 %v4154_v23, %v3886_v58  ;;  %v1160_v7 = vmul.f32 %v4180_v1, %v3854_v42  ;;  %v1156_v23 = vmul.f32 %v4180_v1, %v3837_v35  ;;  %v1165_v11 = vmul.f32 %v4180_v1, %v3894_v60 }
 0x1ac   :  { %1041 = vst [vmem:[#allocation1 + $0x2] ss:$4 sm:$0xff] %v1024_v52  ;;  %v1030_v52 = vmul.f32 %v4157_v62, %v3880_v55 }
 0x1ad   :  { %1043 = vst [vmem:[#allocation1 + $0x3] ss:$4 sm:$0xff] %v1025_v48  ;;  %v626_v48 = vpop.permute.xlu0 %625 }
 0x1ae   :  { %5340 = vst [vmem:[#allocation15_spill] sm:$0xff] %v4180_v1  ;;  %3292 = vmatpush.msk.msra.mxu2 %vm634_vm11, %v626_v48 }
 0x1b0   :  { %v4174_v18 = vld.sshfl [vmem:[#allocation1 + $0x20] sm:$0xff pattern:$0x73625140] }
 0x1b1   :  { %1174 = vst [vmem:[#allocation1 + $0x20] ss:$4 sm:$0xff] %v3854_v42 }
 0x1b4   :  { %v4184_v20 = vld.sshfl [vmem:[#allocation1] sm:$0xff pattern:$0x73625140] }
 0x1b5   :  { %1089 = vst [vmem:[#allocation1] ss:$4 sm:$0xff] %v1027_v16 }
 0x1b6   :  { %1091 = vst [vmem:[#allocation1 + $0x1] ss:$4 sm:$0xff] %v1028_v8  ;;  %v4202_v8 = vunpack.i.l.bf16 %v3485_v10 }
 0x1b7   :  { %1093 = vst [vmem:[#allocation1 + $0x2] ss:$4 sm:$0xff] %v1029_v47  ;;  %v4204_v47 = vunpack.i.h.bf16 %v3485_v10 }
 0x1b8   :  { %1095 = vst [vmem:[#allocation1 + $0x3] ss:$4 sm:$0xff] %v1030_v52  ;;  %v4193_v6 = vld.sshfl [vmem:[#allocation1 + $0x20] sm:$0xff pattern:$0x73625140]  ;;  %v4207_v52 = vunpack.i.h.bf16 %v4085_v0  ;;  %v1163_v31 = vmul.f32 %v4202_v8, %v3886_v58 }
 0x1b9   :  { %1190 = vst [vmem:[#allocation1 + $0x20] ss:$4 sm:$0xff] %v1160_v7  ;;  %v1158_v7 = vmul.f32 %v4202_v8, %v3843_v37  ;;  %v1159_v48 = vmul.f32 %v4204_v47, %v3846_v38 }
 0x1ba   :  { %5341 = vst [vmem:[#allocation16_spill] sm:$0xff] %v4202_v8  ;;  %v1157_v10 = vmul.f32 %v4207_v52, %v3840_v36  ;;  %v1162_v5 = vmul.f32 %v4207_v52, %v3883_v57 }
 0x1bb   :  { %5342 = vst [vmem:[#allocation17_spill] sm:$0xff] %v4204_v47 }
 0x1bc   :  { %5343 = vst [vmem:[#allocation18_spill] sm:$0xff] %v4207_v52  ;;  %v473_v2 = vpop.f32.mrf.mxu3 }
 0x1bd   :  { %v541_v17 = vsel %vm323_vm12, %v473_v2, -inf }
 0x1be   :  { %542 = vmax.xlane.f32.xlu1 %v541_v17 }
 0x1bf   :  { %v4195_v50 = vld.sshfl [vmem:[#allocation1] sm:$0xff pattern:$0x73625140] }
 0x1c0   :  { %1166 = vst [vmem:[#allocation1] ss:$4 sm:$0xff] %v3837_v35  ;;  %v1192_v16 = vld.sshfl [vmem:[#allocation1 + $0x20] sm:$0xff pattern:$0x73625140] }
 0x1c1   :  { %1168 = vst [vmem:[#allocation1 + $0x1] ss:$4 sm:$0xff] %v3840_v36 }
 0x1c2   :  { %1170 = vst [vmem:[#allocation1 + $0x2] ss:$4 sm:$0xff] %v3843_v37 }
 0x1c3   :  { %1172 = vst [vmem:[#allocation1 + $0x3] ss:$4 sm:$0xff] %v3846_v38 }
 0x1c4   :  { %1236 = vst [vmem:[#allocation1 + $0x20] ss:$4 sm:$0xff] %v3894_v60 }
 0x1ca   :  { %v4213_v62 = vld.sshfl [vmem:[#allocation1] sm:$0xff pattern:$0x73625140] }
 0x1cb   :  { %1186 = vst [vmem:[#allocation1 + $0x2] ss:$4 sm:$0xff] %v1158_v7  ;;  %v4219_v0 = vld.sshfl [vmem:[#allocation1 + $0x20] sm:$0xff pattern:$0x73625140]  ;;  %v476_v7 = vpop.f32.mrf.mxu3 }
 0x1cc   :  { %1188 = vst [vmem:[#allocation1 + $0x3] ss:$4 sm:$0xff] %v1159_v48  ;;  %v544_v48 = vsel %vm327_vm13, %v476_v7, -inf }
 0x1cd   :  { %1182 = vst [vmem:[#allocation1] ss:$4 sm:$0xff] %v1156_v23  ;;  %545 = vmax.xlane.f32.xlu0 %v544_v48  ;;  %v1161_v48 = vmul.f32 %v4180_v1, %v3878_v54 }
 0x1ce   :  { %1184 = vst [vmem:[#allocation1 + $0x1] ss:$4 sm:$0xff] %v1157_v10 }
 0x1cf   :  { %1252 = vst [vmem:[#allocation1 + $0x20] ss:$4 sm:$0xff] %v1165_v11 }
 0x1d5   :  { %v4227_v12 = vld.sshfl [vmem:[#allocation1] sm:$0xff pattern:$0x73625140] }
 0x1d6   :  { %1228 = vst [vmem:[#allocation1] ss:$4 sm:$0xff] %v3878_v54 }
 0x1d7   :  { %1230 = vst [vmem:[#allocation1 + $0x1] ss:$4 sm:$0xff] %v3883_v57  ;;  %869 = vrot.lane.b32.xlu1 %v4126_v46, %s3692_s16 }
 0x1d8   :  { %1232 = vst [vmem:[#allocation1 + $0x2] ss:$4 sm:$0xff] %v3886_v58  ;;  %v3490_v23 = vpop.permute.xlu1 %3489 }
 0x1d9   :  { %1234 = vst [vmem:[#allocation1 + $0x3] ss:$4 sm:$0xff] %v3880_v55  ;;  %v3491_v17 = vunpack.i.l.bf16 %v3490_v23  ;;  %v3492_v11 = vunpack.i.h.bf16 %v3490_v23  ;;  %v1164_v23 = vmul.f32 %v4204_v47, %v3880_v55 }
 0x1db   :  { %v535_v10 = vpop.f32.mrf.mxu1  ;;  %652 = vmatpush.msra.mxu2 %v3491_v17  ;;  %704 = vmatpush.msrb.mxu3 %v3492_v11 }
 0x1dc   :  { %v547_v19 = vsel %vm323_vm12, %v535_v10, -inf }
 0x1dd   :  { %548 = vmax.xlane.f32.xlu2 %v547_v19 }
 0x1e0   :  { %v4238_v30 = vld.sshfl [vmem:[#allocation1] sm:$0xff pattern:$0x73625140] }
 0x1e1   :  { %1244 = vst [vmem:[#allocation1] ss:$4 sm:$0xff] %v1161_v48  ;;  %871 = vrot.lane.b32.xlu0 %v4123_v40, %s3692_s16 }
 0x1e2   :  { %1246 = vst [vmem:[#allocation1 + $0x1] ss:$4 sm:$0xff] %v1162_v5 }
 0x1e3   :  { %1248 = vst [vmem:[#allocation1 + $0x2] ss:$4 sm:$0xff] %v1163_v31  ;;  %v538_v17 = vpop.f32.mrf.mxu1 }
 0x1e4   :  { %1250 = vst [vmem:[#allocation1 + $0x3] ss:$4 sm:$0xff] %v1164_v23  ;;  %v550_v19 = vsel %vm327_vm13, %v538_v17, -inf }
 0x1e5   :  { %551 = vmax.xlane.f32.xlu2 %v550_v19 }
 0x1fb   :  { %v934_v11 = vpop.permute.xlu2 %933 }
 0x1fc   :  { %3308 = vmatpush.xpose.msk.msra.mxu3 %vm123_vm4, %v934_v11 }
 0x1fd   :  { %1195 = vrot.lane.b32.xlu2 %v1192_v16, %s3692_s16 }
 0x231   :  { %v543_v48 = vpop.xlane.xlu1 %542 }
 0x232   :  { %v553_v47 = vsub.f32 %v473_v2, %v543_v48 }
 0x234   :  { %v557_v5 = vmul.f32 1.442695, %v553_v47 }
 0x236   :  { %3538 = vpow2.f32 %v557_v5 }
 0x23c   :  { %v3539_v8 = vpop.eup %3538 }
 0x23d   :  { %v565_v1 = vsel %vm323_vm12, %v3539_v8, 0.0 }
 0x23e   :  { %566 = vadd.xlane.f32.xlu1 %v565_v1 }
 0x240   :  { %v546_v31 = vpop.xlane.xlu0 %545 }
 0x241   :  { %v554_v23 = vsub.f32 %v476_v7, %v546_v31  ;;  %v258_v31 = vpop.f32.mrf.mxu2 }
 0x243   :  { %v559_v52 = vmul.f32 1.442695, %v554_v23 }
 0x245   :  { %3540 = vpow2.f32 %v559_v52 }
 0x249   :  { %v870_v1 = vpop.permute.xlu1 %869  ;;  %v317_v23 = vpop.f32.mrf.mxu2 }
 0x24b   :  { %v3541_v40 = vpop.eup %3540 }
 0x24c   :  { %v568_v11 = vsel %vm327_vm13, %v3541_v40, 0.0 }
 0x24d   :  { %569 = vadd.xlane.f32.xlu2 %v568_v11 }
 0x250   :  { %v549_v46 = vpop.xlane.xlu2 %548 }
 0x251   :  { %v555_v19 = vsub.f32 %v535_v10, %v549_v46  ;;  %v331_v46 = vsel %vm323_vm12, %v317_v23, -inf  ;;  %v4267_v11 = vpop.f32.mrf.mxu2 }
 0x253   :  { %v561_v56 = vmul.f32 1.442695, %v555_v19  ;;  %v872_v47 = vpop.permute.xlu0 %871  ;;  %v328_v19 = vsel %vm327_vm13, %v258_v31, -inf }
 0x254   :  { %3304 = vmatpush.xpose.msk.msrb.mxu2 %vm123_vm4, %v872_v47 }
 0x255   :  { %3542 = vpow2.f32 %v561_v56  ;;  %v1253_v56 = vld.sshfl [vmem:[#allocation1] sm:$0xff pattern:$0x73625140] }
 0x257   :  { %931 = vrot.lane.b32.xlu1 %v4168_v63, %s3692_s16  ;;  %v324_v63 = vsel %vm323_vm12, %v4224_v14, -inf }
 0x258   :  { %v552_v16 = vpop.xlane.xlu2 %551  ;;  %3305 = vmatpush.xpose.msk.msrb.mxu2 %vm123_vm4, %v870_v1 }
 0x259   :  { %v556_v2 = vsub.f32 %v538_v17, %v552_v16  ;;  %v1254_v17 = vld.sshfl [vmem:[#allocation1 + $0x20] sm:$0xff pattern:$0x73625140]  ;;  %v334_v16 = vsel %vm327_vm13, %v4267_v11, -inf }
 0x25b   :  { %v3543_v48 = vpop.eup %3542  ;;  %v563_v7 = vmul.f32 1.442695, %v556_v2 }
 0x25c   :  { %v571_v5 = vsel %vm323_vm12, %v3543_v48, 0.0 }
 0x25d   :  { %3544 = vpow2.f32 %v563_v7  ;;  %572 = vadd.xlane.f32.xlu0 %v571_v5 }
 0x25f   :  { %1257 = vrot.lane.b32.xlu1 %v1254_v17, %s3692_s16 }
 0x263   :  { %v3545_v52 = vpop.eup %3544 }
 0x264   :  { %v574_v10 = vsel %vm327_vm13, %v3545_v52, 0.0 }
 0x265   :  { %575 = vadd.xlane.f32.xlu0 %v574_v10  ;;  %1255 = vrot.lane.b32.xlu2 %v1253_v56, %s3692_s16 }
 0x279   :  { %1193 = vrot.lane.b32.xlu0 %v4227_v12, %s3692_s16  ;;  %v1196_v12 = vpop.permute.xlu2 %1195 }
 0x289   :  { %329 = vmax.xlane.f32.xlu1 %v328_v19 }
 0x28e   :  { %332 = vmax.xlane.f32.xlu2 %v331_v46 }
 0x2a3   :  { %325 = vmax.xlane.f32.xlu0 %v324_v63 }
 0x2a6   :  { %3494 = vrot.lane.b32.xlu2 %v3988_v15, %s3693_s17 }
 0x2ab   :  { %335 = vmax.xlane.f32.xlu0 %v334_v16 }
 0x2b1   :  { %v567_v2 = vpop.xlane.xlu1 %566 }
 0x2b2   :  { %3546 = vrcp.f32 %v567_v2 }
 0x2b8   :  { %v3547_v47 = vpop.eup %3546 }
 0x2b9   :  { %v581_v7 = vmul.f32 %v3547_v47, %v3539_v8 }
 0x2bb   :  { %3293 = vmatmul.msk.f32.vlgmr.msra.gmra.mxu2 %vm323_vm12, %v581_v7 }
 0x2bc   :  { %3318 = vmatpush.xpose.msk.msra.mxu2 %vm123_vm4, %v1196_v12 }
 0x2bf   :  { %3499 = vrot.lane.b32.xlu0 %v3993_v29, %s3693_s17 }
 0x2c0   :  { %v570_v5 = vpop.xlane.xlu2 %569 }
 0x2c1   :  { %3548 = vrcp.f32 %v570_v5 }
 0x2c7   :  { %v3549_v1 = vpop.eup %3548 }
 0x2c8   :  { %v582_v10 = vmul.f32 %v3549_v1, %v3541_v40  ;;  %v1256_v63 = vpop.permute.xlu2 %1255 }
 0x2c9   :  { %v932_v17 = vpop.permute.xlu1 %931 }
 0x2ca   :  { %3294 = vmatmul.msk.f32.gmra.mxu2 %vm323_vm12, %v582_v10  ;;  %3309 = vmatpush.xpose.msk.msra.mxu3 %vm123_vm4, %v932_v17 }
 0x2d0   :  { %v573_v56 = vpop.xlane.xlu0 %572 }
 0x2d1   :  { %3550 = vrcp.f32 %v573_v56  ;;  %v1258_v19 = vpop.permute.xlu1 %1257 }
 0x2d2   :  { %3306 = vmatmul.msk.f32.vlgmr.msrb.gmra.mxu2 %vm123_vm4, %v4111_v34 }
 0x2d7   :  { %v3551_v15 = vpop.eup %3550 }
 0x2d8   :  { %v576_v29 = vpop.xlane.xlu0 %575  ;;  %v583_v46 = vmul.f32 %v3551_v15, %v3543_v48 }
 0x2d9   :  { %3552 = vrcp.f32 %v576_v29 }
 0x2da   :  { %3296 = vmatmul.msk.f32.vlgmr.msrb.gmra.mxu3 %vm323_vm12, %v583_v46  ;;  %3307 = vmatmul.msk.f32.gmra.mxu2 %vm123_vm4, %v4115_v33 }
 0x2db   :  { %3322 = vmatpush.xpose.msk.msrb.mxu3 %vm123_vm4, %v1258_v19 }
 0x2df   :  { %v3553_v8 = vpop.eup %3552  ;;  %3323 = vmatpush.xpose.msk.msrb.mxu3 %vm123_vm4, %v1256_v63 }
 0x2e0   :  { %v584_v40 = vmul.f32 %v3553_v8, %v3545_v52 }
 0x2e2   :  { %3297 = vmatmul.msk.f32.gmra.mxu3 %vm323_vm12, %v584_v40 }
 0x2ea   :  { %3310 = vmatmul.msk.f32.vlgmr.msra.gmra.mxu3 %vm123_vm4, %v4142_v3 }
 0x2eb   :  { %v1194_v34 = vpop.permute.xlu0 %1193 }
 0x2ec   :  { %3319 = vmatpush.xpose.msk.msra.mxu2 %vm123_vm4, %v1194_v34 }
 0x2ef   :  { %3320 = vmatmul.msk.f32.vlgmr.msra.gmra.mxu2 %vm123_vm4, %v4213_v62 }
 0x2f2   :  { %3311 = vmatmul.msk.f32.gmra.mxu3 %vm123_vm4, %v4134_v59 }
 0x2f7   :  { %3321 = vmatmul.msk.f32.gmra.mxu2 %vm123_vm4, %v4193_v6 }
 0x2fa   :  { %3324 = vmatmul.msk.f32.vlgmr.msrb.gmra.mxu3 %vm123_vm4, %v4238_v30 }
 0x2fc   :  { %v330_v48 = vpop.xlane.xlu1 %329 }
 0x2fd   :  { %v338_v16 = vsub.f32 %v258_v31, %v330_v48 }
 0x2ff   :  { %v343_v12 = vmul.f32 1.442695, %v338_v16 }
 0x301   :  { %v333_v33 = vpop.xlane.xlu2 %332 }
 0x302   :  { %3325 = vmatmul.msk.f32.gmra.mxu3 %vm123_vm4, %v4219_v0  ;;  %v339_v3 = vsub.f32 %v317_v23, %v333_v33 }
 0x304   :  { %v345_v52 = vmul.f32 1.442695, %v339_v3 }
 0x306   :  { %3554 = vpow2.f32 %v345_v52 }
 0x307   :  { %3556 = vpow2.f32 %v343_v12 }
 0x309   :  { %v3495_v62 = vpop.permute.xlu2 %3494 }
 0x30a   :  { %v4300_v2 = vunpack.i.h.bf16 %v3495_v62  ;;  %v4302_v59 = vunpack.i.l.bf16 %v3495_v62 }
 0x30c   :  { %v4304_v6 = vpop.eup %3554  ;;  %v1347_v30 = vmul.f32 %v4300_v2, %v3840_v36  ;;  %v1346_v0 = vmul.f32 %v4302_v59, %v3837_v35  ;;  %v1350_v23 = vmul.f32 %v4302_v59, %v3854_v42  ;;  %v1355_v42 = vmul.f32 %v4302_v59, %v3894_v60 }
 0x30d   :  { %v355_v31 = vsel %vm323_vm12, %v4304_v6, 0.0  ;;  %v4314_v47 = vpop.eup %3556  ;;  %v1351_v8 = vmul.f32 %v4302_v59, %v3878_v54  ;;  %v1352_v19 = vmul.f32 %v4300_v2, %v3883_v57 }
 0x30e   :  { %1363 = vst [vmem:[#allocation1 + $0x1] ss:$4 sm:$0xff] %v1347_v30  ;;  %356 = vadd.xlane.f32.xlu2 %v355_v31  ;;  %v352_v7 = vsel %vm327_vm13, %v4314_v47, 0.0 }
 0x30f   :  { %1361 = vst [vmem:[#allocation1] ss:$4 sm:$0xff] %v1346_v0  ;;  %353 = vadd.xlane.f32.xlu0 %v352_v7 }
 0x310   :  { %1369 = vst [vmem:[#allocation1 + $0x20] ss:$4 sm:$0xff] %v1350_v23 }
 0x316   :  { %v326_v5 = vpop.xlane.xlu0 %325 }
 0x317   :  { %v337_v36 = vsub.f32 %v4224_v14, %v326_v5  ;;  %v4321_v1 = vld.sshfl [vmem:[#allocation1 + $0x20] sm:$0xff pattern:$0x73625140]  ;;  %v3508_v5 = vpack.i.bf16 %v4195_v50, %v4184_v20 }
 0x318   :  { %1421 = vst [vmem:[#allocation1 + $0x20] ss:$4 sm:$0xff] %v1355_v42 }
 0x319   :  { %v341_v35 = vmul.f32 1.442695, %v337_v36 }
 0x31b   :  { %3558 = vpow2.f32 %v341_v35 }
 0x31e   :  { %v4327_v15 = vpop.xlane.xlu0 %335 }
 0x321   :  { %v4323_v10 = vpop.eup %3558 }
 0x322   :  { %v349_v56 = vsel %vm323_vm12, %v4323_v10, 0.0 }
 0x323   :  { %350 = vadd.xlane.f32.xlu1 %v349_v56 }
 0x331   :  { %v3500_v17 = vpop.permute.xlu0 %3499 }
 0x332   :  { %v4329_v29 = vunpack.i.h.bf16 %v3500_v17  ;;  %v4331_v14 = vunpack.i.l.bf16 %v3500_v17 }
 0x334   :  { %v1349_v46 = vmul.f32 %v4329_v29, %v3846_v38  ;;  %v1348_v60 = vmul.f32 %v4331_v14, %v3843_v37  ;;  %v1353_v63 = vmul.f32 %v4331_v14, %v3886_v58  ;;  %v1354_v37 = vmul.f32 %v4329_v29, %v3880_v55 }
 0x335   :  { %v3503_v38 = vpack.i.bf16 %v4087_v32, %v4075_v49 }
 0x336   :  { %1367 = vst [vmem:[#allocation1 + $0x3] ss:$4 sm:$0xff] %v1349_v46 }
 0x337   :  { %1365 = vst [vmem:[#allocation1 + $0x2] ss:$4 sm:$0xff] %v1348_v60 }
 0x33c   :  { %730 = vrot.lane.b32.xlu1 %v4081_v53, %s3693_s17 }
 0x33e   :  { %v4343_v40 = vld.sshfl [vmem:[#allocation1] sm:$0xff pattern:$0x73625140]  ;;  %v4352_v54 = vpop.f32.mrf.mxu2 }
 0x33f   :  { %1413 = vst [vmem:[#allocation1] ss:$4 sm:$0xff] %v1351_v8 }
 0x340   :  { %1415 = vst [vmem:[#allocation1 + $0x1] ss:$4 sm:$0xff] %v1352_v19 }
 0x341   :  { %1417 = vst [vmem:[#allocation1 + $0x2] ss:$4 sm:$0xff] %v1353_v63 }
 0x342   :  { %1419 = vst [vmem:[#allocation1 + $0x3] ss:$4 sm:$0xff] %v1354_v37 }
 0x344   :  { %3504 = vrot.lane.b32.xlu1 %v3503_v38, %s3693_s17 }
 0x34d   :  { %v4354_v57 = vpop.f32.mrf.mxu2 }
 0x355   :  { %v898_v53 = vpop.f32.mrf.mxu2 }
 0x356   :  { %v966_v48 = vsel %vm323_vm12, %v898_v53, -inf }
 0x35d   :  { %v4356_v34 = vpop.f32.mrf.mxu3  ;;  %v901_v58 = vpop.f32.mrf.mxu2 }
 0x35e   :  { %v969_v33 = vsel %vm327_vm13, %v901_v58, -inf }
 0x35f   :  { %970 = vmax.xlane.f32.xlu2 %v969_v33 }
 0x365   :  { %v4359_v3 = vpop.f32.mrf.mxu3 }
 0x36d   :  { %v4361_v55 = vpop.f32.mrf.mxu3 }
 0x36e   :  { %967 = vmax.xlane.f32.xlu1 %v966_v48  ;;  %v972_v49 = vsel %vm323_vm12, %v4361_v55, -inf }
 0x36f   :  { %973 = vmax.xlane.f32.xlu0 %v972_v49 }
 0x372   :  { %v1222_v32 = vpop.f32.mrf.mxu2 }
 0x373   :  { %v1290_v52 = vsel %vm323_vm12, %v1222_v32, -inf }
 0x374   :  { %1291 = vmax.xlane.f32.xlu2 %v1290_v52 }
 0x375   :  { %v963_v16 = vpop.f32.mrf.mxu3 }
 0x376   :  { %v975_v12 = vsel %vm327_vm13, %v963_v16, -inf }
 0x377   :  { %976 = vmax.xlane.f32.xlu1 %v975_v12 }
 0x37a   :  { %v4368_v62 = vpop.f32.mrf.mxu2 }
 0x37b   :  { %v1293_v0 = vsel %vm327_vm13, %v4368_v62, -inf }
 0x37d   :  { %v4370_v30 = vpop.f32.mrf.mxu3 }
 0x37e   :  { %v1296_v23 = vsel %vm323_vm12, %v4370_v30, -inf }
 0x37f   :  { %1294 = vmax.xlane.f32.xlu1 %v1293_v0  ;;  %1297 = vmax.xlane.f32.xlu0 %v1296_v23 }
 0x381   :  { %v357_v19 = vpop.xlane.xlu2 %356 }
 0x382   :  { %v354_v42 = vpop.xlane.xlu0 %353 }
 0x385   :  { %v4376_v31 = vpop.f32.mrf.mxu3 }
 0x386   :  { %v1299_v7 = vsel %vm327_vm13, %v4376_v31, -inf }
 0x387   :  { %1300 = vmax.xlane.f32.xlu1 %v1299_v7 }
 0x38c   :  { %1050 = vrot.lane.b32.xlu2 %v4164_v51, %s3693_s17  ;;  %v340_v51 = vsub.f32 %v4267_v11, %v4327_v15 }
 0x393   :  { %3509 = vrot.lane.b32.xlu0 %v3508_v5, %s3693_s17 }
 0x394   :  { %1102 = vrot.lane.b32.xlu2 %v4174_v18, %s3693_s17 }
 0x396   :  { %v351_v36 = vpop.xlane.xlu1 %350 }
 0x397   :  { %3560 = vrcp.f32 %v351_v36 }
 0x398   :  { %3562 = vrcp.f32 %v354_v42 }
 0x39d   :  { %v3561_v56 = vpop.eup %3560 }
 0x39e   :  { %v365_v18 = vmul.f32 %v3561_v56, %v4323_v10  ;;  %v3563_v20 = vpop.eup %3562 }
 0x39f   :  { %v366_v46 = vmul.f32 %v3563_v20, %v4314_v47 }
 0x3a0   :  { %782 = vrot.lane.b32.xlu1 %v4090_v39, %s3693_s17  ;;  %v347_v39 = vmul.f32 1.442695, %v340_v51 }
 0x3a2   :  { %3564 = vpow2.f32 %v347_v39 }
 0x3a8   :  { %v4399_v60 = vpop.eup %3564 }
 0x3a9   :  { %v358_v8 = vsel %vm327_vm13, %v4399_v60, 0.0 }
 0x3ae   :  { %v731_v35 = vpop.permute.xlu1 %730 }
 0x3af   :  { %3298 = vmatpush.msk.msrb.mxu0 %vm634_vm11, %v731_v35 }
 0x3b6   :  { %v4390_v17 = vpop.permute.xlu1 %3504 }
 0x3b7   :  { %v3506_v50 = vunpack.i.l.bf16 %v4390_v17 }
 0x3b9   :  { %756 = vmatpush.msrb.mxu0 %v3506_v50 }
 0x3ba   :  { %3299 = vmatmul.msk.f32.vlgmr.msrb.gmra.mxu0 %vm323_vm12, %v365_v18 }
 0x3c2   :  { %3300 = vmatmul.msk.f32.gmra.mxu0 %vm323_vm12, %v366_v46 }
 0x3ca   :  { %359 = vadd.xlane.f32.xlu1 %v358_v8 }
 0x3d2   :  { %v971_v11 = vpop.xlane.xlu2 %970 }
 0x3d3   :  { %v979_v63 = vsub.f32 %v901_v58, %v971_v11 }
 0x3d5   :  { %v984_v38 = vmul.f32 1.442695, %v979_v63 }
 0x3e1   :  { %v968_v15 = vpop.xlane.xlu1 %967 }
 0x3e2   :  { %v978_v10 = vsub.f32 %v898_v53, %v968_v15  ;;  %v974_v49 = vpop.xlane.xlu0 %973 }
 0x3e3   :  { %v980_v23 = vsub.f32 %v4361_v55, %v974_v49 }
 0x3e4   :  { %v982_v37 = vmul.f32 1.442695, %v978_v10 }
 0x3e5   :  { %v986_v5 = vmul.f32 1.442695, %v980_v23  ;;  %v1422_v23 = vld.sshfl [vmem:[#allocation1] sm:$0xff pattern:$0x73625140] }
 0x3e6   :  { %3566 = vpow2.f32 %v982_v37 }
 0x3e7   :  { %v1292_v33 = vpop.xlane.xlu2 %1291  ;;  %3568 = vpow2.f32 %v984_v38 }
 0x3e8   :  { %v1302_v48 = vsub.f32 %v1222_v32, %v1292_v33 }
 0x3ea   :  { %v1306_v47 = vmul.f32 1.442695, %v1302_v48  ;;  %v977_v52 = vpop.xlane.xlu1 %976 }
 0x3eb   :  { %v981_v12 = vsub.f32 %v963_v16, %v977_v52  ;;  %v3507_v52 = vunpack.i.h.bf16 %v4390_v17 }
 0x3ec   :  { %v4403_v0 = vpop.eup %3566  ;;  %3570 = vpow2.f32 %v1306_v47 }
 0x3ed   :  { %v988_v7 = vmul.f32 1.442695, %v981_v12  ;;  %v990_v53 = vsel %vm323_vm12, %v4403_v0, 0.0  ;;  %v4409_v32 = vpop.eup %3568 }
 0x3ee   :  { %991 = vadd.xlane.f32.xlu0 %v990_v53  ;;  %v993_v18 = vsel %vm327_vm13, %v4409_v32, 0.0  ;;  %v3513_v53 = vpack.i.bf16 %v1422_v23, %v4343_v40  ;;  %v3669_v23 = vld [vmem:[%s5275_s1] sm:$0xff] }
 0x3ef   :  { %3572 = vpow2.f32 %v988_v7  ;;  %v1051_v58 = vpop.permute.xlu2 %1050 }
 0x3f0   :  { %3312 = vmatpush.msk.msra.mxu0 %vm634_vm11, %v1051_v58  ;;  %3574 = vpow2.f32 %v986_v5 }
 0x3f2   :  { %v4411_v36 = vpop.eup %3570  ;;  %v1298_v16 = vpop.xlane.xlu0 %1297 }
 0x3f3   :  { %v1295_v35 = vpop.xlane.xlu1 %1294  ;;  %v1304_v42 = vsub.f32 %v4370_v30, %v1298_v16  ;;  %v1314_v55 = vsel %vm323_vm12, %v4411_v36, 0.0 }
 0x3f4   :  { %1315 = vadd.xlane.f32.xlu1 %v1314_v55  ;;  %v1303_v51 = vsub.f32 %v4368_v62, %v1295_v35 }
 0x3f5   :  { %v4416_v56 = vpop.eup %3572  ;;  %v1310_v50 = vmul.f32 1.442695, %v1304_v42 }
 0x3f6   :  { %994 = vadd.xlane.f32.xlu0 %v993_v18  ;;  %v999_v39 = vsel %vm327_vm13, %v4416_v56, 0.0  ;;  %v1308_v30 = vmul.f32 1.442695, %v1303_v51  ;;  %v3575_v20 = vpop.eup %3574 }
 0x3f7   :  { %3576 = vpow2.f32 %v1310_v50  ;;  %1000 = vadd.xlane.f32.xlu2 %v999_v39  ;;  %v996_v15 = vsel %vm323_vm12, %v3575_v20, 0.0  ;;  %v1103_v7 = vpop.permute.xlu2 %1102 }
 0x3f8   :  { %3578 = vpow2.f32 %v1308_v30 }
 0x3fb   :  { %v1301_v46 = vpop.xlane.xlu1 %1300 }
 0x3fc   :  { %v1305_v11 = vsub.f32 %v4376_v31, %v1301_v46 }
 0x3fd   :  { %v4423_v8 = vpop.eup %3576 }
 0x3fe   :  { %997 = vadd.xlane.f32.xlu0 %v996_v15  ;;  %v1320_v62 = vsel %vm323_vm12, %v4423_v8, 0.0  ;;  %v1312_v10 = vmul.f32 1.442695, %v1305_v11  ;;  %v4429_v63 = vpop.eup %3578 }
 0x3ff   :  { %1321 = vadd.xlane.f32.xlu1 %v1320_v62  ;;  %v1317_v33 = vsel %vm327_vm13, %v4429_v63, 0.0 }
 0x400   :  { %3580 = vpow2.f32 %v1312_v10 }
 0x401   :  { %3582 = vrcp.f32 %v357_v19 }
 0x405   :  { %v3510_v37 = vpop.permute.xlu0 %3509 }
 0x406   :  { %v3511_v38 = vunpack.i.l.bf16 %v3510_v37  ;;  %v4433_v48 = vpop.eup %3580  ;;  %v3512_v19 = vunpack.i.h.bf16 %v3510_v37 }
 0x407   :  { %1318 = vadd.xlane.f32.xlu1 %v1317_v33  ;;  %v1323_v31 = vsel %vm327_vm13, %v4433_v48, 0.0  ;;  %v3583_v49 = vpop.eup %3582 }
 0x408   :  { %1076 = vmatpush.msra.mxu0 %v3511_v38  ;;  %v367_v12 = vmul.f32 %v3583_v49, %v4304_v6 }
 0x40f   :  { %1324 = vadd.xlane.f32.xlu1 %v1323_v31 }
 0x412   :  { %v783_v47 = vpop.permute.xlu1 %782  ;;  %1374 = vrot.lane.b32.xlu0 %v4321_v1, %s3693_s17  ;;  %v1423_v1 = vld.sshfl [vmem:[#allocation1 + $0x20] sm:$0xff pattern:$0x73625140] }
 0x413   :  { %3301 = vmatpush.msk.msra.mxu1 %vm634_vm11, %v783_v47 }
 0x415   :  { %808 = vmatpush.msra.mxu1 %v3507_v52 }
 0x416   :  { %3302 = vmatmul.msk.f32.vlgmr.msra.gmra.mxu1 %vm323_vm12, %v367_v12  ;;  %v3667_v12 = vld [vmem:[%s5275_s1 + $0x10] sm:$0xff] }
 0x417   :  { %3315 = vmatpush.msk.msrb.mxu1 %vm634_vm11, %v1103_v7 }
 0x419   :  { %1128 = vmatpush.msrb.mxu1 %v3512_v19 }
 0x41a   :  { %3514 = vrot.lane.b32.xlu0 %v3513_v53, %s3693_s17 }
 0x422   :  { %1426 = vrot.lane.b32.xlu0 %v1423_v1, %s3693_s17 }
 0x437   :  { %v758_v7 = vpop.f32.mrf.mxu0 }
 0x43d   :  { %v360_v17 = vpop.xlane.xlu1 %359 }
 0x43e   :  { %3584 = vrcp.f32 %v360_v17 }
 0x43f   :  { %v761_v19 = vpop.f32.mrf.mxu0 }
 0x444   :  { %v3585_v58 = vpop.eup %3584 }
 0x445   :  { %v368_v6 = vmul.f32 %v3585_v58, %v4399_v60  ;;  %v46_v58 = vld [vmem:[%s5279_s3 + $0x18] sm:$0xff] }
 0x446   :  { %1515 = vmatpush.msrb.mxu2 %v46_v58  ;;  %v58_v58 = vld [vmem:[%s5282_s7 + $0x28] sm:$0xff] }
 0x447   :  { %3303 = vmatmul.msk.f32.gmra.mxu1 %vm323_vm12, %v368_v6  ;;  %v44_v6 = vld [vmem:[%s5279_s3 + $0x8] sm:$0xff] }
 0x461   :  { %v992_v5 = vpop.xlane.xlu0 %991 }
 0x462   :  { %3586 = vrcp.f32 %v992_v5 }
 0x467   :  { %v1316_v60 = vpop.xlane.xlu1 %1315 }
 0x468   :  { %v3587_v16 = vpop.eup %3586 }
 0x469   :  { %v1006_v35 = vmul.f32 %v3587_v16, %v4403_v0  ;;  %v995_v42 = vpop.xlane.xlu0 %994  ;;  %v43_v16 = vld [vmem:[%s5279_s3] sm:$0xff] }
 0x46a   :  { %3588 = vrcp.f32 %v995_v42  ;;  %v1001_v51 = vpop.xlane.xlu2 %1000  ;;  %v759_v42 = vadd.f32 %v758_v7, %v4352_v54  ;;  %v59_v7 = vld [vmem:[%s5282_s7 + $0x30] sm:$0xff] }
 0x46b   :  { %3313 = vmatmul.msk.f32.vlgmr.msra.gmra.mxu0 %vm323_vm12, %v1006_v35 }
 0x470   :  { %v3589_v40 = vpop.eup %3588 }
 0x471   :  { %v998_v55 = vpop.xlane.xlu0 %997  ;;  %v1007_v50 = vmul.f32 %v3589_v40, %v4409_v32 }
 0x472   :  { %3590 = vrcp.f32 %v998_v55  ;;  %v1322_v0 = vpop.xlane.xlu1 %1321 }
 0x473   :  { %3314 = vmatmul.msk.f32.gmra.mxu0 %vm323_vm12, %v1007_v50  ;;  %3592 = vrcp.f32 %v1001_v51 }
 0x474   :  { %3594 = vrcp.f32 %v1316_v60 }
 0x475   :  { %3596 = vrcp.f32 %v1322_v0 }
 0x478   :  { %v3591_v18 = vpop.eup %3590 }
 0x479   :  { %v1008_v39 = vmul.f32 %v3591_v18, %v3575_v20  ;;  %v3593_v30 = vpop.eup %3592 }
 0x47a   :  { %v1009_v46 = vmul.f32 %v3593_v30, %v4416_v56  ;;  %v1319_v32 = vpop.xlane.xlu1 %1318  ;;  %v3595_v15 = vpop.eup %3594  ;;  %v762_v30 = vadd.f32 %v761_v19, %v4354_v57 }
 0x47b   :  { %3316 = vmatmul.msk.f32.vlgmr.msrb.gmra.mxu1 %vm323_vm12, %v1008_v39  ;;  %3598 = vrcp.f32 %v1319_v32  ;;  %v1330_v20 = vmul.f32 %v3595_v15, %v4411_v36  ;;  %v3597_v37 = vpop.eup %3596  ;;  %v3666_v36 = vld [vmem:[%s5275_s1 + $0x18] sm:$0xff] }
 0x47c   :  { %v1332_v49 = vmul.f32 %v3597_v37, %v4423_v8  ;;  %v3668_v8 = vld [vmem:[%s5275_s1 + $0x8] sm:$0xff] }
 0x481   :  { %v3599_v56 = vpop.eup %3598 }
 0x482   :  { %v1325_v38 = vpop.xlane.xlu1 %1324  ;;  %v1331_v47 = vmul.f32 %v3599_v56, %v4429_v63 }
 0x483   :  { %3317 = vmatmul.msk.f32.gmra.mxu1 %vm323_vm12, %v1009_v46  ;;  %3600 = vrcp.f32 %v1325_v38 }
 0x484   :  { %v1375_v11 = vpop.permute.xlu0 %1374 }
 0x485   :  { %3326 = vmatpush.msk.msrb.mxu0 %vm634_vm11, %v1375_v11 }
 0x489   :  { %v3601_v52 = vpop.eup %3600 }
 0x48a   :  { %v1333_v63 = vmul.f32 %v3601_v52, %v4433_v48  ;;  %v45_v48 = vld [vmem:[%s5279_s3 + $0x10] sm:$0xff]  ;;  %v48_v52 = vld [vmem:[%s5281_s5] sm:$0xff] }
 0x48b   :  { %1516 = vmatpush.msrb.mxu2 %v45_v48  ;;  %v5344_v48 = vrot.slane %v3766_v4, 2 }
 0x48c   :  { %v3515_v62 = vpop.permute.xlu0 %3514 }
 0x48d   :  { %v3516_v10 = vunpack.i.l.bf16 %v3515_v62  ;;  %v3517_v31 = vunpack.i.h.bf16 %v3515_v62  ;;  %1517 = vmatpush.msrb.mxu2 %v44_v6 }
 0x48f   :  { %1400 = vmatpush.msrb.mxu0 %v3516_v10  ;;  %1518 = vmatpush.msrb.mxu2 %v43_v16 }
 0x490   :  { %3327 = vmatmul.msk.f32.vlgmr.msrb.gmra.mxu0 %vm323_vm12, %v1330_v20 }
 0x493   :  { %v810_v53 = vpop.f32.mrf.mxu1 }
 0x494   :  { %v1427_v33 = vpop.permute.xlu0 %1426  ;;  %v811_v0 = vadd.f32 %v810_v53, %v4356_v34 }
 0x495   :  { %3329 = vmatpush.msk.msra.mxu1 %vm634_vm11, %v1427_v33 }
 0x497   :  { %1452 = vmatpush.msra.mxu1 %v3517_v31 }
 0x498   :  { %3328 = vmatmul.msk.f32.gmra.mxu0 %vm323_vm12, %v1331_v47  ;;  %3330 = vmatmul.msk.f32.vlgmr.msra.gmra.mxu1 %vm323_vm12, %v1332_v49  ;;  %v50_v47 = vld [vmem:[%s5281_s5 + $0x10] sm:$0xff] }
 0x499   :  { %1738 = vmatpush.msrb.mxu1 %v3666_v36  ;;  %v49_v36 = vld [vmem:[%s5281_s5 + $0x8] sm:$0xff] }
 0x49b   :  { %1739 = vmatpush.msrb.mxu1 %v3667_v12  ;;  %v3534_v12 = vld [vmem:[%s5278_s4] ss:$0 sm:$0xff] }
 0x49d   :  { %1740 = vmatpush.msrb.mxu1 %v3668_v8 }
 0x49f   :  { %1741 = vmatpush.msrb.mxu1 %v3669_v23  ;;  %v60_v23 = vld [vmem:[%s5282_s7 + $0x38] sm:$0xff] }
 0x4a0   :  { %3331 = vmatmul.msk.f32.gmra.mxu1 %vm323_vm12, %v1333_v63  ;;  %1645 = vmatpush.msra.mxu0 %v60_v23 }
 0x4a2   :  { %1646 = vmatpush.msra.mxu0 %v59_v7 }
 0x4a4   :  { %1647 = vmatpush.msra.mxu0 %v58_v58 }
 0x4c4   :  { %v813_v1 = vpop.f32.mrf.mxu1 }
 0x4c5   :  { %v814_v38 = vadd.f32 %v813_v1, %v4359_v3  ;;  %v51_v3 = vld [vmem:[%s5281_s5 + $0x18] sm:$0xff] }
 0x4c6   :  { %1607 = vmatpush.msra.mxu3 %v51_v3 }
 0x4c8   :  { %1608 = vmatpush.msra.mxu3 %v50_v47 }
 0x4ca   :  { %1609 = vmatpush.msra.mxu3 %v49_v36 }
 0x4cc   :  { %1610 = vmatpush.msra.mxu3 %v48_v52 }
 0x4e8   :  { %v1078_v17 = vpop.f32.mrf.mxu0 }
 0x4e9   :  { %v1136_v40 = vadd.f32 %v1078_v17, %v759_v42 }
 0x4f0   :  { %v1081_v35 = vpop.f32.mrf.mxu0 }
 0x4f1   :  { %v1137_v46 = vadd.f32 %v1081_v35, %v762_v30  ;;  %v5346_v35 = vrot.slane %v3766_v4, 6 }
 0x4f8   :  { %v1130_v5 = vpop.f32.mrf.mxu1 }
 0x4f9   :  { %v1138_v11 = vadd.f32 %v1130_v5, %v811_v0  ;;  %v5345_v5 = vrot.slane %v3766_v4, 4  ;;  %v5347_v0 = vrot.slane %v3777_v9, 2 }
 0x500   :  { %v1133_v55 = vpop.f32.mrf.mxu1 }
 0x501   :  { %v1139_v34 = vadd.f32 %v1133_v55, %v814_v38  ;;  %v56_v55 = vld [vmem:[%s5282_s7 + $0x18] sm:$0xff] }
 0x50d   :  { %v1402_v50 = vpop.f32.mrf.mxu0 }
 0x50e   :  { %v1460_v51 = vadd.f32 %v1402_v50, %v1136_v40  ;;  %v57_v40 = vld [vmem:[%s5282_s7 + $0x20] sm:$0xff] }
 0x50f   :  { %1648 = vmatpush.msra.mxu0 %v57_v40 }
 0x510   :  { %v1468_v60 = vrot.slane %v1460_v51, 2  ;;  %v1469_v18 = vrot.slane %v1460_v51, 4  ;;  %v1470_v39 = vrot.slane %v1460_v51, 6  ;;  %1477 = vst [vmem:[#allocation1] ss:$4 sm:$0xff] %v1460_v51 }
 0x511   :  { %1649 = vmatpush.msra.mxu0 %v56_v55 }
 0x512   :  { %1479 = vst [vmem:[#allocation1 + $0x1] ss:$4 sm:$0xff] %v1468_v60 }
 0x513   :  { %1481 = vst [vmem:[#allocation1 + $0x2] ss:$4 sm:$0xff] %v1469_v18 }
 0x514   :  { %1483 = vst [vmem:[#allocation1 + $0x3] ss:$4 sm:$0xff] %v1470_v39 }
 0x515   :  { %v1405_v32 = vpop.f32.mrf.mxu0  ;;  %v1454_v15 = vpop.f32.mrf.mxu1 }
 0x516   :  { %v1461_v54 = vadd.f32 %v1405_v32, %v1137_v46  ;;  %v1462_v62 = vadd.f32 %v1454_v15, %v1138_v11  ;;  %v5348_v11 = vrot.slane %v3777_v9, 4 }
 0x518   :  { %1485 = vst [vmem:[#allocation1 + $0x20] ss:$4 sm:$0xff] %v1461_v54  ;;  %v1471_v10 = vrot.slane %v1462_v62, 2  ;;  %v1472_v20 = vrot.slane %v1462_v62, 4  ;;  %v1473_v37 = vrot.slane %v1462_v62, 6 }
 0x519   :  { %1487 = vst [vmem:[#allocation1 + $0x21] ss:$4 sm:$0xff] %v1462_v62 }
 0x51a   :  { %1489 = vst [vmem:[#allocation1 + $0x22] ss:$4 sm:$0xff] %v1471_v10 }
 0x51b   :  { %v1492_v57 = vld.sshfl [vmem:[#allocation1] sm:$0xff pattern:$0x73625140]  ;;  %1491 = vst [vmem:[#allocation1 + $0x23] ss:$4 sm:$0xff] %v1472_v20 }
 0x51c   :  { %1494 = vst [vmem:[#allocation1] ss:$4 sm:$0xff] %v1473_v37  ;;  %3332 = vmatmul.msk.f32.vlgmr.msrb.gmra.mxu2 %vm123_vm4, %v1492_v57 }
 0x51d   :  { %v1457_v56 = vpop.f32.mrf.mxu1 }
 0x51e   :  { %v1463_v33 = vadd.f32 %v1457_v56, %v1139_v34  ;;  %v55_v34 = vld [vmem:[%s5282_s7 + $0x10] sm:$0xff]  ;;  %v54_v56 = vld [vmem:[%s5282_s7 + $0x8] sm:$0xff] }
 0x51f   :  { %1650 = vmatpush.msra.mxu0 %v55_v34 }
 0x520   :  { %1495 = vst [vmem:[#allocation1 + $0x1] ss:$4 sm:$0xff] %v1463_v33 }
 0x521   :  { %1651 = vmatpush.msra.mxu0 %v54_v56 }
 0x522   :  { %v1493_v31 = vld.sshfl [vmem:[#allocation1 + $0x20] sm:$0xff pattern:$0x73625140] }
 0x524   :  { %3333 = vmatmul.msk.f32.gmra.mxu2 %vm123_vm4, %v1493_v31 }
 0x527   :  { %v1496_v49 = vld.sshfl [vmem:[#allocation1] sm:$0xff pattern:$0x73625140] }
 0x52c   :  { %3334 = vmatmul.msk.f32.gmra.mxu2 %vm123_vm4, %v1496_v49 }
 0x59f   :  { %v1520_v8 = vpop.f32.mrf.mxu2 }
 0x5a0   :  { %v1521_v63 = vadd.f32 %v3534_v12, %v1520_v8 }
 0x5a2   :  { %v1532_v19 = vrot.slane %v1521_v63, 2  ;;  %v1533_v53 = vrot.slane %v1521_v63, 4  ;;  %v1534_v1 = vrot.slane %v1521_v63, 6  ;;  %v4519_v17 = vadd.f32 %v1521_v63, %v3766_v4  ;;  %v3536_v63 = vld [vmem:[%s5283_s8] ss:$0 sm:$0xff] }
 0x5a4   :  { %v4526_v6 = vadd.f32 %v1532_v19, %v5344_v48  ;;  %v4530_v16 = vadd.f32 %v1533_v53, %v5345_v5  ;;  %v4534_v42 = vadd.f32 %v1534_v1, %v5346_v35  ;;  %1569 = vst [vmem:[#allocation1] ss:$4 sm:$0xff] %v4519_v17 }
 0x5a6   :  { %1571 = vst [vmem:[#allocation1 + $0x1] ss:$4 sm:$0xff] %v4526_v6 }
 0x5a7   :  { %1573 = vst [vmem:[#allocation1 + $0x2] ss:$4 sm:$0xff] %v4530_v16  ;;  %v1523_v50 = vpop.f32.mrf.mxu2 }
 0x5a8   :  { %1575 = vst [vmem:[#allocation1 + $0x3] ss:$4 sm:$0xff] %v4534_v42  ;;  %v1524_v4 = vadd.f32 %v3534_v12, %v1523_v50 }
 0x5aa   :  { %v1535_v51 = vrot.slane %v1524_v4, 2  ;;  %v1536_v60 = vrot.slane %v1524_v4, 4  ;;  %v1537_v18 = vrot.slane %v1524_v4, 6  ;;  %v1550_v39 = vadd.f32 %v1524_v4, %v3791_v13 }
 0x5ab   :  { %v5349_v13 = vrot.slane %v3777_v9, 6 }
 0x5ac   :  { %v1551_v30 = vadd.f32 %v1535_v51, %v3777_v9  ;;  %v1552_v46 = vadd.f32 %v1536_v60, %v5347_v0  ;;  %v1553_v32 = vadd.f32 %v1537_v18, %v5348_v11  ;;  %1577 = vst [vmem:[#allocation1 + $0x20] ss:$4 sm:$0xff] %v1550_v39  ;;  %v53_v9 = vld [vmem:[%s5282_s7] sm:$0xff] }
 0x5ad   :  { %1652 = vmatpush.msra.mxu0 %v53_v9 }
 0x5ae   :  { %1579 = vst [vmem:[#allocation1 + $0x21] ss:$4 sm:$0xff] %v1551_v30 }
 0x5af   :  { %v1584_v15 = vld.sshfl [vmem:[#allocation1] sm:$0xff pattern:$0x73625140]  ;;  %1581 = vst [vmem:[#allocation1 + $0x22] ss:$4 sm:$0xff] %v1552_v46  ;;  %v1526_v54 = vpop.f32.mrf.mxu2 }
 0x5b0   :  { %1583 = vst [vmem:[#allocation1 + $0x23] ss:$4 sm:$0xff] %v1553_v32  ;;  %3335 = vmatmul.msk.f32.vlgmr.msra.gmra.mxu3 %vm123_vm4, %v1584_v15  ;;  %v1527_v62 = vadd.f32 %v3534_v12, %v1526_v54  ;;  %v3670_v54 = vld [vmem:[%s5277_s2] ss:$0 sm:$0xff] }
 0x5b2   :  { %v1538_v10 = vrot.slane %v1527_v62, 2  ;;  %v1554_v20 = vadd.f32 %v1527_v62, %v5349_v13 }
 0x5b4   :  { %v1555_v37 = vadd.f32 %v1538_v10, %v3818_v26  ;;  %1586 = vst [vmem:[#allocation1] ss:$4 sm:$0xff] %v1554_v20  ;;  %v3535_v26 = vld [vmem:[%s5280_s6] ss:$0 sm:$0xff] }
 0x5b6   :  { %1587 = vst [vmem:[#allocation1 + $0x1] ss:$4 sm:$0xff] %v1555_v37 }
 0x5b7   :  { %v1585_v38 = vld.sshfl [vmem:[#allocation1 + $0x20] sm:$0xff pattern:$0x73625140] }
 0x5b8   :  { %3336 = vmatmul.msk.f32.gmra.mxu3 %vm123_vm4, %v1585_v38 }
 0x5bd   :  { %v1588_v57 = vld.sshfl [vmem:[#allocation1] sm:$0xff pattern:$0x73625140] }
 0x5c0   :  { %3337 = vmatmul.msk.f32.gmra.mxu3 %vm123_vm4, %v1588_v57 }
 0x633   :  { %v1612_v33 = vpop.f32.mrf.mxu3 }
 0x634   :  { %v1613_v31 = vadd.f32 %v3535_v26, %v1612_v33 }
 0x636   :  { %v1621_v49 = vmax.f32 %v1613_v31, 0.0 }
 0x638   :  { %3338 = vmatmul.msk.f32.vlgmr.msra.gmra.mxu0 %vm1627_vm14, %v1621_v49 }
 0x63b   :  { %v1615_v3 = vpop.f32.mrf.mxu3 }
 0x63c   :  { %v1616_v47 = vadd.f32 %v3535_v26, %v1615_v3 }
 0x63e   :  { %v1622_v36 = vmax.f32 %v1616_v47, 0.0 }
 0x640   :  { %3339 = vmatmul.msk.f32.gmra.mxu0 %vm1627_vm14, %v1622_v36 }
 0x643   :  { %v1618_v52 = vpop.f32.mrf.mxu3 }
 0x644   :  { %v1619_v12 = vadd.f32 %v3535_v26, %v1618_v52 }
 0x646   :  { %v1623_v8 = vmax.f32 %v1619_v12, 0.0 }
 0x648   :  { %3340 = vmatmul.msk.f32.gmra.mxu0 %vm1627_vm14, %v1623_v8 }
 0x6b5   :  { %v1654_v23 = vpop.f32.mrf.mxu0 }
 0x6b6   :  { %v1655_v7 = vadd.f32 %v3536_v63, %v1654_v23 }
 0x6b8   :  { %v1666_v19 = vrot.slane %v1655_v7, 2  ;;  %v1667_v53 = vrot.slane %v1655_v7, 4  ;;  %v1668_v1 = vrot.slane %v1655_v7, 6  ;;  %v4577_v58 = vadd.f32 %v1655_v7, %v4519_v17 }
 0x6ba   :  { %v4580_v48 = vadd.f32 %v1666_v19, %v4526_v6  ;;  %v4583_v5 = vadd.f32 %v1667_v53, %v4530_v16  ;;  %v4586_v35 = vadd.f32 %v1668_v1, %v4534_v42  ;;  %1700 = vst [vmem:[#allocation1] ss:$4 sm:$0xff] %v4577_v58 }
 0x6bc   :  { %1702 = vst [vmem:[#allocation1 + $0x1] ss:$4 sm:$0xff] %v4580_v48 }
 0x6bd   :  { %1704 = vst [vmem:[#allocation1 + $0x2] ss:$4 sm:$0xff] %v4583_v5  ;;  %v1657_v40 = vpop.f32.mrf.mxu0 }
 0x6be   :  { %1706 = vst [vmem:[#allocation1 + $0x3] ss:$4 sm:$0xff] %v4586_v35  ;;  %v1658_v17 = vadd.f32 %v3536_v63, %v1657_v40 }
 0x6c0   :  { %v1669_v55 = vrot.slane %v1658_v17, 2  ;;  %v1670_v50 = vrot.slane %v1658_v17, 4  ;;  %v1671_v6 = vrot.slane %v1658_v17, 6  ;;  %v4592_v4 = vadd.f32 %v1658_v17, %v1550_v39 }
 0x6c2   :  { %v4594_v16 = vadd.f32 %v1669_v55, %v1551_v30  ;;  %v4596_v51 = vadd.f32 %v1670_v50, %v1552_v46  ;;  %v4598_v42 = vadd.f32 %v1671_v6, %v1553_v32  ;;  %1708 = vst [vmem:[#allocation1 + $0x20] ss:$4 sm:$0xff] %v4592_v4 }
 0x6c4   :  { %1710 = vst [vmem:[#allocation1 + $0x21] ss:$4 sm:$0xff] %v4594_v16 }
 0x6c5   :  { %v1715_v60 = vld.sshfl [vmem:[#allocation1] sm:$0xff pattern:$0x73625140]  ;;  %1712 = vst [vmem:[#allocation1 + $0x22] ss:$4 sm:$0xff] %v4596_v51  ;;  %v1660_v18 = vpop.f32.mrf.mxu0 }
 0x6c6   :  { %1714 = vst [vmem:[#allocation1 + $0x23] ss:$4 sm:$0xff] %v4598_v42  ;;  %3341 = vmatmul.msk.f32.vlgmr.msrb.gmra.mxu1 %vm123_vm4, %v1715_v60  ;;  %v1661_v39 = vadd.f32 %v3536_v63, %v1660_v18 }
 0x6c8   :  { %v1672_v0 = vrot.slane %v1661_v39, 2  ;;  %v4605_v30 = vadd.f32 %v1661_v39, %v1554_v20 }
 0x6ca   :  { %v4607_v46 = vadd.f32 %v1672_v0, %v1555_v37  ;;  %1717 = vst [vmem:[#allocation1] ss:$4 sm:$0xff] %v4605_v30 }
 0x6cc   :  { %1718 = vst [vmem:[#allocation1 + $0x1] ss:$4 sm:$0xff] %v4607_v46 }
 0x6cd   :  { %v1716_v11 = vld.sshfl [vmem:[#allocation1 + $0x20] sm:$0xff pattern:$0x73625140] }
 0x6ce   :  { %3342 = vmatmul.msk.f32.gmra.mxu1 %vm123_vm4, %v1716_v11 }
 0x6d3   :  { %v1719_v32 = vld.sshfl [vmem:[#allocation1] sm:$0xff pattern:$0x73625140] }
 0x6d6   :  { %3343 = vmatmul.msk.f32.gmra.mxu1 %vm123_vm4, %v1719_v32 }
 0x743   :  { %v1743_v15 = vpop.f32.mrf.mxu1 }
 0x744   :  { %v4616_v62 = vadd.f32 %v3670_v54, %v1743_v15 }
 0x746   :  { %v4619_v10 = vrot.slane %v4616_v62, 2  ;;  %v4622_v13 = vrot.slane %v4616_v62, 4  ;;  %v4625_v20 = vrot.slane %v4616_v62, 6  ;;  %1779 = vst [vmem:[#allocation1] ss:$4 sm:$0xff] %v4616_v62  ;;  %v1769_v57 = vmul.f32 %v3852_v41, %v4616_v62 }
 0x748   :  { %1781 = vst [vmem:[#allocation1 + $0x1] ss:$4 sm:$0xff] %v4619_v10  ;;  %v1770_v34 = vmul.f32 %v3859_v44, %v4619_v10  ;;  %v1771_v9 = vmul.f32 %v3856_v43, %v4622_v13  ;;  %v1772_v26 = vmul.f32 %v3861_v45, %v4625_v20  ;;  %v1959_v50 = vmul.f32 %v3935_v27, %v4622_v13 }
 0x749   :  { %1783 = vst [vmem:[#allocation1 + $0x2] ss:$4 sm:$0xff] %v4622_v13  ;;  %v1960_v6 = vmul.f32 %v3937_v28, %v4625_v20 }
 0x74a   :  { %1785 = vst [vmem:[#allocation1 + $0x3] ss:$4 sm:$0xff] %v4625_v20 }
 0x74b   :  { %v1746_v37 = vpop.f32.mrf.mxu1 }
 0x74c   :  { %v4631_v38 = vadd.f32 %v3670_v54, %v1746_v37 }
 0x74e   :  { %1787 = vst [vmem:[#allocation1 + $0x20] ss:$4 sm:$0xff] %v4631_v38  ;;  %v1773_v33 = vmul.f32 %v3852_v41, %v4631_v38  ;;  %v4649_v3 = vrot.slane %v4631_v38, 2  ;;  %v4654_v52 = vrot.slane %v4631_v38, 4  ;;  %v4657_v12 = vrot.slane %v4631_v38, 6 }
 0x74f   :  { %v1961_v60 = vmul.f32 %v3931_v24, %v4631_v38 }
 0x750   :  { %v1774_v23 = vmul.f32 %v3852_v41, %v4649_v3  ;;  %v1775_v7 = vmul.f32 %v3859_v44, %v4654_v52  ;;  %v1776_v53 = vmul.f32 %v3856_v43, %v4657_v12  ;;  %v1957_v44 = vmul.f32 %v3931_v24, %v4616_v62 }
 0x751   :  { %v4638_v56 = vld.sshfl [vmem:[#allocation1] sm:$0xff pattern:$0x73625140]  ;;  %v1962_v11 = vmul.f32 %v3931_v24, %v4649_v3  ;;  %v1963_v32 = vmul.f32 %v3933_v25, %v4654_v52 }
 0x752   :  { %1795 = vst [vmem:[#allocation1] ss:$4 sm:$0xff] %v1769_v57 }
 0x753   :  { %1797 = vst [vmem:[#allocation1 + $0x1] ss:$4 sm:$0xff] %v1770_v34  ;;  %v1749_v49 = vpop.f32.mrf.mxu1 }
 0x754   :  { %1799 = vst [vmem:[#allocation1 + $0x2] ss:$4 sm:$0xff] %v1771_v9  ;;  %v4651_v47 = vadd.f32 %v3670_v54, %v1749_v49  ;;  %v1964_v54 = vmul.f32 %v3935_v27, %v4657_v12  ;;  %v2136_v9 = vmul.f32 %v4003_v21, %v4619_v10  ;;  %v2139_v49 = vmul.f32 %v4005_v22, %v4631_v38 }
 0x755   :  { %1801 = vst [vmem:[#allocation1 + $0x3] ss:$4 sm:$0xff] %v1772_v26  ;;  %v4646_v31 = vld.sshfl [vmem:[#allocation1 + $0x20] sm:$0xff pattern:$0x73625140]  ;;  %v2137_v26 = vmul.f32 %v4033_v61, %v4622_v13 }
 0x756   :  { %1803 = vst [vmem:[#allocation1 + $0x20] ss:$4 sm:$0xff] %v1773_v33  ;;  %v4665_v63 = vrot.slane %v4651_v47, 2  ;;  %v1777_v1 = vmul.f32 %v3861_v45, %v4651_v47  ;;  %v1965_v37 = vmul.f32 %v3937_v28, %v4651_v47  ;;  %v5350_v33 = vld [vmem:[#allocation2_spill] sm:$0xff] }
 0x758   :  { %v1778_v40 = vmul.f32 %v3852_v41, %v4665_v63  ;;  %v1958_v41 = vmul.f32 %v3933_v25, %v4619_v10  ;;  %v1966_v34 = vmul.f32 %v3931_v24, %v4665_v63  ;;  %v2135_v25 = vmul.f32 %v4005_v22, %v4616_v62 }
 0x759   :  { %v2138_v24 = vmul.f32 %v5350_v33, %v4625_v20 }
 0x75c   :  { %v1804_v36 = vld.sshfl [vmem:[#allocation1] sm:$0xff pattern:$0x73625140] }
 0x75d   :  { %1841 = vst [vmem:[#allocation1] ss:$4 sm:$0xff] %v4649_v3  ;;  %v4661_v8 = vld.sshfl [vmem:[#allocation1 + $0x20] sm:$0xff pattern:$0x73625140] }
 0x75e   :  { %1843 = vst [vmem:[#allocation1 + $0x1] ss:$4 sm:$0xff] %v4654_v52 }
 0x75f   :  { %1845 = vst [vmem:[#allocation1 + $0x2] ss:$4 sm:$0xff] %v4657_v12 }
 0x760   :  { %1847 = vst [vmem:[#allocation1 + $0x3] ss:$4 sm:$0xff] %v4651_v47 }
 0x761   :  { %1849 = vst [vmem:[#allocation1 + $0x20] ss:$4 sm:$0xff] %v4665_v63 }
 0x767   :  { %v4673_v19 = vld.sshfl [vmem:[#allocation1] sm:$0xff pattern:$0x73625140] }
 0x768   :  { %1857 = vst [vmem:[#allocation1] ss:$4 sm:$0xff] %v1774_v23  ;;  %v4681_v17 = vld.sshfl [vmem:[#allocation1 + $0x20] sm:$0xff pattern:$0x73625140]  ;;  %v2141_v23 = vmul.f32 %v4003_v21, %v4654_v52  ;;  %v5351_v21 = vld [vmem:[#allocation6_spill] sm:$0xff] }
 0x769   :  { %1859 = vst [vmem:[#allocation1 + $0x1] ss:$4 sm:$0xff] %v1775_v7 }
 0x76a   :  { %1861 = vst [vmem:[#allocation1 + $0x2] ss:$4 sm:$0xff] %v1776_v53  ;;  %v2142_v53 = vmul.f32 %v4033_v61, %v4657_v12  ;;  %v1947_v61 = vmul.f32 %v5351_v21, %v4616_v62 }
 0x76b   :  { %1863 = vst [vmem:[#allocation1 + $0x3] ss:$4 sm:$0xff] %v1777_v1  ;;  %v2143_v1 = vmul.f32 %v5350_v33, %v4651_v47  ;;  %v5356_v33 = vld [vmem:[#allocation8_spill] sm:$0xff] }
 0x76c   :  { %1865 = vst [vmem:[#allocation1 + $0x20] ss:$4 sm:$0xff] %v1778_v40 }
 0x772   :  { %v4683_v55 = vld.sshfl [vmem:[#allocation1] sm:$0xff pattern:$0x73625140] }
 0x773   :  { %1967 = vst [vmem:[#allocation1] ss:$4 sm:$0xff] %v4616_v62  ;;  %v1867_v43 = vld.sshfl [vmem:[#allocation1 + $0x20] sm:$0xff pattern:$0x73625140] }
 0x774   :  { %1969 = vst [vmem:[#allocation1 + $0x1] ss:$4 sm:$0xff] %v4619_v10 }
 0x775   :  { %1971 = vst [vmem:[#allocation1 + $0x2] ss:$4 sm:$0xff] %v4622_v13 }
 0x776   :  { %1973 = vst [vmem:[#allocation1 + $0x3] ss:$4 sm:$0xff] %v4625_v20 }
 0x777   :  { %1975 = vst [vmem:[#allocation1 + $0x20] ss:$4 sm:$0xff] %v4631_v38 }
 0x77d   :  { %v4694_v45 = vld.sshfl [vmem:[#allocation1] sm:$0xff pattern:$0x73625140] }
 0x77e   :  { %1983 = vst [vmem:[#allocation1] ss:$4 sm:$0xff] %v1957_v44  ;;  %v4702_v18 = vld.sshfl [vmem:[#allocation1 + $0x20] sm:$0xff pattern:$0x73625140] }
 0x77f   :  { %1985 = vst [vmem:[#allocation1 + $0x1] ss:$4 sm:$0xff] %v1958_v41 }
 0x780   :  { %1987 = vst [vmem:[#allocation1 + $0x2] ss:$4 sm:$0xff] %v1959_v50  ;;  %v5353_v50 = vld [vmem:[#allocation3_spill] sm:$0xff] }
 0x781   :  { %1989 = vst [vmem:[#allocation1 + $0x3] ss:$4 sm:$0xff] %v1960_v6  ;;  %v1949_v6 = vmul.f32 %v5353_v50, %v4622_v13 }
 0x782   :  { %1991 = vst [vmem:[#allocation1 + $0x20] ss:$4 sm:$0xff] %v1961_v60  ;;  %v5354_v60 = vld [vmem:[#allocation4_spill] sm:$0xff] }
 0x788   :  { %v1992_v39 = vld.sshfl [vmem:[#allocation1] sm:$0xff pattern:$0x73625140] }
 0x789   :  { %2029 = vst [vmem:[#allocation1] ss:$4 sm:$0xff] %v4649_v3  ;;  %1994 = vrot.lane.b32.xlu1 %v1992_v39, %s3692_s16  ;;  %v1993_v0 = vld.sshfl [vmem:[#allocation1 + $0x20] sm:$0xff pattern:$0x73625140]  ;;  %v1950_v39 = vmul.f32 %v5354_v60, %v4625_v20 }
 0x78a   :  { %2031 = vst [vmem:[#allocation1 + $0x1] ss:$4 sm:$0xff] %v4654_v52  ;;  %1996 = vrot.lane.b32.xlu0 %v1993_v0, %s3692_s16  ;;  %v1952_v0 = vmul.f32 %v5351_v21, %v4649_v3 }
 0x78b   :  { %2033 = vst [vmem:[#allocation1 + $0x2] ss:$4 sm:$0xff] %v4657_v12 }
 0x78c   :  { %2035 = vst [vmem:[#allocation1 + $0x3] ss:$4 sm:$0xff] %v4651_v47 }
 0x78d   :  { %2037 = vst [vmem:[#allocation1 + $0x20] ss:$4 sm:$0xff] %v4665_v63 }
 0x791   :  { %1806 = vrot.lane.b32.xlu1 %v1804_v36, %s3692_s16  ;;  %v2140_v36 = vmul.f32 %v4005_v22, %v4649_v3 }
 0x793   :  { %v4716_v15 = vld.sshfl [vmem:[#allocation1] sm:$0xff pattern:$0x73625140] }
 0x794   :  { %2045 = vst [vmem:[#allocation1] ss:$4 sm:$0xff] %v1962_v11  ;;  %v4722_v57 = vld.sshfl [vmem:[#allocation1 + $0x20] sm:$0xff pattern:$0x73625140] }
 0x795   :  { %2047 = vst [vmem:[#allocation1 + $0x1] ss:$4 sm:$0xff] %v1963_v32 }
 0x796   :  { %2049 = vst [vmem:[#allocation1 + $0x2] ss:$4 sm:$0xff] %v1964_v54  ;;  %v1954_v54 = vmul.f32 %v5353_v50, %v4657_v12 }
 0x797   :  { %2051 = vst [vmem:[#allocation1 + $0x3] ss:$4 sm:$0xff] %v1965_v37  ;;  %v1955_v37 = vmul.f32 %v5354_v60, %v4651_v47  ;;  %v5359_v60 = vld [vmem:[#allocation11_spill] sm:$0xff] }
 0x798   :  { %2053 = vst [vmem:[#allocation1 + $0x20] ss:$4 sm:$0xff] %v1966_v34 }
 0x79e   :  { %v2054_v27 = vld.sshfl [vmem:[#allocation1] sm:$0xff pattern:$0x73625140] }
 0x79f   :  { %2150 = vst [vmem:[#allocation1] ss:$4 sm:$0xff] %v2135_v25  ;;  %2056 = vrot.lane.b32.xlu0 %v2054_v27, %s3692_s16  ;;  %v2055_v28 = vld.sshfl [vmem:[#allocation1 + $0x20] sm:$0xff pattern:$0x73625140]  ;;  %v1956_v25 = vmul.f32 %v5351_v21, %v4665_v63 }
 0x7a0   :  { %2152 = vst [vmem:[#allocation1 + $0x1] ss:$4 sm:$0xff] %v2136_v9  ;;  %2058 = vrot.lane.b32.xlu2 %v2055_v28, %s3692_s16 }
 0x7a1   :  { %2154 = vst [vmem:[#allocation1 + $0x2] ss:$4 sm:$0xff] %v2137_v26  ;;  %v5355_v26 = vld [vmem:[#allocation7_spill] sm:$0xff] }
 0x7a2   :  { %2156 = vst [vmem:[#allocation1 + $0x3] ss:$4 sm:$0xff] %v2138_v24  ;;  %v2353_v28 = vmul.f32 %v5355_v26, %v4616_v62  ;;  %v2354_v24 = vmul.f32 %v5356_v33, %v4619_v10 }
 0x7a3   :  { %2158 = vst [vmem:[#allocation1 + $0x20] ss:$4 sm:$0xff] %v2139_v49 }
 0x7a7   :  { %1808 = vrot.lane.b32.xlu0 %v4661_v8, %s3692_s16  ;;  %v2144_v8 = vmul.f32 %v4005_v22, %v4665_v63 }
 0x7a8   :  { %1870 = vrot.lane.b32.xlu2 %v1867_v43, %s3692_s16  ;;  %v5352_v43 = vld [vmem:[#allocation5_spill] sm:$0xff] }
 0x7a9   :  { %v2159_v7 = vld.sshfl [vmem:[#allocation1] sm:$0xff pattern:$0x73625140]  ;;  %v1948_v44 = vmul.f32 %v5352_v43, %v4619_v10  ;;  %v1953_v11 = vmul.f32 %v5352_v43, %v4654_v52  ;;  %v2359_v43 = vmul.f32 %v5356_v33, %v4654_v52  ;;  %v2535_v33 = vmul.f32 %v5359_v60, %v4631_v38 }
 0x7aa   :  { %2202 = vst [vmem:[#allocation1] ss:$4 sm:$0xff] %v2140_v36  ;;  %v2160_v40 = vld.sshfl [vmem:[#allocation1 + $0x20] sm:$0xff pattern:$0x73625140] }
 0x7ab   :  { %2204 = vst [vmem:[#allocation1 + $0x1] ss:$4 sm:$0xff] %v2141_v23  ;;  %v5357_v36 = vld [vmem:[#allocation9_spill] sm:$0xff] }
 0x7ac   :  { %2206 = vst [vmem:[#allocation1 + $0x2] ss:$4 sm:$0xff] %v2142_v53  ;;  %v2355_v23 = vmul.f32 %v5357_v36, %v4622_v13 }
 0x7ad   :  { %2208 = vst [vmem:[#allocation1 + $0x3] ss:$4 sm:$0xff] %v2143_v1 }
 0x7ae   :  { %2210 = vst [vmem:[#allocation1 + $0x20] ss:$4 sm:$0xff] %v2144_v8 }
 0x7af   :  { %1868 = vrot.lane.b32.xlu0 %v4683_v55, %s3692_s16  ;;  %v1951_v55 = vmul.f32 %v5351_v21, %v4631_v38 }
 0x7b0   :  { %2163 = vrot.lane.b32.xlu2 %v2160_v40, %s3693_s17  ;;  %v2357_v40 = vmul.f32 %v5355_v26, %v4631_v38 }
 0x7b4   :  { %v2211_v41 = vld.sshfl [vmem:[#allocation1] sm:$0xff pattern:$0x73625140] }
 0x7b5   :  { %2254 = vst [vmem:[#allocation1] ss:$4 sm:$0xff] %v1947_v61  ;;  %v2212_v22 = vld.sshfl [vmem:[#allocation1 + $0x20] sm:$0xff pattern:$0x73625140]  ;;  %v2358_v61 = vmul.f32 %v5355_v26, %v4649_v3 }
 0x7b6   :  { %2256 = vst [vmem:[#allocation1 + $0x1] ss:$4 sm:$0xff] %v1948_v44  ;;  %2215 = vrot.lane.b32.xlu1 %v2212_v22, %s3693_s17  ;;  %v2362_v22 = vmul.f32 %v5355_v26, %v4665_v63 }
 0x7b7   :  { %2258 = vst [vmem:[#allocation1 + $0x2] ss:$4 sm:$0xff] %v1949_v6  ;;  %2161 = vrot.lane.b32.xlu0 %v2159_v7, %s3693_s17  ;;  %v5358_v7 = vld [vmem:[#allocation10_spill] sm:$0xff] }
 0x7b8   :  { %2260 = vst [vmem:[#allocation1 + $0x3] ss:$4 sm:$0xff] %v1950_v39  ;;  %2213 = vrot.lane.b32.xlu2 %v2211_v41, %s3693_s17  ;;  %v2356_v53 = vmul.f32 %v5358_v7, %v4625_v20  ;;  %v2360_v41 = vmul.f32 %v5357_v36, %v4657_v12  ;;  %v2361_v50 = vmul.f32 %v5358_v7, %v4651_v47 }
 0x7b9   :  { %2262 = vst [vmem:[#allocation1 + $0x20] ss:$4 sm:$0xff] %v1951_v55  ;;  %v2531_v39 = vmul.f32 %v5359_v60, %v4616_v62  ;;  %v5360_v55 = vld [vmem:[#allocation12_spill] sm:$0xff] }
 0x7bf   :  { %v4771_v32 = vld.sshfl [vmem:[#allocation1] sm:$0xff pattern:$0x73625140] }
 0x7c0   :  { %2306 = vst [vmem:[#allocation1] ss:$4 sm:$0xff] %v1952_v0  ;;  %v4777_v34 = vld.sshfl [vmem:[#allocation1 + $0x20] sm:$0xff pattern:$0x73625140]  ;;  %v2532_v0 = vmul.f32 %v5360_v55, %v4619_v10 }
 0x7c1   :  { %2308 = vst [vmem:[#allocation1 + $0x1] ss:$4 sm:$0xff] %v1953_v11 }
 0x7c2   :  { %2310 = vst [vmem:[#allocation1 + $0x2] ss:$4 sm:$0xff] %v1954_v54  ;;  %v5361_v54 = vld [vmem:[#allocation13_spill] sm:$0xff] }
 0x7c3   :  { %2312 = vst [vmem:[#allocation1 + $0x3] ss:$4 sm:$0xff] %v1955_v37  ;;  %v2533_v37 = vmul.f32 %v5361_v54, %v4622_v13 }
 0x7c4   :  { %2314 = vst [vmem:[#allocation1 + $0x20] ss:$4 sm:$0xff] %v1956_v25  ;;  %v5362_v25 = vld [vmem:[#allocation14_spill] sm:$0xff] }
 0x7ca   :  { %v4781_v9 = vld.sshfl [vmem:[#allocation1] sm:$0xff pattern:$0x73625140] }
 0x7cb   :  { %2363 = vst [vmem:[#allocation1] ss:$4 sm:$0xff] %v4616_v62  ;;  %v4785_v27 = vld.sshfl [vmem:[#allocation1 + $0x20] sm:$0xff pattern:$0x73625140] }
 0x7cc   :  { %2365 = vst [vmem:[#allocation1 + $0x1] ss:$4 sm:$0xff] %v4619_v10 }
 0x7cd   :  { %2367 = vst [vmem:[#allocation1 + $0x2] ss:$4 sm:$0xff] %v4622_v13 }
 0x7ce   :  { %2369 = vst [vmem:[#allocation1 + $0x3] ss:$4 sm:$0xff] %v4625_v20 }
 0x7cf   :  { %2371 = vst [vmem:[#allocation1 + $0x20] ss:$4 sm:$0xff] %v4631_v38 }
 0x7d5   :  { %v4794_v49 = vld.sshfl [vmem:[#allocation1] sm:$0xff pattern:$0x73625140] }
 0x7d6   :  { %2379 = vst [vmem:[#allocation1] ss:$4 sm:$0xff] %v2353_v28  ;;  %v4800_v1 = vld.sshfl [vmem:[#allocation1 + $0x20] sm:$0xff pattern:$0x73625140]  ;;  %v2534_v28 = vmul.f32 %v5362_v25, %v4625_v20 }
 0x7d7   :  { %2381 = vst [vmem:[#allocation1 + $0x1] ss:$4 sm:$0xff] %v2354_v24 }
 0x7d8   :  { %2383 = vst [vmem:[#allocation1 + $0x2] ss:$4 sm:$0xff] %v2355_v23  ;;  %v2536_v23 = vmul.f32 %v5359_v60, %v4649_v3 }
 0x7d9   :  { %2385 = vst [vmem:[#allocation1 + $0x3] ss:$4 sm:$0xff] %v2356_v53  ;;  %v2540_v53 = vmul.f32 %v5359_v60, %v4665_v63 }
 0x7da   :  { %2387 = vst [vmem:[#allocation1 + $0x20] ss:$4 sm:$0xff] %v2357_v40 }
 0x7e0   :  { %v2388_v8 = vld.sshfl [vmem:[#allocation1] sm:$0xff pattern:$0x73625140] }
 0x7e1   :  { %2431 = vst [vmem:[#allocation1 + $0x3] ss:$4 sm:$0xff] %v4651_v47  ;;  %2390 = vrot.lane.b32.xlu1 %v2388_v8, %s3692_s16  ;;  %v2389_v21 = vld.sshfl [vmem:[#allocation1 + $0x20] sm:$0xff pattern:$0x73625140]  ;;  %v2537_v8 = vmul.f32 %v5360_v55, %v4654_v52 }
 0x7e2   :  { %2425 = vst [vmem:[#allocation1] ss:$4 sm:$0xff] %v4649_v3  ;;  %2392 = vrot.lane.b32.xlu0 %v2389_v21, %s3692_s16 }
 0x7e3   :  { %2427 = vst [vmem:[#allocation1 + $0x1] ss:$4 sm:$0xff] %v4654_v52 }
 0x7e4   :  { %2429 = vst [vmem:[#allocation1 + $0x2] ss:$4 sm:$0xff] %v4657_v12 }
 0x7e5   :  { %2433 = vst [vmem:[#allocation1 + $0x20] ss:$4 sm:$0xff] %v4665_v63 }
 0x7eb   :  { %v4815_v44 = vld.sshfl [vmem:[#allocation1] sm:$0xff pattern:$0x73625140] }
 0x7ec   :  { %2441 = vst [vmem:[#allocation1] ss:$4 sm:$0xff] %v2358_v61  ;;  %v4821_v6 = vld.sshfl [vmem:[#allocation1 + $0x20] sm:$0xff pattern:$0x73625140] }
 0x7ed   :  { %2443 = vst [vmem:[#allocation1 + $0x1] ss:$4 sm:$0xff] %v2359_v43  ;;  %v2538_v43 = vmul.f32 %v5361_v54, %v4657_v12 }
 0x7ee   :  { %2445 = vst [vmem:[#allocation1 + $0x2] ss:$4 sm:$0xff] %v2360_v41  ;;  %v2539_v41 = vmul.f32 %v5362_v25, %v4651_v47 }
 0x7ef   :  { %2447 = vst [vmem:[#allocation1 + $0x3] ss:$4 sm:$0xff] %v2361_v50 }
 0x7f0   :  { %2449 = vst [vmem:[#allocation1 + $0x20] ss:$4 sm:$0xff] %v2362_v22 }
 0x7f6   :  { %v4829_v11 = vld.sshfl [vmem:[#allocation1] sm:$0xff pattern:$0x73625140] }
 0x7f7   :  { %2546 = vst [vmem:[#allocation1] ss:$4 sm:$0xff] %v2531_v39  ;;  %v4835_v26 = vld.sshfl [vmem:[#allocation1 + $0x20] sm:$0xff pattern:$0x73625140] }
 0x7f8   :  { %2548 = vst [vmem:[#allocation1 + $0x1] ss:$4 sm:$0xff] %v2532_v0  ;;  %v5364_v0 = vld [vmem:[#allocation18_spill] sm:$0xff] }
 0x7f9   :  { %2550 = vst [vmem:[#allocation1 + $0x2] ss:$4 sm:$0xff] %v2533_v37  ;;  %v2650_v54 = vmul.f32 %v5364_v0, %v4619_v10 }
 0x7fa   :  { %v2059_v24 = vpop.permute.xlu2 %2058  ;;  %2552 = vst [vmem:[#allocation1 + $0x3] ss:$4 sm:$0xff] %v2534_v28  ;;  %v5365_v28 = vld [vmem:[#allocation16_spill] sm:$0xff] }
 0x7fb   :  { %3356 = vmatpush.xpose.msk.msra.mxu1 %vm123_vm4, %v2059_v24  ;;  %2554 = vst [vmem:[#allocation1 + $0x20] ss:$4 sm:$0xff] %v2535_v33  ;;  %v1995_v7 = vpop.permute.xlu1 %1994  ;;  %v2651_v33 = vmul.f32 %v5365_v28, %v4622_v13 }
 0x7fc   :  { %v1997_v36 = vpop.permute.xlu0 %1996 }
 0x7fd   :  { %3352 = vmatpush.xpose.msk.msrb.mxu0 %vm123_vm4, %v1997_v36 }
 0x801   :  { %3353 = vmatpush.xpose.msk.msrb.mxu0 %vm123_vm4, %v1995_v7  ;;  %v4846_v40 = vld.sshfl [vmem:[#allocation1] sm:$0xff pattern:$0x73625140] }
 0x802   :  { %v1871_v21 = vpop.permute.xlu2 %1870  ;;  %v4850_v61 = vld.sshfl [vmem:[#allocation1 + $0x20] sm:$0xff pattern:$0x73625140]  ;;  %2598 = vst [vmem:[#allocation1] ss:$4 sm:$0xff] %v2536_v23 }
 0x803   :  { %3348 = vmatpush.xpose.msk.msrb.mxu3 %vm123_vm4, %v1871_v21  ;;  %2606 = vst [vmem:[#allocation1 + $0x20] ss:$4 sm:$0xff] %v2540_v53  ;;  %v1807_v23 = vpop.permute.xlu1 %1806 }
 0x804   :  { %3354 = vmatmul.msk.f32.vlgmr.msrb.gmra.mxu0 %vm123_vm4, %v4694_v45  ;;  %2600 = vst [vmem:[#allocation1 + $0x1] ss:$4 sm:$0xff] %v2537_v8  ;;  %v5363_v45 = vld [vmem:[#allocation15_spill] sm:$0xff] }
 0x805   :  { %2602 = vst [vmem:[#allocation1 + $0x2] ss:$4 sm:$0xff] %v2538_v43  ;;  %v2653_v60 = vmul.f32 %v5363_v45, %v4631_v38  ;;  %v2658_v53 = vmul.f32 %v5363_v45, %v4665_v63 }
 0x806   :  { %2604 = vst [vmem:[#allocation1 + $0x3] ss:$4 sm:$0xff] %v2539_v41 }
 0x80a   :  { %v4859_v50 = vld.sshfl [vmem:[#allocation1 + $0x20] sm:$0xff pattern:$0x73625140]  ;;  %v2164_v7 = vpop.permute.xlu2 %2163 }
 0x80b   :  { %2667 = vst [vmem:[#allocation1 + $0x20] ss:$4 sm:$0xff] %v4631_v38 }
 0x80c   :  { %3355 = vmatmul.msk.f32.gmra.mxu0 %vm123_vm4, %v4702_v18  ;;  %v2649_v18 = vmul.f32 %v5363_v45, %v4616_v62 }
 0x80d   :  { %v4864_v22 = vld.sshfl [vmem:[#allocation1] sm:$0xff pattern:$0x73625140] }
 0x80e   :  { %2659 = vst [vmem:[#allocation1] ss:$4 sm:$0xff] %v4616_v62 }
 0x80f   :  { %2661 = vst [vmem:[#allocation1 + $0x1] ss:$4 sm:$0xff] %v4619_v10 }
 0x810   :  { %2663 = vst [vmem:[#allocation1 + $0x2] ss:$4 sm:$0xff] %v4622_v13 }
 0x811   :  { %v2057_v39 = vpop.permute.xlu0 %2056  ;;  %2665 = vst [vmem:[#allocation1 + $0x3] ss:$4 sm:$0xff] %v4625_v20 }
 0x812   :  { %3357 = vmatpush.xpose.msk.msra.mxu1 %vm123_vm4, %v2057_v39  ;;  %v4873_v55 = vld.sshfl [vmem:[#allocation1 + $0x20] sm:$0xff pattern:$0x73625140]  ;;  %v2654_v39 = vmul.f32 %v5363_v45, %v4649_v3  ;;  %v2827_v45 = vmul.f32 %v4302_v59, %v4616_v62  ;;  %v2833_v62 = vmul.f32 %v4300_v2, %v4654_v52 }
 0x813   :  { %2683 = vst [vmem:[#allocation1 + $0x20] ss:$4 sm:$0xff] %v2653_v60  ;;  %v2214_v60 = vpop.permute.xlu2 %2213 }
 0x815   :  { %3358 = vmatmul.msk.f32.vlgmr.msra.gmra.mxu1 %vm123_vm4, %v4716_v15  ;;  %v5366_v15 = vld [vmem:[#allocation17_spill] sm:$0xff] }
 0x816   :  { %v2652_v36 = vmul.f32 %v5366_v15, %v4625_v20 }
 0x818   :  { %v4881_v37 = vld.sshfl [vmem:[#allocation1] sm:$0xff pattern:$0x73625140] }
 0x819   :  { %v1809_v25 = vpop.permute.xlu0 %1808  ;;  %2675 = vst [vmem:[#allocation1] ss:$4 sm:$0xff] %v2649_v18 }
 0x81a   :  { %3344 = vmatpush.xpose.msk.msra.mxu2 %vm123_vm4, %v1809_v25  ;;  %v4886_v24 = vld.sshfl [vmem:[#allocation1 + $0x20] sm:$0xff pattern:$0x73625140]  ;;  %2677 = vst [vmem:[#allocation1 + $0x1] ss:$4 sm:$0xff] %v2650_v54  ;;  %v2657_v54 = vmul.f32 %v5366_v15, %v4651_v47  ;;  %v2836_v25 = vmul.f32 %v4302_v59, %v4665_v63  ;;  %v2830_v15 = vmul.f32 %v4329_v29, %v4625_v20 }
 0x81b   :  { %2729 = vst [vmem:[#allocation1 + $0x20] ss:$4 sm:$0xff] %v4665_v63  ;;  %v2832_v63 = vmul.f32 %v4302_v59, %v4649_v3 }
 0x81c   :  { %2679 = vst [vmem:[#allocation1 + $0x2] ss:$4 sm:$0xff] %v2651_v33  ;;  %v2829_v33 = vmul.f32 %v4331_v14, %v4622_v13  ;;  %v2835_v13 = vmul.f32 %v4329_v29, %v4651_v47 }
 0x81d   :  { %3359 = vmatmul.msk.f32.gmra.mxu1 %vm123_vm4, %v4722_v57  ;;  %2681 = vst [vmem:[#allocation1 + $0x3] ss:$4 sm:$0xff] %v2652_v36 }
 0x81e   :  { %3345 = vmatpush.xpose.msk.msra.mxu2 %vm123_vm4, %v1807_v23 }
 0x821   :  { %3346 = vmatmul.msk.f32.vlgmr.msra.gmra.mxu2 %vm123_vm4, %v4638_v56  ;;  %v1869_v8 = vpop.permute.xlu0 %1868  ;;  %v2831_v56 = vmul.f32 %v4302_v59, %v4631_v38  ;;  %v2655_v38 = vmul.f32 %v5364_v0, %v4654_v52  ;;  %v2828_v0 = vmul.f32 %v4300_v2, %v4619_v10  ;;  %v2834_v10 = vmul.f32 %v4331_v14, %v4657_v12 }
 0x822   :  { %3360 = vmatpush.msk.msrb.mxu2 %vm634_vm11, %v2164_v7  ;;  %3349 = vmatpush.xpose.msk.msrb.mxu3 %vm123_vm4, %v1869_v8  ;;  %v4900_v21 = vld.sshfl [vmem:[#allocation1 + $0x20] sm:$0xff pattern:$0x73625140] }
 0x823   :  { %2745 = vst [vmem:[#allocation1 + $0x20] ss:$4 sm:$0xff] %v2658_v53 }
 0x824   :  { %v4902_v43 = vld.sshfl [vmem:[#allocation1] sm:$0xff pattern:$0x73625140] }
 0x825   :  { %3350 = vmatmul.msk.f32.vlgmr.msrb.gmra.mxu3 %vm123_vm4, %v4673_v19  ;;  %2721 = vst [vmem:[#allocation1] ss:$4 sm:$0xff] %v4649_v3 }
 0x826   :  { %2723 = vst [vmem:[#allocation1 + $0x1] ss:$4 sm:$0xff] %v4654_v52 }
 0x827   :  { %2725 = vst [vmem:[#allocation1 + $0x2] ss:$4 sm:$0xff] %v4657_v12 }
 0x828   :  { %v2216_v57 = vpop.permute.xlu1 %2215  ;;  %2727 = vst [vmem:[#allocation1 + $0x3] ss:$4 sm:$0xff] %v4651_v47 }
 0x829   :  { %3363 = vmatpush.msk.msra.mxu3 %vm634_vm11, %v2216_v57  ;;  %3347 = vmatmul.msk.f32.gmra.mxu2 %vm123_vm4, %v4646_v31  ;;  %v2162_v41 = vpop.permute.xlu0 %2161  ;;  %v2656_v31 = vmul.f32 %v5365_v28, %v4657_v12 }
 0x82a   :  { %2189 = vmatpush.msrb.mxu2 %v2162_v41  ;;  %v4915_v19 = vld.sshfl [vmem:[#allocation1 + $0x20] sm:$0xff pattern:$0x73625140] }
 0x82b   :  { %2241 = vmatpush.msra.mxu3 %v2214_v60  ;;  %2850 = vst [vmem:[#allocation1 + $0x20] ss:$4 sm:$0xff] %v2831_v56 }
 0x82d   :  { %3351 = vmatmul.msk.f32.gmra.mxu3 %vm123_vm4, %v4681_v17 }
 0x82f   :  { %v4923_v18 = vld.sshfl [vmem:[#allocation1] sm:$0xff pattern:$0x73625140] }
 0x830   :  { %2737 = vst [vmem:[#allocation1] ss:$4 sm:$0xff] %v2654_v39 }
 0x831   :  { %2739 = vst [vmem:[#allocation1 + $0x1] ss:$4 sm:$0xff] %v2655_v38 }
 0x832   :  { %2741 = vst [vmem:[#allocation1 + $0x2] ss:$4 sm:$0xff] %v2656_v31  ;;  %v4931_v17 = vld.sshfl [vmem:[#allocation1 + $0x20] sm:$0xff pattern:$0x73625140] }
 0x833   :  { %2743 = vst [vmem:[#allocation1 + $0x3] ss:$4 sm:$0xff] %v2657_v54 }
 0x834   :  { %2902 = vst [vmem:[#allocation1 + $0x20] ss:$4 sm:$0xff] %v2836_v25 }
 0x83a   :  { %v2746_v28 = vld.sshfl [vmem:[#allocation1] sm:$0xff pattern:$0x73625140] }
 0x83b   :  { %2842 = vst [vmem:[#allocation1] ss:$4 sm:$0xff] %v2827_v45 }
 0x83c   :  { %2844 = vst [vmem:[#allocation1 + $0x1] ss:$4 sm:$0xff] %v2828_v0 }
 0x83d   :  { %2846 = vst [vmem:[#allocation1 + $0x2] ss:$4 sm:$0xff] %v2829_v33 }
 0x83e   :  { %2848 = vst [vmem:[#allocation1 + $0x3] ss:$4 sm:$0xff] %v2830_v15 }
 0x845   :  { %v4945_v36 = vld.sshfl [vmem:[#allocation1] sm:$0xff pattern:$0x73625140] }
 0x846   :  { %2894 = vst [vmem:[#allocation1] ss:$4 sm:$0xff] %v2832_v63 }
 0x847   :  { %2896 = vst [vmem:[#allocation1 + $0x1] ss:$4 sm:$0xff] %v2833_v62 }
 0x848   :  { %2898 = vst [vmem:[#allocation1 + $0x2] ss:$4 sm:$0xff] %v2834_v10 }
 0x849   :  { %2900 = vst [vmem:[#allocation1 + $0x3] ss:$4 sm:$0xff] %v2835_v13 }
 0x853   :  { %v2391_v23 = vpop.permute.xlu1 %2390 }
 0x854   :  { %v2393_v20 = vpop.permute.xlu0 %2392 }
 0x855   :  { %3372 = vmatpush.xpose.msk.msra.mxu2 %vm123_vm4, %v2393_v20 }
 0x859   :  { %3373 = vmatpush.xpose.msk.msra.mxu2 %vm123_vm4, %v2391_v23 }
 0x881   :  { %v2023_v59 = vpop.f32.mrf.mxu0 }
 0x882   :  { %v2091_v2 = vsel %vm323_vm12, %v2023_v59, -inf }
 0x883   :  { %2092 = vmax.xlane.f32.xlu0 %v2091_v2 }
 0x889   :  { %v2026_v3 = vpop.f32.mrf.mxu0 }
 0x88a   :  { %v2094_v14 = vsel %vm327_vm13, %v2026_v3, -inf }
 0x88b   :  { %2095 = vmax.xlane.f32.xlu1 %v2094_v14 }
 0x892   :  { %v2085_v52 = vpop.f32.mrf.mxu1 }
 0x893   :  { %v2097_v29 = vsel %vm323_vm12, %v2085_v52, -inf }
 0x894   :  { %2098 = vmax.xlane.f32.xlu2 %v2097_v29 }
 0x89a   :  { %v2088_v47 = vpop.f32.mrf.mxu1 }
 0x89b   :  { %v2100_v12 = vsel %vm327_vm13, %v2088_v47, -inf }
 0x89c   :  { %2101 = vmax.xlane.f32.xlu0 %v2100_v12 }
 0x8a4   :  { %2452 = vrot.lane.b32.xlu1 %v4829_v11, %s3692_s16  ;;  %v4974_v20 = vpop.f32.mrf.mxu2 }
 0x8b0   :  { %2454 = vrot.lane.b32.xlu0 %v4835_v26, %s3692_s16 }
 0x8f6   :  { %v2093_v7 = vpop.xlane.xlu0 %2092 }
 0x8f7   :  { %v2103_v53 = vsub.f32 %v2023_v59, %v2093_v7 }
 0x8f9   :  { %v2107_v8 = vmul.f32 1.442695, %v2103_v53 }
 0x8fb   :  { %3602 = vpow2.f32 %v2107_v8 }
 0x8fe   :  { %v2096_v57 = vpop.xlane.xlu1 %2095 }
 0x8ff   :  { %v2104_v56 = vsub.f32 %v2026_v3, %v2096_v57 }
 0x901   :  { %v3603_v41 = vpop.eup %3602  ;;  %v2109_v60 = vmul.f32 1.442695, %v2104_v56 }
 0x902   :  { %v2115_v39 = vsel %vm323_vm12, %v3603_v41, 0.0 }
 0x903   :  { %3604 = vpow2.f32 %v2109_v60  ;;  %2116 = vadd.xlane.f32.xlu0 %v2115_v39 }
 0x907   :  { %v2099_v38 = vpop.xlane.xlu2 %2098 }
 0x908   :  { %v2105_v31 = vsub.f32 %v2085_v52, %v2099_v38 }
 0x909   :  { %v3605_v54 = vpop.eup %3604 }
 0x90a   :  { %v2111_v25 = vmul.f32 1.442695, %v2105_v31  ;;  %v2118_v11 = vsel %vm327_vm13, %v3605_v54, 0.0  ;;  %v3672_v31 = vld [vmem:[%s5279_s3 + $0x10] sm:$0xff] }
 0x90b   :  { %2119 = vadd.xlane.f32.xlu1 %v2118_v11  ;;  %v3676_v11 = vld [vmem:[%s5281_s5 + $0x10] sm:$0xff] }
 0x90c   :  { %3606 = vpow2.f32 %v2111_v25  ;;  %v3675_v25 = vld [vmem:[%s5281_s5 + $0x18] sm:$0xff] }
 0x90f   :  { %v2102_v26 = vpop.xlane.xlu0 %2101 }
 0x910   :  { %v2106_v45 = vsub.f32 %v2088_v47, %v2102_v26  ;;  %v3677_v26 = vld [vmem:[%s5281_s5 + $0x8] sm:$0xff] }
 0x912   :  { %v3607_v0 = vpop.eup %3606  ;;  %v2113_v33 = vmul.f32 1.442695, %v2106_v45 }
 0x913   :  { %v2121_v15 = vsel %vm323_vm12, %v3607_v0, 0.0 }
 0x914   :  { %3608 = vpow2.f32 %v2113_v33  ;;  %2122 = vadd.xlane.f32.xlu2 %v2121_v15 }
 0x916   :  { %v2453_v13 = vpop.permute.xlu1 %2452 }
 0x917   :  { %2688 = vrot.lane.b32.xlu0 %v4886_v24, %s3692_s16  ;;  %v4976_v24 = vpop.f32.mrf.mxu3 }
 0x918   :  { %v1909_v23 = vsel %vm323_vm12, %v4976_v24, -inf }
 0x91a   :  { %v3609_v63 = vpop.eup %3608 }
 0x91b   :  { %v2124_v62 = vsel %vm327_vm13, %v3609_v63, 0.0 }
 0x91c   :  { %2125 = vadd.xlane.f32.xlu2 %v2124_v62 }
 0x91f   :  { %2748 = vrot.lane.b32.xlu0 %v2746_v28, %s3692_s16  ;;  %v4980_v28 = vpop.f32.mrf.mxu2  ;;  %v4986_v2 = vpop.f32.mrf.mxu3 }
 0x920   :  { %v1906_v59 = vsel %vm327_vm13, %v4980_v28, -inf }
 0x922   :  { %v2455_v10 = vpop.permute.xlu0 %2454 }
 0x923   :  { %3376 = vmatpush.xpose.msk.msrb.mxu3 %vm123_vm4, %v2455_v10 }
 0x924   :  { %2750 = vrot.lane.b32.xlu1 %v4915_v19, %s3692_s16  ;;  %v1903_v19 = vsel %vm323_vm12, %v4974_v20, -inf }
 0x927   :  { %3377 = vmatpush.xpose.msk.msrb.mxu3 %vm123_vm4, %v2453_v13 }
 0x934   :  { %2686 = vrot.lane.b32.xlu2 %v4902_v43, %s3692_s16  ;;  %v1912_v43 = vsel %vm327_vm13, %v4986_v2, -inf }
 0x949   :  { %1910 = vmax.xlane.f32.xlu0 %v1909_v23 }
 0x94e   :  { %1907 = vmax.xlane.f32.xlu1 %v1906_v59 }
 0x95d   :  { %1904 = vmax.xlane.f32.xlu2 %v1903_v19 }
 0x965   :  { %1913 = vmax.xlane.f32.xlu2 %v1912_v43 }
 0x967   :  { %2267 = vrot.lane.b32.xlu1 %v4777_v34, %s3693_s17 }
 0x976   :  { %v2117_v3 = vpop.xlane.xlu0 %2116 }
 0x977   :  { %3610 = vrcp.f32 %v2117_v3 }
 0x97d   :  { %v3611_v14 = vpop.eup %3610 }
 0x97e   :  { %v2131_v52 = vmul.f32 %v3611_v14, %v3603_v41  ;;  %v2120_v29 = vpop.xlane.xlu1 %2119 }
 0x97f   :  { %3612 = vrcp.f32 %v2120_v29 }
 0x980   :  { %3361 = vmatmul.msk.f32.vlgmr.msrb.gmra.mxu2 %vm323_vm12, %v2131_v52 }
 0x985   :  { %v3613_v47 = vpop.eup %3612 }
 0x986   :  { %v2132_v12 = vmul.f32 %v3613_v47, %v3605_v54  ;;  %v3673_v54 = vld [vmem:[%s5279_s3 + $0x8] sm:$0xff] }
 0x987   :  { %v2123_v7 = vpop.xlane.xlu2 %2122 }
 0x988   :  { %3614 = vrcp.f32 %v2123_v7  ;;  %3362 = vmatmul.msk.f32.gmra.mxu2 %vm323_vm12, %v2132_v12 }
 0x989   :  { %v2689_v53 = vpop.permute.xlu0 %2688 }
 0x98a   :  { %3386 = vmatpush.xpose.msk.msrb.mxu2 %vm123_vm4, %v2689_v53 }
 0x98e   :  { %v3615_v8 = vpop.eup %3614 }
 0x98f   :  { %v2133_v57 = vmul.f32 %v3615_v8, %v3607_v0  ;;  %v2126_v34 = vpop.xlane.xlu2 %2125 }
 0x990   :  { %3616 = vrcp.f32 %v2126_v34  ;;  %3374 = vmatmul.msk.f32.vlgmr.msra.gmra.mxu2 %vm123_vm4, %v4794_v49  ;;  %v3671_v49 = vld [vmem:[%s5279_s3 + $0x18] sm:$0xff] }
 0x991   :  { %3364 = vmatmul.msk.f32.vlgmr.msra.gmra.mxu3 %vm323_vm12, %v2133_v57  ;;  %v2749_v38 = vpop.permute.xlu0 %2748 }
 0x996   :  { %v3617_v56 = vpop.eup %3616  ;;  %v2751_v41 = vpop.permute.xlu1 %2750 }
 0x997   :  { %v2687_v60 = vpop.permute.xlu2 %2686  ;;  %v2134_v39 = vmul.f32 %v3617_v56, %v3609_v63  ;;  %3390 = vmatpush.xpose.msk.msra.mxu3 %vm123_vm4, %v2751_v41 }
 0x998   :  { %3387 = vmatpush.xpose.msk.msrb.mxu2 %vm123_vm4, %v2687_v60 }
 0x999   :  { %3365 = vmatmul.msk.f32.gmra.mxu3 %vm323_vm12, %v2134_v39  ;;  %3375 = vmatmul.msk.f32.gmra.mxu2 %vm123_vm4, %v4800_v1  ;;  %v3674_v1 = vld [vmem:[%s5279_s3] sm:$0xff] }
 0x99b   :  { %3391 = vmatpush.xpose.msk.msra.mxu3 %vm123_vm4, %v2749_v38  ;;  %v3523_v38 = vpack.i.bf16 %v4864_v22, %v4846_v40 }
 0x99c   :  { %2993 = vmatpush.msra.mxu2 %v3671_v49 }
 0x99e   :  { %2994 = vmatpush.msra.mxu2 %v3672_v31 }
 0x9a0   :  { %2995 = vmatpush.msra.mxu2 %v3673_v54 }
 0x9a1   :  { %3378 = vmatmul.msk.f32.vlgmr.msrb.gmra.mxu3 %vm123_vm4, %v4815_v44  ;;  %3388 = vmatmul.msk.f32.vlgmr.msrb.gmra.mxu2 %vm123_vm4, %v4881_v37  ;;  %v3678_v44 = vld [vmem:[%s5281_s5] sm:$0xff] }
 0x9a2   :  { %2996 = vmatpush.msra.mxu2 %v3674_v1  ;;  %3082 = vmatpush.msrb.mxu3 %v3675_v25 }
 0x9a4   :  { %3083 = vmatpush.msrb.mxu3 %v3676_v11 }
 0x9a6   :  { %3084 = vmatpush.msrb.mxu3 %v3677_v26 }
 0x9a8   :  { %3085 = vmatpush.msrb.mxu3 %v3678_v44 }
 0x9a9   :  { %3379 = vmatmul.msk.f32.gmra.mxu3 %vm123_vm4, %v4821_v6  ;;  %3389 = vmatmul.msk.f32.gmra.mxu2 %vm123_vm4, %v4873_v55 }
 0x9b1   :  { %3392 = vmatmul.msk.f32.vlgmr.msra.gmra.mxu3 %vm123_vm4, %v4923_v18 }
 0x9b9   :  { %3393 = vmatmul.msk.f32.gmra.mxu3 %vm123_vm4, %v4900_v21 }
 0x9bc   :  { %v1911_v6 = vpop.xlane.xlu0 %1910 }
 0x9bd   :  { %v1917_v18 = vsub.f32 %v4976_v24, %v1911_v6 }
 0x9bf   :  { %v1923_v21 = vmul.f32 1.442695, %v1917_v18 }
 0x9c1   :  { %v1908_v37 = vpop.xlane.xlu1 %1907 }
 0x9c2   :  { %v1916_v45 = vsub.f32 %v4980_v28, %v1908_v37 }
 0x9c4   :  { %v1921_v0 = vmul.f32 1.442695, %v1916_v45 }
 0x9c6   :  { %3618 = vpow2.f32 %v1921_v0 }
 0x9cc   :  { %v5041_v33 = vpop.eup %3618 }
 0x9cd   :  { %v1930_v15 = vsel %vm327_vm13, %v5041_v33, 0.0 }
 0x9ce   :  { %1931 = vadd.xlane.f32.xlu0 %v1930_v15 }
 0x9d0   :  { %v1905_v63 = vpop.xlane.xlu2 %1904 }
 0x9d1   :  { %v1915_v55 = vsub.f32 %v4974_v20, %v1905_v63  ;;  %v3518_v20 = vpack.i.bf16 %v4781_v9, %v4771_v32 }
 0x9d3   :  { %v1919_v62 = vmul.f32 1.442695, %v1915_v55 }
 0x9d5   :  { %3620 = vpow2.f32 %v1919_v62 }
 0x9d6   :  { %3622 = vpow2.f32 %v1923_v21 }
 0x9d8   :  { %v1914_v10 = vpop.xlane.xlu2 %1913 }
 0x9d9   :  { %v1918_v13 = vsub.f32 %v4986_v2, %v1914_v10  ;;  %v2268_v23 = vpop.permute.xlu1 %2267 }
 0x9da   :  { %3366 = vmatpush.msk.msra.mxu0 %vm634_vm11, %v2268_v23 }
 0x9db   :  { %v3621_v28 = vpop.eup %3620  ;;  %v1925_v59 = vmul.f32 1.442695, %v1918_v13 }
 0x9dc   :  { %v1927_v19 = vsel %vm323_vm12, %v3621_v28, 0.0  ;;  %v3623_v24 = vpop.eup %3622 }
 0x9dd   :  { %3624 = vpow2.f32 %v1925_v59  ;;  %1928 = vadd.xlane.f32.xlu2 %v1927_v19  ;;  %v1933_v3 = vsel %vm323_vm12, %v3623_v24, 0.0 }
 0x9e2   :  { %3519 = vrot.lane.b32.xlu0 %v3518_v20, %s3693_s17 }
 0x9e3   :  { %v5053_v43 = vpop.eup %3624 }
 0x9e4   :  { %v1936_v2 = vsel %vm327_vm13, %v5053_v43, 0.0 }
 0x9e5   :  { %1937 = vadd.xlane.f32.xlu1 %v1936_v2  ;;  %1934 = vadd.xlane.f32.xlu2 %v1933_v3 }
 0x9fd   :  { %2319 = vrot.lane.b32.xlu2 %v4785_v27, %s3693_s17 }
 0xa03   :  { %v5060_v14 = vpop.f32.mrf.mxu2 }
 0xa05   :  { %2559 = vrot.lane.b32.xlu2 %v4850_v61, %s3693_s17 }
 0xa0b   :  { %v5064_v32 = vpop.f32.mrf.mxu2 }
 0xa13   :  { %v2419_v9 = vpop.f32.mrf.mxu2 }
 0xa14   :  { %v5066_v52 = vpop.f32.mrf.mxu3  ;;  %v2487_v29 = vsel %vm323_vm12, %v2419_v9, -inf }
 0xa15   :  { %2488 = vmax.xlane.f32.xlu1 %v2487_v29 }
 0xa1c   :  { %v5069_v47 = vpop.f32.mrf.mxu3  ;;  %v2422_v12 = vpop.f32.mrf.mxu2 }
 0xa1d   :  { %v2490_v7 = vsel %vm327_vm13, %v2422_v12, -inf }
 0xa1e   :  { %2491 = vmax.xlane.f32.xlu0 %v2490_v7 }
 0xa24   :  { %v5072_v27 = vpop.f32.mrf.mxu3  ;;  %v2715_v53 = vpop.f32.mrf.mxu2 }
 0xa25   :  { %v2783_v8 = vsel %vm323_vm12, %v2715_v53, -inf  ;;  %v2493_v34 = vsel %vm323_vm12, %v5072_v27, -inf }
 0xa26   :  { %2784 = vmax.xlane.f32.xlu0 %v2783_v8 }
 0xa2c   :  { %v5075_v61 = vpop.f32.mrf.mxu3  ;;  %v5081_v56 = vpop.f32.mrf.mxu2 }
 0xa2d   :  { %v2496_v57 = vsel %vm327_vm13, %v5075_v61, -inf  ;;  %v2786_v41 = vsel %vm327_vm13, %v5081_v56, -inf }
 0xa2e   :  { %2497 = vmax.xlane.f32.xlu1 %v2496_v57  ;;  %2494 = vmax.xlane.f32.xlu2 %v2493_v34 }
 0xa34   :  { %v5085_v60 = vpop.f32.mrf.mxu3 }
 0xa35   :  { %v2789_v39 = vsel %vm323_vm12, %v5085_v60, -inf }
 0xa36   :  { %2790 = vmax.xlane.f32.xlu2 %v2789_v39  ;;  %2787 = vmax.xlane.f32.xlu1 %v2786_v41  ;;  %v2904_v39 = vld.sshfl [vmem:[#allocation1 + $0x20] sm:$0xff pattern:$0x73625140] }
 0xa3a   :  { %3524 = vrot.lane.b32.xlu0 %v3523_v38, %s3693_s17 }
 0xa3c   :  { %v5093_v40 = vpop.f32.mrf.mxu3 }
 0xa3d   :  { %v2792_v63 = vsel %vm327_vm13, %v5093_v40, -inf }
 0xa41   :  { %v1932_v49 = vpop.xlane.xlu0 %1931 }
 0xa50   :  { %v1929_v31 = vpop.xlane.xlu2 %1928 }
 0xa51   :  { %3626 = vrcp.f32 %v1929_v31 }
 0xa52   :  { %3628 = vrcp.f32 %v1932_v49 }
 0xa54   :  { %v3520_v54 = vpop.permute.xlu0 %3519 }
 0xa55   :  { %v3521_v1 = vunpack.i.l.bf16 %v3520_v54  ;;  %v3522_v45 = vunpack.i.h.bf16 %v3520_v54 }
 0xa57   :  { %v3627_v25 = vpop.eup %3626  ;;  %2293 = vmatpush.msra.mxu0 %v3521_v1 }
 0xa58   :  { %v1943_v11 = vmul.f32 %v3627_v25, %v3621_v28  ;;  %v1935_v26 = vpop.xlane.xlu2 %1934  ;;  %v3629_v44 = vpop.eup %3628 }
 0xa59   :  { %3630 = vrcp.f32 %v1935_v26  ;;  %v1938_v37 = vpop.xlane.xlu1 %1937  ;;  %v1944_v15 = vmul.f32 %v3629_v44, %v5041_v33 }
 0xa5a   :  { %3367 = vmatmul.msk.f32.vlgmr.msra.gmra.mxu0 %vm323_vm12, %v1943_v11  ;;  %3632 = vrcp.f32 %v1938_v37 }
 0xa5f   :  { %v3631_v0 = vpop.eup %3630 }
 0xa60   :  { %v2320_v22 = vpop.permute.xlu2 %2319  ;;  %v1945_v6 = vmul.f32 %v3631_v0, %v3623_v24  ;;  %v3633_v55 = vpop.eup %3632 }
 0xa61   :  { %3369 = vmatpush.msk.msrb.mxu1 %vm634_vm11, %v2320_v22  ;;  %v1946_v62 = vmul.f32 %v3633_v55, %v5053_v43 }
 0xa62   :  { %3368 = vmatmul.msk.f32.gmra.mxu0 %vm323_vm12, %v1944_v15 }
 0xa63   :  { %2345 = vmatpush.msrb.mxu1 %v3522_v45 }
 0xa64   :  { %3370 = vmatmul.msk.f32.vlgmr.msrb.gmra.mxu1 %vm323_vm12, %v1945_v6  ;;  %2793 = vmax.xlane.f32.xlu0 %v2792_v63 }
 0xa68   :  { %v2560_v18 = vpop.permute.xlu2 %2559 }
 0xa69   :  { %3380 = vmatpush.msk.msrb.mxu0 %vm634_vm11, %v2560_v18 }
 0xa6c   :  { %3371 = vmatmul.msk.f32.gmra.mxu1 %vm323_vm12, %v1946_v62 }
 0xa88   :  { %v2489_v33 = vpop.xlane.xlu1 %2488 }
 0xa89   :  { %v2499_v21 = vsub.f32 %v2419_v9, %v2489_v33 }
 0xa8b   :  { %v2503_v10 = vmul.f32 1.442695, %v2499_v21 }
 0xa8d   :  { %3634 = vpow2.f32 %v2503_v10 }
 0xa91   :  { %v2492_v13 = vpop.xlane.xlu0 %2491 }
 0xa92   :  { %v2500_v23 = vsub.f32 %v2422_v12, %v2492_v13 }
 0xa93   :  { %v3635_v28 = vpop.eup %3634 }
 0xa94   :  { %v2505_v59 = vmul.f32 1.442695, %v2500_v23  ;;  %v2511_v19 = vsel %vm323_vm12, %v3635_v28, 0.0 }
 0xa95   :  { %2512 = vadd.xlane.f32.xlu0 %v2511_v19 }
 0xa96   :  { %3636 = vpow2.f32 %v2505_v59 }
 0xa99   :  { %v2785_v20 = vpop.xlane.xlu0 %2784 }
 0xa9a   :  { %v2795_v24 = vsub.f32 %v2715_v53, %v2785_v20 }
 0xa9c   :  { %v3637_v2 = vpop.eup %3636  ;;  %v2799_v3 = vmul.f32 1.442695, %v2795_v24 }
 0xa9d   :  { %v2514_v43 = vsel %vm327_vm13, %v3637_v2, 0.0 }
 0xa9e   :  { %3638 = vpow2.f32 %v2799_v3  ;;  %2515 = vadd.xlane.f32.xlu2 %v2514_v43 }
 0xaa1   :  { %v2495_v29 = vpop.xlane.xlu2 %2494 }
 0xaa2   :  { %v2501_v9 = vsub.f32 %v5072_v27, %v2495_v29  ;;  %v2498_v27 = vpop.xlane.xlu1 %2497 }
 0xaa3   :  { %v2502_v38 = vsub.f32 %v5075_v61, %v2498_v27  ;;  %v2903_v61 = vld.sshfl [vmem:[#allocation1] sm:$0xff pattern:$0x73625140]  ;;  %v3684_v27 = vld [vmem:[%s5282_s7 + $0x10] sm:$0xff] }
 0xaa4   :  { %v5107_v7 = vpop.eup %3638  ;;  %v2507_v12 = vmul.f32 1.442695, %v2501_v9  ;;  %v3528_v45 = vpack.i.bf16 %v2903_v61, %v4945_v36 }
 0xaa5   :  { %v2807_v8 = vsel %vm323_vm12, %v5107_v7, 0.0  ;;  %v2509_v49 = vmul.f32 1.442695, %v2502_v38  ;;  %v3685_v38 = vld [vmem:[%s5282_s7 + $0x8] sm:$0xff] }
 0xaa6   :  { %2808 = vadd.xlane.f32.xlu0 %v2807_v8  ;;  %3640 = vpow2.f32 %v2507_v12 }
 0xaa7   :  { %3642 = vpow2.f32 %v2509_v49 }
 0xaa9   :  { %v2791_v54 = vpop.xlane.xlu2 %2790 }
 0xaaa   :  { %v2797_v25 = vsub.f32 %v5085_v60, %v2791_v54  ;;  %v2788_v22 = vpop.xlane.xlu1 %2787 }
 0xaab   :  { %v2796_v15 = vsub.f32 %v5081_v56, %v2788_v22 }
 0xaac   :  { %v3525_v57 = vpop.permute.xlu0 %3524  ;;  %v3641_v34 = vpop.eup %3640  ;;  %v2803_v11 = vmul.f32 1.442695, %v2797_v25 }
 0xaad   :  { %v3526_v53 = vunpack.i.l.bf16 %v3525_v57  ;;  %v2517_v41 = vsel %vm323_vm12, %v3641_v34, 0.0  ;;  %v3643_v31 = vpop.eup %3642  ;;  %v2801_v18 = vmul.f32 1.442695, %v2796_v15  ;;  %v3527_v59 = vunpack.i.h.bf16 %v3525_v57  ;;  %v3679_v57 = vld [vmem:[%s5282_s7 + $0x38] sm:$0xff] }
 0xaae   :  { %2518 = vadd.xlane.f32.xlu1 %v2517_v41  ;;  %v2520_v1 = vsel %vm327_vm13, %v3643_v31, 0.0  ;;  %3644 = vpow2.f32 %v2803_v11  ;;  %v3682_v41 = vld [vmem:[%s5282_s7 + $0x20] sm:$0xff] }
 0xaaf   :  { %2585 = vmatpush.msrb.mxu0 %v3526_v53 }
 0xab4   :  { %v5121_v37 = vpop.eup %3644 }
 0xab6   :  { %2855 = vrot.lane.b32.xlu2 %v4931_v17, %s3693_s17 }
 0xaba   :  { %2907 = vrot.lane.b32.xlu0 %v2904_v39, %s3693_s17  ;;  %v3683_v39 = vld [vmem:[%s5282_s7 + $0x18] sm:$0xff] }
 0xac7   :  { %2611 = vrot.lane.b32.xlu1 %v4859_v50, %s3693_s17  ;;  %v2813_v50 = vsel %vm323_vm12, %v5121_v37, 0.0 }
 0xad7   :  { %v2794_v17 = vpop.xlane.xlu0 %2793 }
 0xad8   :  { %v2798_v26 = vsub.f32 %v5093_v40, %v2794_v17 }
 0xada   :  { %v2805_v44 = vmul.f32 1.442695, %v2798_v26 }
 0xadc   :  { %3646 = vpow2.f32 %v2805_v44 }
 0xadf   :  { %2521 = vadd.xlane.f32.xlu2 %v2520_v1  ;;  %v3686_v1 = vld [vmem:[%s5282_s7] sm:$0xff] }
 0xae1   :  { %v2347_v61 = vpop.f32.mrf.mxu1 }
 0xae2   :  { %v5126_v0 = vpop.eup %3646 }
 0xae3   :  { %v2816_v60 = vsel %vm327_vm13, %v5126_v0, 0.0 }
 0xaf1   :  { %2814 = vadd.xlane.f32.xlu1 %v2813_v50 }
 0xaf7   :  { %3529 = vrot.lane.b32.xlu2 %v3528_v45, %s3693_s17 }
 0xaf9   :  { %2817 = vadd.xlane.f32.xlu1 %v2816_v60  ;;  %v2350_v60 = vpop.f32.mrf.mxu1 }
 0xb08   :  { %v2513_v40 = vpop.xlane.xlu0 %2512 }
 0xb09   :  { %3648 = vrcp.f32 %v2513_v40 }
 0xb0f   :  { %v3649_v6 = vpop.eup %3648 }
 0xb10   :  { %v2527_v63 = vmul.f32 %v3649_v6, %v3635_v28 }
 0xb11   :  { %v2516_v55 = vpop.xlane.xlu2 %2515 }
 0xb12   :  { %3650 = vrcp.f32 %v2516_v55  ;;  %3381 = vmatmul.msk.f32.vlgmr.msrb.gmra.mxu0 %vm323_vm12, %v2527_v63 }
 0xb13   :  { %3652 = vpow2.f32 %v2801_v18 }
 0xb18   :  { %v3651_v36 = vpop.eup %3650 }
 0xb19   :  { %v2856_v62 = vpop.permute.xlu2 %2855  ;;  %v2528_v33 = vmul.f32 %v3651_v36, %v3637_v2  ;;  %v3653_v21 = vpop.eup %3652 }
 0xb1a   :  { %3394 = vmatpush.msk.msra.mxu0 %vm634_vm11, %v2856_v62  ;;  %v2810_v10 = vsel %vm327_vm13, %v3653_v21, 0.0  ;;  %v2809_v13 = vpop.xlane.xlu0 %2808 }
 0xb1b   :  { %3382 = vmatmul.msk.f32.gmra.mxu0 %vm323_vm12, %v2528_v33  ;;  %v2348_v33 = vadd.f32 %v2347_v61, %v5066_v52 }
 0xb20   :  { %2811 = vadd.xlane.f32.xlu2 %v2810_v10 }
 0xb21   :  { %v2519_v56 = vpop.xlane.xlu1 %2518 }
 0xb22   :  { %3654 = vrcp.f32 %v2519_v56 }
 0xb23   :  { %3656 = vrcp.f32 %v2809_v13 }
 0xb28   :  { %v3655_v23 = vpop.eup %3654 }
 0xb29   :  { %v2529_v19 = vmul.f32 %v3655_v23, %v3641_v34  ;;  %v3657_v2 = vpop.eup %3656  ;;  %v3680_v34 = vld [vmem:[%s5282_s7 + $0x30] sm:$0xff] }
 0xb2a   :  { %v2823_v8 = vmul.f32 %v3657_v2, %v5107_v7  ;;  %v3681_v7 = vld [vmem:[%s5282_s7 + $0x28] sm:$0xff] }
 0xb2c   :  { %v2908_v20 = vpop.permute.xlu0 %2907 }
 0xb39   :  { %v2612_v28 = vpop.permute.xlu1 %2611 }
 0xb3a   :  { %3383 = vmatpush.msk.msra.mxu1 %vm634_vm11, %v2612_v28  ;;  %v2351_v28 = vadd.f32 %v2350_v60, %v5069_v47 }
 0xb3c   :  { %2637 = vmatpush.msra.mxu1 %v3527_v59 }
 0xb3d   :  { %3384 = vmatmul.msk.f32.vlgmr.msra.gmra.mxu1 %vm323_vm12, %v2529_v19 }
 0xb3e   :  { %3397 = vmatpush.msk.msrb.mxu1 %vm634_vm11, %v2908_v20 }
 0xb52   :  { %v2522_v24 = vpop.xlane.xlu2 %2521 }
 0xb53   :  { %3658 = vrcp.f32 %v2522_v24 }
 0xb59   :  { %v3659_v3 = vpop.eup %3658 }
 0xb5a   :  { %v3530_v43 = vpop.permute.xlu2 %3529  ;;  %v2530_v29 = vmul.f32 %v3659_v3, %v3643_v31 }
 0xb5b   :  { %v3532_v9 = vunpack.i.h.bf16 %v3530_v43  ;;  %v3531_v12 = vunpack.i.l.bf16 %v3530_v43 }
 0xb5c   :  { %3385 = vmatmul.msk.f32.gmra.mxu1 %vm323_vm12, %v2530_v29 }
 0xb5d   :  { %2881 = vmatpush.msra.mxu0 %v3531_v12  ;;  %2933 = vmatpush.msrb.mxu1 %v3532_v9  ;;  %v3687_v12 = vld [vmem:[%s5278_s4] ss:$0 sm:$0xff] }
 0xb5e   :  { %3395 = vmatmul.msk.f32.vlgmr.msra.gmra.mxu0 %vm323_vm12, %v2823_v8 }
 0xb5f   :  { %3116 = vmatpush.msrb.mxu0 %v3679_v57 }
 0xb61   :  { %3117 = vmatpush.msrb.mxu0 %v3680_v34 }
 0xb63   :  { %3118 = vmatpush.msrb.mxu0 %v3681_v7 }
 0xb64   :  { %v2815_v53 = vpop.xlane.xlu1 %2814 }
 0xb65   :  { %3119 = vmatpush.msrb.mxu0 %v3682_v41  ;;  %3660 = vrcp.f32 %v2815_v53 }
 0xb67   :  { %3120 = vmatpush.msrb.mxu0 %v3683_v39 }
 0xb69   :  { %3121 = vmatpush.msrb.mxu0 %v3684_v27 }
 0xb6b   :  { %3122 = vmatpush.msrb.mxu0 %v3685_v38  ;;  %v3661_v49 = vpop.eup %3660 }
 0xb6c   :  { %v2825_v31 = vmul.f32 %v3661_v49, %v5121_v37  ;;  %v2818_v54 = vpop.xlane.xlu1 %2817  ;;  %v2295_v37 = vpop.f32.mrf.mxu0 }
 0xb6d   :  { %3123 = vmatpush.msrb.mxu0 %v3686_v1  ;;  %3662 = vrcp.f32 %v2818_v54  ;;  %v2296_v22 = vadd.f32 %v2295_v37, %v5060_v14 }
 0xb6e   :  { %3398 = vmatmul.msk.f32.vlgmr.msrb.gmra.mxu1 %vm323_vm12, %v2825_v31 }
 0xb73   :  { %v3663_v25 = vpop.eup %3662 }
 0xb74   :  { %v2826_v11 = vmul.f32 %v3663_v25, %v5126_v0  ;;  %v2298_v50 = vpop.f32.mrf.mxu0 }
 0xb75   :  { %v2299_v52 = vadd.f32 %v2298_v50, %v5064_v32 }
 0xb76   :  { %3399 = vmatmul.msk.f32.gmra.mxu1 %vm323_vm12, %v2826_v11 }
 0xb8f   :  { %v2587_v45 = vpop.f32.mrf.mxu0 }
 0xb90   :  { %v2645_v15 = vadd.f32 %v2587_v45, %v2296_v22  ;;  %v3164_v22 = vld [vmem:[%s5285_s9 + $0x18] sm:$0xff] }
 0xb91   :  { %3217 = vmatpush.msra.mxu1 %v3164_v22 }
 0xb93   :  { %v2812_v17 = vpop.xlane.xlu2 %2811 }
 0xb94   :  { %3664 = vrcp.f32 %v2812_v17 }
 0xb98   :  { %v2590_v40 = vpop.f32.mrf.mxu0 }
 0xb99   :  { %v2646_v2 = vadd.f32 %v2590_v40, %v2299_v52 }
 0xb9a   :  { %v3665_v26 = vpop.eup %3664 }
 0xb9b   :  { %v2824_v44 = vmul.f32 %v3665_v26, %v3653_v21 }
 0xb9d   :  { %3396 = vmatmul.msk.f32.gmra.mxu0 %vm323_vm12, %v2824_v44  ;;  %v3688_v44 = vld [vmem:[%s5280_s6] ss:$0 sm:$0xff] }
 0xbba   :  { %v2639_v6 = vpop.f32.mrf.mxu1 }
 0xbbb   :  { %v2647_v10 = vadd.f32 %v2639_v6, %v2348_v33  ;;  %v3162_v6 = vld [vmem:[%s5285_s9 + $0x8] sm:$0xff] }
 0xbd9   :  { %v2642_v62 = vpop.f32.mrf.mxu1 }
 0xbda   :  { %v2648_v19 = vadd.f32 %v2642_v62, %v2351_v28 }
 0xbdb   :  { %v2883_v63 = vpop.f32.mrf.mxu0 }
 0xbdc   :  { %v2941_v0 = vadd.f32 %v2883_v63, %v2645_v15  ;;  %v3163_v15 = vld [vmem:[%s5285_s9 + $0x10] sm:$0xff]  ;;  %v3161_v63 = vld [vmem:[%s5285_s9] sm:$0xff] }
 0xbdd   :  { %3218 = vmatpush.msra.mxu1 %v3163_v15 }
 0xbde   :  { %v2949_v55 = vrot.slane %v2941_v0, 2  ;;  %v2950_v18 = vrot.slane %v2941_v0, 4  ;;  %v2951_v36 = vrot.slane %v2941_v0, 6  ;;  %2955 = vst [vmem:[#allocation1] ss:$4 sm:$0xff] %v2941_v0 }
 0xbdf   :  { %3219 = vmatpush.msra.mxu1 %v3162_v6 }
 0xbe0   :  { %2957 = vst [vmem:[#allocation1 + $0x1] ss:$4 sm:$0xff] %v2949_v55  ;;  %v3689_v55 = vld [vmem:[%s5283_s8] ss:$0 sm:$0xff] }
 0xbe1   :  { %2959 = vst [vmem:[#allocation1 + $0x2] ss:$4 sm:$0xff] %v2950_v18  ;;  %3220 = vmatpush.msra.mxu1 %v3161_v63 }
 0xbe2   :  { %2961 = vst [vmem:[#allocation1 + $0x3] ss:$4 sm:$0xff] %v2951_v36 }
 0xbe9   :  { %v2970_v21 = vld.sshfl [vmem:[#allocation1] sm:$0xff pattern:$0x73625140] }
 0xbea   :  { %3400 = vmatmul.msk.f32.vlgmr.msra.gmra.mxu2 %vm123_vm4, %v2970_v21 }
 0xbeb   :  { %v2935_v56 = vpop.f32.mrf.mxu1 }
 0xbec   :  { %v2943_v14 = vadd.f32 %v2935_v56, %v2647_v10 }
 0xbee   :  { %v2952_v13 = vrot.slane %v2943_v14, 2  ;;  %v2953_v23 = vrot.slane %v2943_v14, 4  ;;  %2965 = vst [vmem:[#allocation1 + $0x21] ss:$4 sm:$0xff] %v2943_v14  ;;  %v2954_v59 = vrot.slane %v2943_v14, 6 }
 0xbf0   :  { %2967 = vst [vmem:[#allocation1 + $0x22] ss:$4 sm:$0xff] %v2952_v13 }
 0xbf1   :  { %2969 = vst [vmem:[#allocation1 + $0x23] ss:$4 sm:$0xff] %v2953_v23 }
 0xbf2   :  { %2972 = vst [vmem:[#allocation1] ss:$4 sm:$0xff] %v2954_v59 }
 0xbf3   :  { %v2938_v20 = vpop.f32.mrf.mxu1 }
 0xbf4   :  { %v2944_v24 = vadd.f32 %v2938_v20, %v2648_v19 }
 0xbf6   :  { %2973 = vst [vmem:[#allocation1 + $0x1] ss:$4 sm:$0xff] %v2944_v24 }
 0xbfd   :  { %v2974_v9 = vld.sshfl [vmem:[#allocation1] sm:$0xff pattern:$0x73625140] }
 0xc1a   :  { %v2886_v3 = vpop.f32.mrf.mxu0 }
 0xc1b   :  { %v2942_v43 = vadd.f32 %v2886_v3, %v2646_v2 }
 0xc1d   :  { %2963 = vst [vmem:[#allocation1 + $0x20] ss:$4 sm:$0xff] %v2942_v43 }
 0xc24   :  { %v2971_v29 = vld.sshfl [vmem:[#allocation1 + $0x20] sm:$0xff pattern:$0x73625140] }
 0xc25   :  { %3401 = vmatmul.msk.f32.gmra.mxu2 %vm123_vm4, %v2971_v29 }
 0xc2d   :  { %3402 = vmatmul.msk.f32.gmra.mxu2 %vm123_vm4, %v2974_v9 }
 0xc6d   :  { %v2998_v47 = vpop.f32.mrf.mxu2 }
 0xc6e   :  { %v2999_v8 = vadd.f32 %v3687_v12, %v2998_v47 }
 0xc70   :  { %v3010_v57 = vrot.slane %v2999_v8, 2  ;;  %v3011_v34 = vrot.slane %v2999_v8, 4  ;;  %v3012_v7 = vrot.slane %v2999_v8, 6  ;;  %v5182_v32 = vadd.f32 %v2999_v8, %v4577_v58 }
 0xc72   :  { %v5185_v53 = vadd.f32 %v3010_v57, %v4580_v48  ;;  %v5188_v41 = vadd.f32 %v3011_v34, %v4583_v5  ;;  %v5191_v39 = vadd.f32 %v3012_v7, %v4586_v35  ;;  %3044 = vst [vmem:[#allocation1] ss:$4 sm:$0xff] %v5182_v32  ;;  %v3537_v34 = vld [vmem:[%s5284_s10] ss:$0 sm:$0xff] }
 0xc74   :  { %3046 = vst [vmem:[#allocation1 + $0x1] ss:$4 sm:$0xff] %v5185_v53 }
 0xc75   :  { %3048 = vst [vmem:[#allocation1 + $0x2] ss:$4 sm:$0xff] %v5188_v41 }
 0xc76   :  { %3050 = vst [vmem:[#allocation1 + $0x3] ss:$4 sm:$0xff] %v5191_v39 }
 0xc7d   :  { %v3059_v27 = vld.sshfl [vmem:[#allocation1] sm:$0xff pattern:$0x73625140] }
 0xc7e   :  { %3403 = vmatmul.msk.f32.vlgmr.msrb.gmra.mxu3 %vm123_vm4, %v3059_v27 }
 0xca8   :  { %v3001_v58 = vpop.f32.mrf.mxu2 }
 0xca9   :  { %v3002_v48 = vadd.f32 %v3687_v12, %v3001_v58 }
 0xcab   :  { %v3013_v38 = vrot.slane %v3002_v48, 2  ;;  %v3014_v49 = vrot.slane %v3002_v48, 4  ;;  %v3015_v5 = vrot.slane %v3002_v48, 6  ;;  %v5199_v31 = vadd.f32 %v3002_v48, %v4592_v4 }
 0xcad   :  { %v5202_v35 = vadd.f32 %v3013_v38, %v4594_v16  ;;  %v5205_v54 = vadd.f32 %v3014_v49, %v4596_v51  ;;  %v5208_v1 = vadd.f32 %v3015_v5, %v4598_v42  ;;  %3052 = vst [vmem:[#allocation1 + $0x20] ss:$4 sm:$0xff] %v5199_v31 }
 0xcaf   :  { %3054 = vst [vmem:[#allocation1 + $0x21] ss:$4 sm:$0xff] %v5202_v35 }
 0xcb0   :  { %3056 = vst [vmem:[#allocation1 + $0x22] ss:$4 sm:$0xff] %v5205_v54  ;;  %v3004_v25 = vpop.f32.mrf.mxu2 }
 0xcb1   :  { %3058 = vst [vmem:[#allocation1 + $0x23] ss:$4 sm:$0xff] %v5208_v1  ;;  %v3005_v4 = vadd.f32 %v3687_v12, %v3004_v25 }
 0xcb3   :  { %v3016_v11 = vrot.slane %v3005_v4, 2  ;;  %v5215_v16 = vadd.f32 %v3005_v4, %v4605_v30 }
 0xcb5   :  { %v5218_v51 = vadd.f32 %v3016_v11, %v4607_v46  ;;  %3061 = vst [vmem:[#allocation1] ss:$4 sm:$0xff] %v5215_v16 }
 0xcb7   :  { %3062 = vst [vmem:[#allocation1 + $0x1] ss:$4 sm:$0xff] %v5218_v51 }
 0xcb8   :  { %v3060_v42 = vld.sshfl [vmem:[#allocation1 + $0x20] sm:$0xff pattern:$0x73625140] }
 0xcb9   :  { %3404 = vmatmul.msk.f32.gmra.mxu3 %vm123_vm4, %v3060_v42 }
 0xcbe   :  { %v3063_v17 = vld.sshfl [vmem:[#allocation1] sm:$0xff pattern:$0x73625140] }
 0xcc1   :  { %3405 = vmatmul.msk.f32.gmra.mxu3 %vm123_vm4, %v3063_v17 }
 0xd01   :  { %v3087_v26 = vpop.f32.mrf.mxu3 }
 0xd02   :  { %v3088_v30 = vadd.f32 %v3688_v44, %v3087_v26 }
 0xd04   :  { %v3096_v37 = vmax.f32 %v3088_v30, 0.0 }
 0xd06   :  { %3406 = vmatmul.msk.f32.vlgmr.msrb.gmra.mxu0 %vm1627_vm14, %v3096_v37 }
 0xd3c   :  { %v3090_v46 = vpop.f32.mrf.mxu3 }
 0xd3d   :  { %v3091_v50 = vadd.f32 %v3688_v44, %v3090_v46 }
 0xd3f   :  { %v3097_v61 = vmax.f32 %v3091_v50, 0.0 }
 0xd41   :  { %3407 = vmatmul.msk.f32.gmra.mxu0 %vm1627_vm14, %v3097_v61 }
 0xd44   :  { %v3093_v45 = vpop.f32.mrf.mxu3 }
 0xd45   :  { %v3094_v60 = vadd.f32 %v3688_v44, %v3093_v45 }
 0xd47   :  { %v3098_v40 = vmax.f32 %v3094_v60, 0.0 }
 0xd49   :  { %3408 = vmatmul.msk.f32.gmra.mxu0 %vm1627_vm14, %v3098_v40 }
 0xd83   :  { %v3125_v0 = vpop.f32.mrf.mxu0 }
 0xd84   :  { %v3126_v18 = vadd.f32 %v3689_v55, %v3125_v0 }
 0xd86   :  { %v3137_v36 = vrot.slane %v3126_v18, 2  ;;  %v3138_v62 = vrot.slane %v3126_v18, 4  ;;  %v3139_v33 = vrot.slane %v3126_v18, 6  ;;  %v3151_v21 = vadd.f32 %v3126_v18, %v5182_v32 }
 0xd88   :  { %v3152_v10 = vadd.f32 %v3137_v36, %v5185_v53  ;;  %v3153_v56 = vadd.f32 %v3138_v62, %v5188_v41  ;;  %v3154_v14 = vadd.f32 %v3139_v33, %v5191_v39  ;;  %3179 = vst [vmem:[#allocation1] ss:$4 sm:$0xff] %v3151_v21 }
 0xd8a   :  { %3181 = vst [vmem:[#allocation1 + $0x1] ss:$4 sm:$0xff] %v3152_v10 }
 0xd8b   :  { %3183 = vst [vmem:[#allocation1 + $0x2] ss:$4 sm:$0xff] %v3153_v56 }
 0xd8c   :  { %3185 = vst [vmem:[#allocation1 + $0x3] ss:$4 sm:$0xff] %v3154_v14 }
 0xd93   :  { %v3194_v13 = vld.sshfl [vmem:[#allocation1] sm:$0xff pattern:$0x73625140] }
 0xd94   :  { %3409 = vmatmul.msk.f32.vlgmr.msra.gmra.mxu1 %vm123_vm4, %v3194_v13 }
 0xdbe   :  { %v3128_v23 = vpop.f32.mrf.mxu0 }
 0xdbf   :  { %v3129_v28 = vadd.f32 %v3689_v55, %v3128_v23 }
 0xdc1   :  { %v3140_v59 = vrot.slane %v3129_v28, 2  ;;  %v3141_v19 = vrot.slane %v3129_v28, 4  ;;  %v3142_v20 = vrot.slane %v3129_v28, 6  ;;  %v3155_v24 = vadd.f32 %v3129_v28, %v5199_v31 }
 0xdc3   :  { %v3156_v52 = vadd.f32 %v3140_v59, %v5202_v35  ;;  %v3157_v2 = vadd.f32 %v3141_v19, %v5205_v54  ;;  %v3158_v3 = vadd.f32 %v3142_v20, %v5208_v1  ;;  %3187 = vst [vmem:[#allocation1 + $0x20] ss:$4 sm:$0xff] %v3155_v24 }
 0xdc5   :  { %3189 = vst [vmem:[#allocation1 + $0x21] ss:$4 sm:$0xff] %v3156_v52 }
 0xdc6   :  { %3191 = vst [vmem:[#allocation1 + $0x22] ss:$4 sm:$0xff] %v3157_v2  ;;  %v3131_v43 = vpop.f32.mrf.mxu0 }
 0xdc7   :  { %3193 = vst [vmem:[#allocation1 + $0x23] ss:$4 sm:$0xff] %v3158_v3  ;;  %v3132_v29 = vadd.f32 %v3689_v55, %v3131_v43 }
 0xdc9   :  { %v3143_v9 = vrot.slane %v3132_v29, 2  ;;  %v3159_v47 = vadd.f32 %v3132_v29, %v5215_v16 }
 0xdcb   :  { %v3160_v12 = vadd.f32 %v3143_v9, %v5218_v51  ;;  %3196 = vst [vmem:[#allocation1] ss:$4 sm:$0xff] %v3159_v47 }
 0xdcd   :  { %3197 = vst [vmem:[#allocation1 + $0x1] ss:$4 sm:$0xff] %v3160_v12 }
 0xdce   :  { %v3195_v8 = vld.sshfl [vmem:[#allocation1 + $0x20] sm:$0xff pattern:$0x73625140] }
 0xdcf   :  { %3410 = vmatmul.msk.f32.gmra.mxu1 %vm123_vm4, %v3195_v8 }
 0xdd4   :  { %v3198_v57 = vld.sshfl [vmem:[#allocation1] sm:$0xff pattern:$0x73625140] }
 0xdd7   :  { %3411 = vmatmul.msk.f32.gmra.mxu1 %vm123_vm4, %v3198_v57 }
 0xe11   :  { %v3222_v7 = vpop.f32.mrf.mxu1 }
 0xe12   :  { %v3223_v32 = vadd.f32 %v3537_v34, %v3222_v7 }
 0xe14   :  { %v3234_v53 = vrot.slane %v3223_v32, 2  ;;  %v3235_v41 = vrot.slane %v3223_v32, 4  ;;  %v3236_v39 = vrot.slane %v3223_v32, 6  ;;  %3241 = vst [vmem:[#allocation1] ss:$4 sm:$0xff] %v3223_v32 }
 0xe16   :  { %3243 = vst [vmem:[#allocation1 + $0x1] ss:$4 sm:$0xff] %v3234_v53 }
 0xe17   :  { %3245 = vst [vmem:[#allocation1 + $0x2] ss:$4 sm:$0xff] %v3235_v41 }
 0xe18   :  { %3247 = vst [vmem:[#allocation1 + $0x3] ss:$4 sm:$0xff] %v3236_v39 }
 0xe1f   :  { %v3250_v27 = vld.sshfl [vmem:[#allocation1] sm:$0xff pattern:$0x73625140] }
 0xe20   :  { %3264 = vst.msk [vmem:[%s5286_s11] sm:$0xff] %vm3263_vm15, %v3250_v27 }
 0xe4c   :  { %v3225_v58 = vpop.f32.mrf.mxu1 }
 0xe4d   :  { %v3226_v48 = vadd.f32 %v3537_v34, %v3225_v58 }
 0xe4f   :  { %v3237_v38 = vrot.slane %v3226_v48, 2  ;;  %v3238_v49 = vrot.slane %v3226_v48, 4  ;;  %v3239_v5 = vrot.slane %v3226_v48, 6  ;;  %3249 = vst [vmem:[#allocation1 + $0x20] ss:$4 sm:$0xff] %v3226_v48 }
 0xe51   :  { %3252 = vst [vmem:[#allocation1] ss:$4 sm:$0xff] %v3237_v38 }
 0xe52   :  { %3253 = vst [vmem:[#allocation1 + $0x1] ss:$4 sm:$0xff] %v3238_v49 }
 0xe53   :  { %3254 = vst [vmem:[#allocation1 + $0x2] ss:$4 sm:$0xff] %v3239_v5 }
 0xe54   :  { %v3228_v31 = vpop.f32.mrf.mxu1 }
 0xe55   :  { %v3229_v35 = vadd.f32 %v3537_v34, %v3228_v31 }
 0xe56   :  { %v3251_v54 = vld.sshfl [vmem:[#allocation1 + $0x20] sm:$0xff pattern:$0x73625140] }
 0xe57   :  { %3266 = vst.msk [vmem:[%s5286_s11 + $0x8] sm:$0x3] %vm3265_vm0, %v3251_v54  ;;  %v3240_v1 = vrot.slane %v3229_v35, 2 }
 0xe58   :  { %3255 = vst [vmem:[#allocation1 + $0x3] ss:$4 sm:$0xff] %v3229_v35 }
 0xe59   :  { %3256 = vst [vmem:[#allocation1 + $0x20] ss:$4 sm:$0xff] %v3240_v1 }
 0xe5f   :  { %v3257_v25 = vld.sshfl [vmem:[#allocation1] sm:$0xff pattern:$0x73625140] }
 0xe60   :  { %v3258_v4 = vld.sshfl [vmem:[#allocation1 + $0x20] sm:$0xff pattern:$0x73625140]  ;;  %3267 = vst.msk [vmem:[%s5286_s11 + $0x10] sm:$0xff] %vm3263_vm15, %v3257_v25 }
 0xe61   :  { %3268 = vst.msk [vmem:[%s5286_s11 + $0x18] sm:$0x3] %vm3265_vm0, %v3258_v4 }

</bundles_post_ra>
